<compile_context>
chip_gen: v7x
topology: tpu7x:2x2x1
jax: 0.10.0
libtpu: 0.0.40
codegen_flags: <defaults>
</compile_context>

<pallas_src>
import functools

import jax
import jax.numpy as jnp
from jax.experimental import pallas as pl
from jax.experimental.pallas import tpu as pltpu

AWQ_REVERSE_ORDER = [0, 4, 1, 5, 2, 6, 3, 7]
W_BIT = 4
PACK = 32 // W_BIT  # 8 nibbles per int32


def _round_up(x, m):
    return (x + m - 1) // m * m


def _device_kind():
    try:
        return jax.devices()[0].device_kind.lower()
    except Exception:
        return ""


def _default_dequant_dtype():
    # v6e/v7x VALU is bf16-native -> bf16 dequant math; v5e/older keep f32
    # (either way the MXU operands / scratch are stored in bf16).
    k = _device_kind()
    return jnp.bfloat16 if ("v6" in k or "v7" in k) else jnp.float32


def _default_vmem_cap():
    # Per-TensorCore VMEM: 128 MiB on v5e/v6e, 64 MiB on v7x.  Keep headroom
    # for double-buffering and compiler scratch.
    k = _device_kind()
    if "v5" in k or "v6" in k:
        return 96 << 20
    return 48 << 20


# --------------------- preprocessing glue (plain JAX) ----------------------
def unpack_weight_and_zeros(qweight, qzeros, bits=W_BIT):
    """Faithful port of unpack_awq + reverse_awq_order + mask (torch helpers)."""
    shifts = jnp.arange(0, 32, bits, dtype=jnp.int32)
    iw = jnp.right_shift(qweight[:, :, None], shifts[None, None, :]).astype(jnp.int8)
    iw = iw.reshape(qweight.shape[0], -1)
    iz = jnp.right_shift(qzeros[:, :, None], shifts[None, None, :]).astype(jnp.int8)
    iz = iz.reshape(qzeros.shape[0], -1)
    order = (jnp.arange(iw.shape[-1], dtype=jnp.int32)
             .reshape(-1, PACK)[:, jnp.array(AWQ_REVERSE_ORDER, dtype=jnp.int32)]
             .reshape(-1))
    iw = jnp.bitwise_and(iw[:, order], 2 ** bits - 1).astype(jnp.int32)
    iz = jnp.bitwise_and(iz[:, order], 2 ** bits - 1).astype(jnp.int32)
    return iw, iz


def resolve_n_tile(N, K, *, target=1024, min_n_blocks=None,
                   vmem_tile_budget=24 << 20):
    """Pick an N tile width.

    Multiple of 128 (lane-dense output tiles); target >= 1024 makes each
    unpacked nibble plane (nt8 = n_tile//8 >= 128 lanes) lane-dense during
    dequant so scratch stores are unmasked.  Capped so the n_tile-proportional
    VMEM (bf16 scratch + double-buffered packed planes ~= 3*K*n_tile bytes)
    stays within budget.  On v7x (2 TensorCores) at least 2 N tiles are
    requested so the 'parallel' N axis spans both cores.  The caller pads N to
    a multiple of n_tile (never fall back to n_tile = N for huge/odd N).
    """
    if min_n_blocks is None:
        min_n_blocks = 2 if "v7" in _device_kind() else 1
    n_tile = min(_round_up(target, 128), _round_up(max(N, 128), 128))
    while n_tile % 256 == 0 and 3 * K * n_tile > vmem_tile_budget:
        n_tile //= 2
    while n_tile % 256 == 0 and _round_up(N, n_tile) // n_tile < min_n_blocks:
        n_tile //= 2
    return n_tile


def pack_nibble_planes(int_vals, n_tile):
    """Pack values in [0,16), shape (R, N), into (N//n_tile, R, n_tile//8) int32.

    Tile-local nibble-plane layout: inside output tile t, nibble j of word
    (r, w) holds column  t*n_tile + j*(n_tile//8) + w.  The in-kernel unpack
    is pure shift/and with contiguous lane slices per plane (lane-dense when
    n_tile >= 1024).  Replaces the module's pack_tensor; forward semantics are
    identical.
    """
    R, N = int_vals.shape
    assert N % n_tile == 0 and n_tile % PACK == 0
    nb = N // n_tile
    nt8 = n_tile // PACK
    v = int_vals.reshape(R, nb, PACK, nt8).astype(jnp.int32)
    out = jnp.zeros((nb, R, nt8), dtype=jnp.int32)
    for j in range(PACK):
        plane = jnp.transpose(v[:, :, j, :], (1, 0, 2))  # (nb, R, nt8)
        out = jnp.bitwise_or(out, jnp.left_shift(plane, W_BIT * j))
    return out


def prepare_wqlinear_params(qweight, qzeros, scales, bias=None, *, w_bit=4,
                            group_size=-1, n_tile_target=1024, min_n_blocks=None):
    """Port of WQLinear.__init__/_preprocessing into kernel-friendly buffers."""
    assert w_bit == 4, "Only 4-bit supported (as in the module)."
    K = qweight.shape[0]
    N = qweight.shape[1] * PACK
    gs = group_size if group_size != -1 else K
    assert K % gs == 0
    G = K // gs
    assert scales.shape == (G, N)

    iweight, izeros = unpack_weight_and_zeros(qweight, qzeros)  # (K,N), (G,N)

    n_tile = resolve_n_tile(N, K, target=n_tile_target, min_n_blocks=min_n_blocks)
    N_pad = _round_up(N, n_tile)

    scales_f = scales.astype(jnp.float32)
    zscale = izeros.astype(jnp.float32) * scales_f  # fold zero*scale on the host
    if bias is None:
        bias = jnp.zeros((N,), jnp.float32)
    bias_f = bias.astype(jnp.float32)

    pad = N_pad - N
    if pad:  # padded columns: scale=0, zero*scale=0, bias=0 -> output 0, sliced off
        iweight = jnp.pad(iweight, ((0, 0), (0, pad)))
        scales_f = jnp.pad(scales_f, ((0, 0), (0, pad)))
        zscale = jnp.pad(zscale, ((0, 0), (0, pad)))
        bias_f = jnp.pad(bias_f, ((0, pad),))

    qweight_planes = pack_nibble_planes(iweight, n_tile)  # (N_pad//n_tile, K, n_tile//8)
    return dict(qweight_planes=qweight_planes, scales=scales_f, zscale=zscale,
                bias=bias_f.reshape(1, N_pad), n_tile=n_tile,
                in_features=K, out_features=N, group_size=gs)


# ------------------------------ Pallas kernel ------------------------------
def _wqlinear_kernel(x_ref, qw_ref, sc_ref, zs_ref, b_ref, o_ref, w_scratch, *,
                     dequant_dtype):
    # x_ref : (tm, K) bf16            qw_ref : (K, nt8) int32 (tile nibble planes)
    # sc_ref: (G, n_tile) f32         zs_ref : (G, n_tile) f32 (zero*scale)
    # b_ref : (1, n_tile) f32         o_ref  : (tm, n_tile)
    # w_scratch: (K, n_tile) bf16 — dequantized weight tile, persists across M steps.
    K, nt8 = qw_ref.shape
    G = sc_ref.shape[0]
    gs = K // G  # group_size

    # Dequantize this N tile only on the first M step.  RELIES ON: the grid is
    # iterated lexicographically per core with N ("parallel") outer and M
    # ("arbitrary") inner, so a core never interleaves M steps of different N
    # tiles — the scratch stays valid for every M iteration of the same N tile.
    # Do not reorder the grid or mark the M axis "parallel".
    @pl.when(pl.program_id(1) == 0)
    def _dequantize():
        qw = qw_ref[...]
        for j in range(PACK):  # static 8-way unroll over nibble planes
            # Arithmetic >> of negative int32 is correct here ONLY because of
            # the subsequent & 0xF mask — do not remove the mask.
            w4 = jnp.bitwise_and(jnp.right_shift(qw, W_BIT * j), 0xF)  # (K, nt8)
            sc = sc_ref[:, j * nt8:(j + 1) * nt8].astype(dequant_dtype)  # (G, nt8)
            zs = zs_ref[:, j * nt8:(j + 1) * nt8].astype(dequant_dtype)  # (G, nt8)
            # Vectorized grouped dequant: (G, gs, nt8) broadcast over groups.
            w = w4.reshape(G, gs, nt8).astype(dequant_dtype)
            w = w * sc[:, None, :] - zs[:, None, :]
            w_scratch[:, j * nt8:(j + 1) * nt8] = (
                w.reshape(K, nt8).astype(w_scratch.dtype))

    # Hot path: one full-K bf16 MXU matmul (f32 accumulation) + bias,
    # single lane-dense store.
    acc = jnp.dot(x_ref[...], w_scratch[...], preferred_element_type=jnp.float32)
    acc = acc + b_ref[...].astype(jnp.float32)
    o_ref[...] = acc.astype(o_ref.dtype)


def wqlinear_forward(x, params, *, tm=256, dequant_dtype=None,
                     vmem_cap_bytes=None):
    """x: (..., K); params from prepare_wqlinear_params.  Returns (..., N)."""
    K = params["in_features"]
    N = params["out_features"]
    n_tile = params["n_tile"]
    qw = params["qweight_planes"]
    sc = params["scales"]
    zs = params["zscale"]
    b = params["bias"]
    nb, Kp, nt8 = qw.shape
    G, N_pad = sc.shape
    assert Kp == K and nb * n_tile == N_pad and nt8 * PACK == n_tile

    if dequant_dtype is None:
        dequant_dtype = _default_dequant_dtype()
    if vmem_cap_bytes is None:
        vmem_cap_bytes = _default_vmem_cap()

    orig_shape = x.shape
    out_dtype = x.dtype
    # bf16 MXU operands: cast x on the host (weights are 4-bit -> bf16 loses
    # nothing; avoids a per-M-step (tm, K) VPU cast in the hot loop).
    x2 = x.reshape(-1, K).astype(jnp.bfloat16)
    M = x2.shape[0]
    do = jnp.dtype(out_dtype).itemsize

    # Large M tile (bf16 packs 2 rows/sublane -> minimum 16), auto-shrunk so the
    # working set fits the per-core VMEM cap.
    tm = max(16, min(_round_up(tm, 16), _round_up(M, 16)))

    def vmem_budget(tm_):
        return (2 * tm_ * K * 2          # x blocks (double-buffered, bf16)
                + 2 * K * nt8 * 4        # packed weight planes (double-buffered)
                + K * n_tile * 2         # dequant scratch (bf16)
                + 2 * tm_ * n_tile * do  # output blocks (double-buffered)
                + 4 * G * n_tile * 4     # scales + zero*scale blocks
                + 2 * n_tile * 4)        # bias blocks

    while tm > 16 and vmem_budget(tm) > vmem_cap_bytes:
        tm = max(16, _round_up(tm // 2, 16))

    M_pad = _round_up(M, tm)
    if M_pad != M:
        x2 = jnp.pad(x2, ((0, M_pad - M), (0, 0)))

    # Always set the scoped VMEM limit (defaults are 16/32/32 MiB, far below
    # physical); never below 32 MiB, never above what any generation can hold.
    vmem_limit = int(min(112 << 20, max(32 << 20, vmem_budget(tm) + (2 << 20))))

    grid = (N_pad // n_tile, M_pad // tm)  # N outer, M inner (weight tile reused)

    kernel = functools.partial(_wqlinear_kernel, dequant_dtype=dequant_dtype)
    out = pl.pallas_call(
        kernel,
        out_shape=jax.ShapeDtypeStruct((M_pad, N_pad), out_dtype),
        grid=grid,
        in_specs=[
            pl.BlockSpec((tm, K), lambda n, m: (m, 0)),             # activations
            pl.BlockSpec((None, K, nt8), lambda n, m: (n, 0, 0)),   # packed weights
            pl.BlockSpec((G, n_tile), lambda n, m: (0, n)),         # scales
            pl.BlockSpec((G, n_tile), lambda n, m: (0, n)),         # zero*scale
            pl.BlockSpec((1, n_tile), lambda n, m: (0, n)),         # bias
        ],
        out_specs=pl.BlockSpec((tm, n_tile), lambda n, m: (m, n)),
        scratch_shapes=[pltpu.VMEM((K, n_tile), jnp.bfloat16)],
        compiler_params=pltpu.CompilerParams(
            dimension_semantics=("parallel", "arbitrary"),
            vmem_limit_bytes=vmem_limit),
    )(x2, qw, sc, zs, b)

    out = out[:M, :N]
    return out.reshape(orig_shape[:-1] + (N,))


# ------------------------------ example / test -----------------------------
if __name__ == "__main__":
    key = jax.random.PRNGKey(0)
    k_qw, k_qz, k_sc, k_b, k_x = jax.random.split(key, 5)

    in_features = 256       # K
    out_features = 320      # N (multiple of 8, NOT of 128 -> exercises N padding)
    group_size = 64
    G = in_features // group_size

    # Synthetic AWQ-format inputs of WQLinear.__init__ (any int32 bit pattern
    # is a valid AWQ-packed tensor).
    imin, imax = -2 ** 31, 2 ** 31 - 1
    qweight_awq = jax.random.randint(k_qw, (in_features, out_features // PACK),
                                     imin, imax, dtype=jnp.int32)
    qzeros_awq = jax.random.randint(k_qz, (G, out_features // PACK),
                                    imin, imax, dtype=jnp.int32)
    scales = jax.random.uniform(k_sc, (G, out_features), dtype=jnp.float32,
                                minval=0.01, maxval=1.0)
    bias = jax.random.normal(k_b, (out_features,), dtype=jnp.float32)

    # _preprocessing: unpack + undo AWQ order + mask, fold zero*scale,
    # pad N and repack into tile-local nibble planes.
    params = prepare_wqlinear_params(qweight_awq, qzeros_awq, scales, bias,
                                     group_size=group_size)

    # Input activations: (batch=2, seq=8, hidden=in_features)
    x = jax.random.normal(k_x, (2, 8, in_features), dtype=jnp.float32)

    out = wqlinear_forward(x, params, tm=256)
    out = jax.block_until_ready(out)

    # Reference (plain JAX, mirrors convert_from_uint4 + matmul + bias).
    # TODO(synk): convert_from_uint4 is a Habana custom op; standard AWQ
    # dequant semantics are assumed here.
    iweight, izeros = unpack_weight_and_zeros(qweight_awq, qzeros_awq)
    z_exp = jnp.repeat(izeros, group_size, axis=0)
    s_exp = jnp.repeat(scales, group_size, axis=0)
    w_deq = (iweight - z_exp).astype(jnp.float32) * s_exp          # (K, N)
    ref = (jnp.dot(x.reshape(-1, in_features), w_deq,
                   precision=jax.lax.Precision.HIGHEST) + bias
           ).reshape(x.shape[:-1] + (out_features,))

    assert out.shape == x.shape[:-1] + (out_features,)
    # bf16 MXU operands + bf16/f32 dequant math -> relaxed tolerance vs the
    # exact f32 reference (accumulation is f32 in the kernel).
    err = float(jnp.max(jnp.abs(out.astype(jnp.float32) - ref)))
    scale_ref = float(jnp.max(jnp.abs(ref)))
    assert err <= 3e-2 * max(1.0, scale_ref), f"mismatch: err={err}, ref_max={scale_ref}"
    print("KERNEL_OK")
</pallas_src>

<mosaic_0001>
module attributes {stable_mosaic.version = 11 : i64} {
  func.func @_wqlinear_kernel(%arg0: i32, %arg1: i32, %arg2: memref<16x256xbf16, #tpu.memory_space<vmem>>, %arg3: memref<1x256x48xi32, #tpu.memory_space<vmem>>, %arg4: memref<4x384xf32, #tpu.memory_space<vmem>>, %arg5: memref<4x384xf32, #tpu.memory_space<vmem>>, %arg6: memref<1x384xf32, #tpu.memory_space<vmem>>, %arg7: memref<16x384xf32, #tpu.memory_space<vmem>>, %arg8: memref<256x384xbf16, #tpu.memory_space<vmem>>) attributes {dimension_semantics = [#tpu.dimension_semantics<parallel>, #tpu.dimension_semantics<arbitrary>], iteration_bounds = array<i64: 1, 1>, scalar_prefetch = 0 : i64, scratch_operands = 1 : i64, tpu.core_type = #tpu.core_type<tc>, window_params = [{transform_indices = @transform_0, window_bounds = array<i64: 16, 256>}, {transform_indices = @transform_1, window_bounds = array<i64: 1, 256, 48>}, {transform_indices = @transform_2, window_bounds = array<i64: 4, 384>}, {transform_indices = @transform_3, window_bounds = array<i64: 4, 384>}, {transform_indices = @transform_4, window_bounds = array<i64: 1, 384>}, {transform_indices = @transform_5, window_bounds = array<i64: 16, 384>}]} {
    %c0_i32 = arith.constant 0 : i32
    %0 = arith.cmpi eq, %arg1, %c0_i32 : i32
    %1 = arith.extui %0 : i1 to i32
    %c0_i32_0 = arith.constant 0 : i32
    %2 = arith.cmpi ne, %1, %c0_i32_0 : i32
    scf.if %2 {
      %c0_8 = arith.constant 0 : index
      %c0_9 = arith.constant 0 : index
      %c0_10 = arith.constant 0 : index
      %10 = vector.load %arg3[%c0_8, %c0_9, %c0_10] : memref<1x256x48xi32, #tpu.memory_space<vmem>>, vector<1x256x48xi32>
      %11 = vector.shape_cast %10 : vector<1x256x48xi32> to vector<256x48xi32>
      %c0_i32_11 = arith.constant 0 : i32
      %12 = vector.broadcast %c0_i32_11 : i32 to vector<256x48xi32>
      %13 = arith.shrsi %11, %12 : vector<256x48xi32>
      %c15_i32 = arith.constant 15 : i32
      %14 = vector.broadcast %c15_i32 : i32 to vector<256x48xi32>
      %15 = arith.andi %13, %14 : vector<256x48xi32>
      %c0_12 = arith.constant 0 : index
      %c0_13 = arith.constant 0 : index
      %16 = vector.load %arg4[%c0_12, %c0_13] : memref<4x384xf32, #tpu.memory_space<vmem>>, vector<4x48xf32>
      %c0_14 = arith.constant 0 : index
      %c0_15 = arith.constant 0 : index
      %17 = vector.load %arg5[%c0_14, %c0_15] : memref<4x384xf32, #tpu.memory_space<vmem>>, vector<4x48xf32>
      %18 = vector.shape_cast %15 : vector<256x48xi32> to vector<4x64x48xi32>
      %19 = arith.sitofp %18 : vector<4x64x48xi32> to vector<4x64x48xf32>
      %20 = vector.shape_cast %16 : vector<4x48xf32> to vector<4x1x48xf32>
      %21 = vector.broadcast %20 : vector<4x1x48xf32> to vector<4x64x48xf32>
      %22 = arith.mulf %19, %21 : vector<4x64x48xf32>
      %23 = vector.shape_cast %17 : vector<4x48xf32> to vector<4x1x48xf32>
      %24 = vector.broadcast %23 : vector<4x1x48xf32> to vector<4x64x48xf32>
      %25 = arith.subf %22, %24 : vector<4x64x48xf32>
      %26 = vector.shape_cast %25 : vector<4x64x48xf32> to vector<256x48xf32>
      %27 = arith.truncf %26 : vector<256x48xf32> to vector<256x48xbf16>
      %c0_16 = arith.constant 0 : index
      %c0_17 = arith.constant 0 : index
      %28 = vector.load %arg8[%c0_16, %c0_17] : memref<256x384xbf16, #tpu.memory_space<vmem>>, vector<256x48xbf16>
      tpu.vector_store %arg8[%c0_16, %c0_17], %27 {strides = array<i32>} : memref<256x384xbf16, #tpu.memory_space<vmem>>, vector<256x48xbf16>,
      %c4_i32 = arith.constant 4 : i32
      %29 = vector.broadcast %c4_i32 : i32 to vector<256x48xi32>
      %30 = arith.shrsi %11, %29 : vector<256x48xi32>
      %c15_i32_18 = arith.constant 15 : i32
      %31 = vector.broadcast %c15_i32_18 : i32 to vector<256x48xi32>
      %32 = arith.andi %30, %31 : vector<256x48xi32>
      %c0_19 = arith.constant 0 : index
      %c48 = arith.constant 48 : index
      %33 = vector.load %arg4[%c0_19, %c48] : memref<4x384xf32, #tpu.memory_space<vmem>>, vector<4x48xf32>
      %c0_20 = arith.constant 0 : index
      %c48_21 = arith.constant 48 : index
      %34 = vector.load %arg5[%c0_20, %c48_21] : memref<4x384xf32, #tpu.memory_space<vmem>>, vector<4x48xf32>
      %35 = vector.shape_cast %32 : vector<256x48xi32> to vector<4x64x48xi32>
      %36 = arith.sitofp %35 : vector<4x64x48xi32> to vector<4x64x48xf32>
      %37 = vector.shape_cast %33 : vector<4x48xf32> to vector<4x1x48xf32>
      %38 = vector.broadcast %37 : vector<4x1x48xf32> to vector<4x64x48xf32>
      %39 = arith.mulf %36, %38 : vector<4x64x48xf32>
      %40 = vector.shape_cast %34 : vector<4x48xf32> to vector<4x1x48xf32>
      %41 = vector.broadcast %40 : vector<4x1x48xf32> to vector<4x64x48xf32>
      %42 = arith.subf %39, %41 : vector<4x64x48xf32>
      %43 = vector.shape_cast %42 : vector<4x64x48xf32> to vector<256x48xf32>
      %44 = arith.truncf %43 : vector<256x48xf32> to vector<256x48xbf16>
      %c0_22 = arith.constant 0 : index
      %c48_23 = arith.constant 48 : index
      %45 = vector.load %arg8[%c0_22, %c48_23] : memref<256x384xbf16, #tpu.memory_space<vmem>>, vector<256x48xbf16>
      tpu.vector_store %arg8[%c0_22, %c48_23], %44 {strides = array<i32>} : memref<256x384xbf16, #tpu.memory_space<vmem>>, vector<256x48xbf16>,
      %c8_i32 = arith.constant 8 : i32
      %46 = vector.broadcast %c8_i32 : i32 to vector<256x48xi32>
      %47 = arith.shrsi %11, %46 : vector<256x48xi32>
      %c15_i32_24 = arith.constant 15 : i32
      %48 = vector.broadcast %c15_i32_24 : i32 to vector<256x48xi32>
      %49 = arith.andi %47, %48 : vector<256x48xi32>
      %c0_25 = arith.constant 0 : index
      %c96 = arith.constant 96 : index
      %50 = vector.load %arg4[%c0_25, %c96] : memref<4x384xf32, #tpu.memory_space<vmem>>, vector<4x48xf32>
      %c0_26 = arith.constant 0 : index
      %c96_27 = arith.constant 96 : index
      %51 = vector.load %arg5[%c0_26, %c96_27] : memref<4x384xf32, #tpu.memory_space<vmem>>, vector<4x48xf32>
      %52 = vector.shape_cast %49 : vector<256x48xi32> to vector<4x64x48xi32>
      %53 = arith.sitofp %52 : vector<4x64x48xi32> to vector<4x64x48xf32>
      %54 = vector.shape_cast %50 : vector<4x48xf32> to vector<4x1x48xf32>
      %55 = vector.broadcast %54 : vector<4x1x48xf32> to vector<4x64x48xf32>
      %56 = arith.mulf %53, %55 : vector<4x64x48xf32>
      %57 = vector.shape_cast %51 : vector<4x48xf32> to vector<4x1x48xf32>
      %58 = vector.broadcast %57 : vector<4x1x48xf32> to vector<4x64x48xf32>
      %59 = arith.subf %56, %58 : vector<4x64x48xf32>
      %60 = vector.shape_cast %59 : vector<4x64x48xf32> to vector<256x48xf32>
      %61 = arith.truncf %60 : vector<256x48xf32> to vector<256x48xbf16>
      %c0_28 = arith.constant 0 : index
      %c96_29 = arith.constant 96 : index
      %62 = vector.load %arg8[%c0_28, %c96_29] : memref<256x384xbf16, #tpu.memory_space<vmem>>, vector<256x48xbf16>
      tpu.vector_store %arg8[%c0_28, %c96_29], %61 {strides = array<i32>} : memref<256x384xbf16, #tpu.memory_space<vmem>>, vector<256x48xbf16>,
      %c12_i32 = arith.constant 12 : i32
      %63 = vector.broadcast %c12_i32 : i32 to vector<256x48xi32>
      %64 = arith.shrsi %11, %63 : vector<256x48xi32>
      %c15_i32_30 = arith.constant 15 : i32
      %65 = vector.broadcast %c15_i32_30 : i32 to vector<256x48xi32>
      %66 = arith.andi %64, %65 : vector<256x48xi32>
      %c0_31 = arith.constant 0 : index
      %c144 = arith.constant 144 : index
      %67 = vector.load %arg4[%c0_31, %c144] : memref<4x384xf32, #tpu.memory_space<vmem>>, vector<4x48xf32>
      %c0_32 = arith.constant 0 : index
      %c144_33 = arith.constant 144 : index
      %68 = vector.load %arg5[%c0_32, %c144_33] : memref<4x384xf32, #tpu.memory_space<vmem>>, vector<4x48xf32>
      %69 = vector.shape_cast %66 : vector<256x48xi32> to vector<4x64x48xi32>
      %70 = arith.sitofp %69 : vector<4x64x48xi32> to vector<4x64x48xf32>
      %71 = vector.shape_cast %67 : vector<4x48xf32> to vector<4x1x48xf32>
      %72 = vector.broadcast %71 : vector<4x1x48xf32> to vector<4x64x48xf32>
      %73 = arith.mulf %70, %72 : vector<4x64x48xf32>
      %74 = vector.shape_cast %68 : vector<4x48xf32> to vector<4x1x48xf32>
      %75 = vector.broadcast %74 : vector<4x1x48xf32> to vector<4x64x48xf32>
      %76 = arith.subf %73, %75 : vector<4x64x48xf32>
      %77 = vector.shape_cast %76 : vector<4x64x48xf32> to vector<256x48xf32>
      %78 = arith.truncf %77 : vector<256x48xf32> to vector<256x48xbf16>
      %c0_34 = arith.constant 0 : index
      %c144_35 = arith.constant 144 : index
      %79 = vector.load %arg8[%c0_34, %c144_35] : memref<256x384xbf16, #tpu.memory_space<vmem>>, vector<256x48xbf16>
      tpu.vector_store %arg8[%c0_34, %c144_35], %78 {strides = array<i32>} : memref<256x384xbf16, #tpu.memory_space<vmem>>, vector<256x48xbf16>,
      %c16_i32 = arith.constant 16 : i32
      %80 = vector.broadcast %c16_i32 : i32 to vector<256x48xi32>
      %81 = arith.shrsi %11, %80 : vector<256x48xi32>
      %c15_i32_36 = arith.constant 15 : i32
      %82 = vector.broadcast %c15_i32_36 : i32 to vector<256x48xi32>
      %83 = arith.andi %81, %82 : vector<256x48xi32>
      %c0_37 = arith.constant 0 : index
      %c192 = arith.constant 192 : index
      %84 = vector.load %arg4[%c0_37, %c192] : memref<4x384xf32, #tpu.memory_space<vmem>>, vector<4x48xf32>
      %c0_38 = arith.constant 0 : index
      %c192_39 = arith.constant 192 : index
      %85 = vector.load %arg5[%c0_38, %c192_39] : memref<4x384xf32, #tpu.memory_space<vmem>>, vector<4x48xf32>
      %86 = vector.shape_cast %83 : vector<256x48xi32> to vector<4x64x48xi32>
      %87 = arith.sitofp %86 : vector<4x64x48xi32> to vector<4x64x48xf32>
      %88 = vector.shape_cast %84 : vector<4x48xf32> to vector<4x1x48xf32>
      %89 = vector.broadcast %88 : vector<4x1x48xf32> to vector<4x64x48xf32>
      %90 = arith.mulf %87, %89 : vector<4x64x48xf32>
      %91 = vector.shape_cast %85 : vector<4x48xf32> to vector<4x1x48xf32>
      %92 = vector.broadcast %91 : vector<4x1x48xf32> to vector<4x64x48xf32>
      %93 = arith.subf %90, %92 : vector<4x64x48xf32>
      %94 = vector.shape_cast %93 : vector<4x64x48xf32> to vector<256x48xf32>
      %95 = arith.truncf %94 : vector<256x48xf32> to vector<256x48xbf16>
      %c0_40 = arith.constant 0 : index
      %c192_41 = arith.constant 192 : index
      %96 = vector.load %arg8[%c0_40, %c192_41] : memref<256x384xbf16, #tpu.memory_space<vmem>>, vector<256x48xbf16>
      tpu.vector_store %arg8[%c0_40, %c192_41], %95 {strides = array<i32>} : memref<256x384xbf16, #tpu.memory_space<vmem>>, vector<256x48xbf16>,
      %c20_i32 = arith.constant 20 : i32
      %97 = vector.broadcast %c20_i32 : i32 to vector<256x48xi32>
      %98 = arith.shrsi %11, %97 : vector<256x48xi32>
      %c15_i32_42 = arith.constant 15 : i32
      %99 = vector.broadcast %c15_i32_42 : i32 to vector<256x48xi32>
      %100 = arith.andi %98, %99 : vector<256x48xi32>
      %c0_43 = arith.constant 0 : index
      %c240 = arith.constant 240 : index
      %101 = vector.load %arg4[%c0_43, %c240] : memref<4x384xf32, #tpu.memory_space<vmem>>, vector<4x48xf32>
      %c0_44 = arith.constant 0 : index
      %c240_45 = arith.constant 240 : index
      %102 = vector.load %arg5[%c0_44, %c240_45] : memref<4x384xf32, #tpu.memory_space<vmem>>, vector<4x48xf32>
      %103 = vector.shape_cast %100 : vector<256x48xi32> to vector<4x64x48xi32>
      %104 = arith.sitofp %103 : vector<4x64x48xi32> to vector<4x64x48xf32>
      %105 = vector.shape_cast %101 : vector<4x48xf32> to vector<4x1x48xf32>
      %106 = vector.broadcast %105 : vector<4x1x48xf32> to vector<4x64x48xf32>
      %107 = arith.mulf %104, %106 : vector<4x64x48xf32>
      %108 = vector.shape_cast %102 : vector<4x48xf32> to vector<4x1x48xf32>
      %109 = vector.broadcast %108 : vector<4x1x48xf32> to vector<4x64x48xf32>
      %110 = arith.subf %107, %109 : vector<4x64x48xf32>
      %111 = vector.shape_cast %110 : vector<4x64x48xf32> to vector<256x48xf32>
      %112 = arith.truncf %111 : vector<256x48xf32> to vector<256x48xbf16>
      %c0_46 = arith.constant 0 : index
      %c240_47 = arith.constant 240 : index
      %113 = vector.load %arg8[%c0_46, %c240_47] : memref<256x384xbf16, #tpu.memory_space<vmem>>, vector<256x48xbf16>
      tpu.vector_store %arg8[%c0_46, %c240_47], %112 {strides = array<i32>} : memref<256x384xbf16, #tpu.memory_space<vmem>>, vector<256x48xbf16>,
      %c24_i32 = arith.constant 24 : i32
      %114 = vector.broadcast %c24_i32 : i32 to vector<256x48xi32>
      %115 = arith.shrsi %11, %114 : vector<256x48xi32>
      %c15_i32_48 = arith.constant 15 : i32
      %116 = vector.broadcast %c15_i32_48 : i32 to vector<256x48xi32>
      %117 = arith.andi %115, %116 : vector<256x48xi32>
      %c0_49 = arith.constant 0 : index
      %c288 = arith.constant 288 : index
      %118 = vector.load %arg4[%c0_49, %c288] : memref<4x384xf32, #tpu.memory_space<vmem>>, vector<4x48xf32>
      %c0_50 = arith.constant 0 : index
      %c288_51 = arith.constant 288 : index
      %119 = vector.load %arg5[%c0_50, %c288_51] : memref<4x384xf32, #tpu.memory_space<vmem>>, vector<4x48xf32>
      %120 = vector.shape_cast %117 : vector<256x48xi32> to vector<4x64x48xi32>
      %121 = arith.sitofp %120 : vector<4x64x48xi32> to vector<4x64x48xf32>
      %122 = vector.shape_cast %118 : vector<4x48xf32> to vector<4x1x48xf32>
      %123 = vector.broadcast %122 : vector<4x1x48xf32> to vector<4x64x48xf32>
      %124 = arith.mulf %121, %123 : vector<4x64x48xf32>
      %125 = vector.shape_cast %119 : vector<4x48xf32> to vector<4x1x48xf32>
      %126 = vector.broadcast %125 : vector<4x1x48xf32> to vector<4x64x48xf32>
      %127 = arith.subf %124, %126 : vector<4x64x48xf32>
      %128 = vector.shape_cast %127 : vector<4x64x48xf32> to vector<256x48xf32>
      %129 = arith.truncf %128 : vector<256x48xf32> to vector<256x48xbf16>
      %c0_52 = arith.constant 0 : index
      %c288_53 = arith.constant 288 : index
      %130 = vector.load %arg8[%c0_52, %c288_53] : memref<256x384xbf16, #tpu.memory_space<vmem>>, vector<256x48xbf16>
      tpu.vector_store %arg8[%c0_52, %c288_53], %129 {strides = array<i32>} : memref<256x384xbf16, #tpu.memory_space<vmem>>, vector<256x48xbf16>,
      %c28_i32 = arith.constant 28 : i32
      %131 = vector.broadcast %c28_i32 : i32 to vector<256x48xi32>
      %132 = arith.shrsi %11, %131 : vector<256x48xi32>
      %c15_i32_54 = arith.constant 15 : i32
      %133 = vector.broadcast %c15_i32_54 : i32 to vector<256x48xi32>
      %134 = arith.andi %132, %133 : vector<256x48xi32>
      %c0_55 = arith.constant 0 : index
      %c336 = arith.constant 336 : index
      %135 = vector.load %arg4[%c0_55, %c336] : memref<4x384xf32, #tpu.memory_space<vmem>>, vector<4x48xf32>
      %c0_56 = arith.constant 0 : index
      %c336_57 = arith.constant 336 : index
      %136 = vector.load %arg5[%c0_56, %c336_57] : memref<4x384xf32, #tpu.memory_space<vmem>>, vector<4x48xf32>
      %137 = vector.shape_cast %134 : vector<256x48xi32> to vector<4x64x48xi32>
      %138 = arith.sitofp %137 : vector<4x64x48xi32> to vector<4x64x48xf32>
      %139 = vector.shape_cast %135 : vector<4x48xf32> to vector<4x1x48xf32>
      %140 = vector.broadcast %139 : vector<4x1x48xf32> to vector<4x64x48xf32>
      %141 = arith.mulf %138, %140 : vector<4x64x48xf32>
      %142 = vector.shape_cast %136 : vector<4x48xf32> to vector<4x1x48xf32>
      %143 = vector.broadcast %142 : vector<4x1x48xf32> to vector<4x64x48xf32>
      %144 = arith.subf %141, %143 : vector<4x64x48xf32>
      %145 = vector.shape_cast %144 : vector<4x64x48xf32> to vector<256x48xf32>
      %146 = arith.truncf %145 : vector<256x48xf32> to vector<256x48xbf16>
      %c0_58 = arith.constant 0 : index
      %c336_59 = arith.constant 336 : index
      %147 = vector.load %arg8[%c0_58, %c336_59] : memref<256x384xbf16, #tpu.memory_space<vmem>>, vector<256x48xbf16>
      tpu.vector_store %arg8[%c0_58, %c336_59], %146 {strides = array<i32>} : memref<256x384xbf16, #tpu.memory_space<vmem>>, vector<256x48xbf16>,
    } else {
    }
    %c0 = arith.constant 0 : index
    %c0_1 = arith.constant 0 : index
    %3 = vector.load %arg2[%c0, %c0_1] : memref<16x256xbf16, #tpu.memory_space<vmem>>, vector<16x256xbf16>
    %c0_2 = arith.constant 0 : index
    %c0_3 = arith.constant 0 : index
    %4 = vector.load %arg8[%c0_2, %c0_3] : memref<256x384xbf16, #tpu.memory_space<vmem>>, vector<256x384xbf16>
    %cst = arith.constant dense<0.000000e+00> : vector<16x384xf32>
    %5 = tpu.matmul %3, %4, %cst {dimension_numbers = #tpu.dot_dimension_numbers<[1], [0], [0], [1], [0, 0, 1, 1], [], []>} : vector<16x256xbf16>, vector<256x384xbf16>, vector<16x384xf32> -> vector<16x384xf32>
    %c0_4 = arith.constant 0 : index
    %c0_5 = arith.constant 0 : index
    %6 = vector.load %arg6[%c0_4, %c0_5] : memref<1x384xf32, #tpu.memory_space<vmem>>, vector<1x384xf32>
    %7 = vector.broadcast %6 : vector<1x384xf32> to vector<16x384xf32>
    %8 = arith.addf %5, %7 : vector<16x384xf32>
    %c0_6 = arith.constant 0 : index
    %c0_7 = arith.constant 0 : index
    %9 = vector.load %arg7[%c0_6, %c0_7] : memref<16x384xf32, #tpu.memory_space<vmem>>, vector<16x384xf32>
    tpu.vector_store %arg7[%c0_6, %c0_7], %8 {strides = array<i32>} : memref<16x384xf32, #tpu.memory_space<vmem>>, vector<16x384xf32>,
    return
  }
  func.func @transform_0(%arg0: i32, %arg1: i32) -> (i32, i32) {
    %c0_i32 = arith.constant 0 : i32
    %c0_i32_0 = arith.constant 0 : i32
    return %arg1, %c0_i32 : i32, i32
  }
  func.func @transform_1(%arg0: i32, %arg1: i32) -> (i32, i32, i32) {
    %c0_i32 = arith.constant 0 : i32
    %c0_i32_0 = arith.constant 0 : i32
    %c0_i32_1 = arith.constant 0 : i32
    return %arg0, %c0_i32, %c0_i32_0 : i32, i32, i32
  }
  func.func @transform_2(%arg0: i32, %arg1: i32) -> (i32, i32) {
    %c0_i32 = arith.constant 0 : i32
    %c0_i32_0 = arith.constant 0 : i32
    return %c0_i32, %arg0 : i32, i32
  }
  func.func @transform_3(%arg0: i32, %arg1: i32) -> (i32, i32) {
    %c0_i32 = arith.constant 0 : i32
    %c0_i32_0 = arith.constant 0 : i32
    return %c0_i32, %arg0 : i32, i32
  }
  func.func @transform_4(%arg0: i32, %arg1: i32) -> (i32, i32) {
    %c0_i32 = arith.constant 0 : i32
    %c0_i32_0 = arith.constant 0 : i32
    return %c0_i32, %arg0 : i32, i32
  }
  func.func @transform_5(%arg0: i32, %arg1: i32) -> (i32, i32) {
    %c0_i32 = arith.constant 0 : i32
    return %arg1, %arg0 : i32, i32
  }
}

</mosaic_0001>

<bundles_post_ra>
// kernel: tpu_custom_call.1
= control target key start
LH: loop header
LB: loop body
LE: loop exit
PB: predicated region body
PF: predicated region fallthrough
CT: control target
= control target key end

     0   :  { %v136_v0 = vlaneseq  ;;  %v3335_v1 = vmov 1966171168   ;;  %s6456_s0 = inlined_call_operand.vmem [shape: bf16[16,256], index: 0, kind: input, shape index: {}]   ;;  %s6457_s1 = inlined_call_operand.vmem [shape: s32[1,256,48], index: 1, kind: input, shape index: {}]   ;;  %s6458_s2 = inlined_call_operand.vmem [shape: f32[4,384], index: 2, kind: input, shape index: {}]   ;;  %s6459_s3 = inlined_call_operand.vmem [shape: f32[4,384], index: 3, kind: input, shape index: {}]   ;;  %s6460_s4 = inlined_call_operand.vmem [shape: f32[1,384], index: 4, kind: input, shape index: {}]   ;;  %s6461_s5 = inlined_call_operand.hbm [shape: f32[16,384], index: 5, kind: output, shape index: {}]  }
   0x1   :  { %v134_v2 = vunpack.c.l.s4 %v3335_v1  ;;  %v3200_v4 = vld.sshfl [vmem:[%s6459_s3] sm:$0xff pattern:$0x75316420]  ;;  %v3438_v30 = vld [vmem:[%s6457_s1 + $0x8] sm:$0xff] }
   0x2   :  { %v3376_v3 = vshrl.u32 %v136_v0, 7  ;;  %v3203_v5 = vld.sshfl [vmem:[%s6458_s2 + $0x4] sm:$0x33 pattern:$0x75316420]  ;;  %v896_v13 = vcombine.high %v3200_v4, %v3200_v4 }
   0x3   :  { %v135_v6 = vunpack.c.0.s8 %v134_v2  ;;  %v3199_v7 = vld.sshfl [vmem:[%s6458_s2] sm:$0xff pattern:$0x75316420]  ;;  %v1586_v22 = vcombine.high %v3203_v5, %v3203_v5 }
   0x4   :  { %6597 = vst [vmem:[#allocation6_spill] sm:$0xff] %v3376_v3  ;;  %v3205_v8 = vld.sshfl [vmem:[%s6458_s2 + $0x4] sm:$0xff pattern:$0x75316420]  ;;  %v3397_v11 = vsub.s32 0, %v3376_v3  ;;  %v782_v14 = vcombine.high %v3199_v7, %v3199_v7  ;;  %v3410_v18 = vsub.s32 1, %v3376_v3 }
   0x5   :  { %v3202_v9 = vld.sshfl [vmem:[%s6459_s3 + $0x4] sm:$0x33 pattern:$0x75316420]  ;;  %v3394_v10 = vsub.s32 %v135_v6, %v3376_v3  ;;  %v1951_v23 = vcombine.high %v3205_v8, %v3205_v8 }
   0x6   :  { %6599 = vst [vmem:[#allocation8_spill] sm:$0xff] %v3397_v11  ;;  %v3197_v12 = vld.sshfl [vmem:[%s6458_s2] sm:$0x33 pattern:$0x75316420]  ;;  %6600 = vst [vmem:[#allocation9_spill] sm:$0xff] %v3410_v18  ;;  %v1306_v24 = vcombine.high %v3202_v9, %v3202_v9 }
   0x7   :  { %6598 = vst [vmem:[#allocation7_spill] sm:$0xff] %v3394_v10  ;;  %v3206_v15 = vld.sshfl [vmem:[%s6459_s3 + $0x4] sm:$0xff pattern:$0x75316420]  ;;  %v3406_v16 = vrot.slane %v3200_v4, %v3394_v10  ;;  %v789_v17 = vrot.slane %v3199_v7, %v3394_v10  ;;  %v3413_v19 = vrot.slane %v3203_v5, %v3394_v10  ;;  %v3419_v21 = vrot.slane %v3205_v8, %v3394_v10 }
   0x8   :  { %v3198_v20 = vld.sshfl [vmem:[%s6459_s3] sm:$0x33 pattern:$0x75316420]  ;;  %v3425_v27 = vrot.slane %v3202_v9, %v3394_v10  ;;  %v3428_v28 = vrot.slane %v3197_v12, %v3394_v10  ;;  %v3441_v31 = vrot.slane %v3206_v15, %v3394_v10  ;;  %v417_v33 = vcombine.high %v3197_v12, %v3197_v12 }
   0x9   :  { %v916_v25 = vrot.slane %v3406_v16, %v3397_v11  ;;  %v802_v26 = vrot.slane %v789_v17, %v3397_v11  ;;  %v3433_v29 = vld [vmem:[%s6457_s1] sm:$0xff]  ;;  %v3444_v32 = vrot.slane %v3198_v20, %v3394_v10 }
   0xa   :  { %v1115_v34 = vshra.s32 %v3433_v29, 12 }
   0xb   :  { %10 = vsyncpa [#allocation4], 0  ;;  %s3336_s13 = smov 32   ;;  %v920_v35 = vrot.slane %v3406_v16, %v3410_v18  ;;  %v806_v36 = vrot.slane %v789_v17, %v3410_v18  ;;  %v1606_v37 = vrot.slane %v3413_v19, %v3397_v11  ;;  %v1116_v38 = vshra.s32 %v3438_v30, 12  ;;  %s3337_s16 = smov 64  }
   0xc   :  { %945 = vrot.lane.b32.xlu1 %v916_v25, %s3336_s13  ;;  %831 = vrot.lane.b32.xlu0 %v802_v26, %s3336_s13  ;;  %v1975_v39 = vrot.slane %v3419_v21, %v3410_v18  ;;  %v1971_v40 = vrot.slane %v3419_v21, %v3397_v11  ;;  %v3460_v41 = vrot.slane %v782_v14, %v3394_v10  ;;  %v3496_v54 = vld.sshfl [vmem:[%s6458_s2 + $0x8] sm:$0x33 pattern:$0x75316420]  ;;  %v676_v55 = vshra.s32 %v3433_v29, 8  ;;  %s3338_s17 = smov 112  }
   0xd   :  { %v3463_v42 = vrot.slane %v896_v13, %v3394_v10  ;;  %v3467_v43 = vrot.slane %v3425_v27, %v3397_v11  ;;  %v437_v44 = vrot.slane %v3428_v28, %v3397_v11  ;;  %v3472_v45 = vrot.slane %v1586_v22, %v3394_v10  ;;  %v3208_v8 = vld.sshfl [vmem:[%s6459_s3 + $0x8] sm:$0x33 pattern:$0x75316420]  ;;  %s3339_s20 = smov 16   ;;  %s3340_s21 = smov 80  }
   0xe   :  { %v2064_v46 = vcombine.high %v3206_v15, %v3206_v15  ;;  %v2084_v47 = vrot.slane %v3441_v31, %v3397_v11  ;;  %v522_v48 = vrot.slane %v3444_v32, %v3397_v11  ;;  %v2088_v49 = vrot.slane %v3441_v31, %v3410_v18  ;;  %s3341_s26 = smov 96   ;;  %s3342_s6 = smov 48  }
   0xf   :  { %v3481_v50 = vrot.slane %v1951_v23, %v3394_v10  ;;  %v814_v51 = vrot.slane %v3460_v41, %v3410_v18  ;;  %v3488_v52 = vrot.slane %v1306_v24, %v3394_v10  ;;  %v3491_v53 = vrot.slane %v417_v33, %v3394_v10 }
  0x10   :  { %947 = vrot.lane.b32.xlu1 %v920_v35, %s3336_s13  ;;  %833 = vrot.lane.b32.xlu0 %v806_v36, %s3336_s13  ;;  %v810_v56 = vrot.slane %v3460_v41, %v3397_v11  ;;  %v928_v57 = vrot.slane %v3463_v42, %v3410_v18  ;;  %v3504_v58 = vrot.slane %v2064_v46, %v3394_v10  ;;  %v3542_v9 = vand.u32 15, %v1115_v34 }
  0x11   :  { %v502_v59 = vcombine.high %v3198_v20, %v3198_v20  ;;  %v924_v60 = vrot.slane %v3463_v42, %v3397_v11  ;;  %v3510_v61 = vrot.slane %v3472_v45, %v3397_v11  ;;  %v3514_v62 = vcombine.high %v3419_v21, %v3419_v21 }
  0x12   :  { %v3516_v63 = vcombine.high %v789_v17, %v789_v17  ;;  %v2395_v4 = vrot.slane %v3496_v54, %v3394_v10  ;;  %v3531_v5 = vrot.slane %v3488_v52, %v3397_v11  ;;  %v3537_v7 = vcombine.high %v3441_v31, %v3441_v31 }
  0x13   :  { %v3523_v2 = vrot.slane %v502_v59, %v3394_v10  ;;  %v3552_v15 = vcombine.high %v3406_v16, %v3406_v16  ;;  %v1236_v23 = vcombine.high %v3413_v19, %v3413_v19  ;;  %v2480_v24 = vrot.slane %v3208_v8, %v3394_v10 }
  0x14   :  { %1619 = vrot.lane.b32.xlu1 %v1606_v37, %s3337_s16  ;;  %1254 = vrot.lane.b32.xlu0 %v1606_v37, %s3338_s17  ;;  %v2403_v22 = vcombine.high %v2395_v4, %v2395_v4  ;;  %v432_v25 = vcombine.high %v3428_v28, %v3428_v28  ;;  %v3573_v19 = vand.u32 15, %v1116_v38  ;;  %v1321_v37 = vcombine.high %v3425_v27, %v3425_v27 }
  0x15   :  { %v2488_v36 = vcombine.high %v2480_v24, %v2480_v24  ;;  %v517_v38 = vcombine.high %v3444_v32, %v3444_v32  ;;  %v3591_v46 = vcombine.high %v3481_v50, %v3481_v50  ;;  %v3594_v59 = vrot.slane %v1236_v23, %v3397_v11  ;;  %v3700_v32 = vld [vmem:[%s6457_s1 + $0x18] sm:$0xff] }
  0x16   :  { %v3597_v35 = vrot.slane %v432_v25, %v3397_v11  ;;  %v2388_v27 = vcombine.high %v3496_v54, %v3496_v54  ;;  %v3616_v23 = vcombine.high %v3504_v58, %v3504_v58  ;;  %v3623_v34 = vrot.slane %v1321_v37, %v3397_v11 }
  0x17   :  { %v3620_v25 = vrot.slane %v2488_v36, %v3397_v11  ;;  %v3626_v28 = vrot.slane %v517_v38, %v3397_v11  ;;  %v1237_v36 = vcombine.high %v3472_v45, %v3472_v45  ;;  %v2473_v37 = vcombine.high %v3208_v8, %v3208_v8 }
  0x18   :  { %2002 = vrot.lane.b32.xlu1 %v1975_v39, %s3339_s20  ;;  %2000 = vrot.lane.b32.xlu0 %v1971_v40, %s3339_s20  ;;  %v3582_v39 = vrot.slane %v2403_v22, %v3397_v11  ;;  %v3585_v40 = vrot.slane %v2395_v4, %v3397_v11  ;;  %v3608_v4 = vrot.slane %v2480_v24, %v3397_v11  ;;  %v677_v33 = vshra.s32 %v3438_v30, 8 }
  0x19   :  { %v3612_v22 = vcombine.high %v3460_v41, %v3460_v41  ;;  %v2402_v54 = vrot.slane %v2388_v27, %v3394_v10  ;;  %v433_v38 = vcombine.high %v3491_v53, %v3491_v53  ;;  %v3665_v16 = vrot.slane %v1237_v36, %v3397_v11 }
  0x1a   :  { %v1481_v21 = vshra.s32 %v3438_v30, 16  ;;  %v3692_v36 = vand.u32 15, %v676_v55  ;;  %v311_v45 = vshra.s32 %v3433_v29, 4  ;;  %v312_v27 = vshra.s32 %v3438_v30, 4 }
  0x1b   :  { %v2404_v24 = vcombine.high %v2402_v54, %v2402_v54  ;;  %v3668_v8 = vrot.slane %v2402_v54, %v3397_v11  ;;  %v3671_v26 = vrot.slane %v433_v38, %v3397_v11  ;;  %v518_v54 = vcombine.high %v3523_v2, %v3523_v2 }
  0x1c   :  { %1339 = vrot.lane.b32.xlu1 %v3467_v43, %s3338_s17  ;;  %450 = vrot.lane.b32.xlu0 %v437_v44, %s3340_s21  ;;  %v3630_v44 = vcombine.high %v3463_v42, %v3463_v42  ;;  %v3694_v38 = vand.u32 15, %v677_v33  ;;  %v1845_v33 = vshra.s32 %v3433_v29, 20  ;;  %v1846_v20 = vshra.s32 %v3438_v30, 20 }
  0x1d   :  { %6601 = vst [vmem:[#allocation10_spill] sm:$0xff] %v3671_v26  ;;  %v3717_v17 = vand.u32 15, %v1481_v21  ;;  %v1118_v1 = vshra.s32 %v3700_v32, 12  ;;  %v33_v26 = vld [vmem:[%s6457_s1 + $0x38] sm:$0xff]  ;;  %vm847_vm0 = vcmask 261120   ;;  %vm1083_vm1 = vcmask 130048  }
  0x1e   :  { %v3740_v6 = vand.u32 15, %v1845_v33  ;;  %v3744_v41 = vand.u32 15, %v1846_v20  ;;  %v1483_v33 = vshra.s32 %v3700_v32, 16  ;;  %vm294_vm2 = vcmask 392192  }
  0x1f   :  { %6605 = vst [vmem:[#allocation14_spill] sm:$0xff] %v3717_v17  ;;  %v6629_v17 = vrot.slane %v3504_v58, %v3397_v11  ;;  %vm1463_vm3 = vcmask 523392   ;;  %vm1828_vm4 = vcmask 916992   ;;  %vm659_vm5 = vcmask 785792  }
  0x20   :  { %2113 = vrot.lane.b32.xlu1 %v2084_v47, %s3339_s20  ;;  %1704 = vrot.lane.b32.xlu0 %v3467_v43, %s3337_s16  ;;  %v2487_v47 = vrot.slane %v2473_v37, %v3394_v10  ;;  %v1322_v43 = vcombine.high %v3488_v52, %v3488_v52  ;;  %v1480_v37 = vshra.s32 %v3433_v29, 16  ;;  %v3678_v52 = vld [vmem:[%s6457_s1 + $0x10] sm:$0xff]  ;;  %6610 = vst [vmem:[#allocation19_spill] sm:$0xff] %v3740_v6  ;;  %6611 = vst [vmem:[#allocation20_spill] sm:$0xff] %v3744_v41  ;;  %vm1081_vm6 = vcmask 1048320  }
  0x21   :  { %v678_v14 = vshra.s32 %v3678_v52, 8  ;;  %v1482_v21 = vshra.s32 %v3678_v52, 16  ;;  %v313_v20 = vshra.s32 %v3678_v52, 4  ;;  %vm2249_vm7 = vcmask 1048448  }
  0x22   :  { %v2489_v31 = vcombine.high %v2487_v47, %v2487_v47  ;;  %v3710_v55 = vrot.slane %v2487_v47, %v3397_v11  ;;  %v3715_v13 = vand.u32 15, %v1480_v37  ;;  %v3731_v47 = vrot.slane %v518_v54, %v3397_v11 }
  0x23   :  { %v3735_v37 = vand.u32 15, %v312_v27  ;;  %v1848_v27 = vshra.s32 %v3700_v32, 20  ;;  %vm2630_vm8 = vcmask 654592   ;;  %vm2995_vm9 = vcmask 1048192  }
  0x24   :  { %535 = vrot.lane.b32.xlu1 %v522_v48, %s3340_s21  ;;  %2115 = vrot.lane.b32.xlu0 %v2088_v49, %s3339_s20  ;;  %v3703_v48 = vrot.slane %v2404_v24, %v3397_v11  ;;  %v3706_v49 = vrot.slane %v1322_v43, %v3397_v11  ;;  %6603 = vst [vmem:[#allocation12_spill] sm:$0xff] %v3710_v55  ;;  %6604 = vst [vmem:[#allocation13_spill] sm:$0xff] %v3715_v13  ;;  %v3719_v24 = vand.u32 15, %v311_v45  ;;  %v3770_v45 = vld [vmem:[%s6457_s1 + $0x20] sm:$0xff] }
  0x25   :  { %v679_v43 = vshra.s32 %v3700_v32, 8  ;;  %6607 = vst [vmem:[#allocation16_spill] sm:$0xff] %v3731_v47  ;;  %6608 = vst [vmem:[#allocation17_spill] sm:$0xff] %v3735_v37  ;;  %v3738_v12 = vrot.slane %v2489_v31, %v3397_v11  ;;  %v1847_v31 = vshra.s32 %v3678_v52, 20  ;;  %v3786_v47 = vand.u32 15, %v1482_v21 }
  0x26   :  { %6602 = vst [vmem:[#allocation11_spill] sm:$0xff] %v3706_v49  ;;  %6606 = vst [vmem:[#allocation15_spill] sm:$0xff] %v3719_v24  ;;  %v3788_v55 = vand.u32 15, %v1483_v33  ;;  %v3790_v49 = vand.u32 15, %v313_v20  ;;  %v680_v42 = vshra.s32 %v3770_v45, 8  ;;  %v3802_v21 = vand.u32 15, %v1848_v27 }
  0x27   :  { %6609 = vst [vmem:[#allocation18_spill] sm:$0xff] %v3738_v12  ;;  %v3748_v54 = vand.u32 15, %v679_v43  ;;  %v314_v43 = vshra.s32 %v3700_v32, 4  ;;  %6614 = vst [vmem:[#allocation23_spill] sm:$0xff] %v3786_v47  ;;  %v3800_v0 = vand.u32 15, %v1847_v31  ;;  %v1119_v33 = vshra.s32 %v3770_v45, 12 }
  0x28   :  { %837 = vrot.lane.b32.xlu1 %v814_v51, %s3336_s13  ;;  %835 = vrot.lane.b32.xlu0 %v810_v56, %s3336_s13  ;;  %v1117_v51 = vshra.s32 %v3678_v52, 12  ;;  %v3746_v56 = vand.u32 15, %v678_v14  ;;  %v3780_v14 = vand.u32 15, %v1118_v1  ;;  %6615 = vst [vmem:[#allocation24_spill] sm:$0xff] %v3788_v55  ;;  %6616 = vst [vmem:[#allocation25_spill] sm:$0xff] %v3790_v49  ;;  %v3807_v3 = vand.u32 15, %v680_v42 }
  0x29   :  { %v3798_v1 = vand.u32 15, %v314_v43  ;;  %6618 = vst [vmem:[#allocation27_spill] sm:$0xff] %v3800_v0  ;;  %6619 = vst [vmem:[#allocation28_spill] sm:$0xff] %v3802_v21  ;;  %v315_v31 = vshra.s32 %v3770_v45, 4  ;;  %v32_v42 = vld [vmem:[%s6457_s1 + $0x30] sm:$0xff]  ;;  %v6620_v24 = vrot.slane %v3481_v50, %v3410_v18  ;;  %v6621_v20 = vrot.slane %v3481_v50, %v3397_v11 }
  0x2a   :  { %6613 = vst [vmem:[#allocation22_spill] sm:$0xff] %v3780_v14  ;;  %v3833_v49 = vand.u32 15, %v1119_v33  ;;  %v1849_v47 = vshra.s32 %v3770_v45, 20  ;;  %v682_v33 = vshra.s32 %v32_v42, 8  ;;  %v683_v55 = vshra.s32 %v33_v26, 8 }
  0x2b   :  { %6617 = vst [vmem:[#allocation26_spill] sm:$0xff] %v3798_v1  ;;  %v1486_v0 = vshra.s32 %v32_v42, 16  ;;  %v1487_v14 = vshra.s32 %v33_v26, 16  ;;  %v318_v13 = vshra.s32 %v33_v26, 4  ;;  %v1851_v12 = vshra.s32 %v32_v42, 20 }
  0x2c   :  { %951 = vrot.lane.b32.xlu1 %v928_v57, %s3336_s13  ;;  %949 = vrot.lane.b32.xlu0 %v924_v60, %s3336_s13  ;;  %v3775_v57 = vld [vmem:[%s6457_s1 + $0x28] sm:$0xff]  ;;  %v3778_v60 = vand.u32 15, %v1117_v51  ;;  %6622 = vst [vmem:[#allocation29_spill] sm:$0xff] %v3833_v49  ;;  %v3852_v21 = vand.u32 15, %v1849_v47  ;;  %v3864_v47 = vand.u32 15, %v682_v33  ;;  %v317_v49 = vshra.s32 %v32_v42, 4 }
  0x2d   :  { %v681_v51 = vshra.s32 %v3775_v57, 8  ;;  %v1120_v37 = vshra.s32 %v3775_v57, 12  ;;  %v1485_v43 = vshra.s32 %v3775_v57, 16  ;;  %v316_v10 = vshra.s32 %v3775_v57, 4  ;;  %v35_v33 = vld [vmem:[%s6457_s1 + $0x48] sm:$0xff] }
  0x2e   :  { %6612 = vst [vmem:[#allocation21_spill] sm:$0xff] %v3778_v60  ;;  %v1850_v50 = vshra.s32 %v3775_v57, 20  ;;  %6627 = vst [vmem:[#allocation34_spill] sm:$0xff] %v3852_v21 }
  0x2f   :  { %v3816_v6 = vand.u32 15, %v681_v51  ;;  %v3845_v41 = vand.u32 15, %v1485_v43  ;;  %v3847_v51 = vand.u32 15, %v315_v31  ;;  %v3850_v1 = vand.u32 15, %v316_v10 }
  0x30   :  { %1621 = vrot.lane.b32.xlu1 %v3510_v61, %s3337_s16  ;;  %1256 = vrot.lane.b32.xlu0 %v3510_v61, %s3338_s17  ;;  %v1484_v61 = vshra.s32 %v3770_v45, 16  ;;  %v1121_v43 = vshra.s32 %v32_v42, 12  ;;  %v1122_v31 = vshra.s32 %v33_v26, 12  ;;  %v3862_v10 = vand.u32 15, %v1850_v50  ;;  %v34_v50 = vld [vmem:[%s6457_s1 + $0x40] sm:$0xff] }
  0x31   :  { %6624 = vst [vmem:[#allocation31_spill] sm:$0xff] %v3845_v41  ;;  %6625 = vst [vmem:[#allocation32_spill] sm:$0xff] %v3847_v51  ;;  %v1852_v51 = vshra.s32 %v33_v26, 20  ;;  %v685_v41 = vshra.s32 %v35_v33, 8  ;;  %v6637_v42 = vrot.slane %v3523_v2, %v3397_v11  ;;  %v6638_v26 = vrot.slane %v3504_v58, %v3410_v18 }
  0x32   :  { %6626 = vst [vmem:[#allocation33_spill] sm:$0xff] %v3850_v1  ;;  %v3893_v1 = vand.u32 15, %v1487_v14  ;;  %v1488_v27 = vshra.s32 %v34_v50, 16  ;;  %v1489_v2 = vshra.s32 %v35_v33, 16 }
  0x33   :  { %v3913_v60 = vand.u32 15, %v1852_v51  ;;  %v3921_v58 = vand.u32 15, %v685_v41  ;;  %v37_v51 = vld [vmem:[%s6457_s1 + $0x58] sm:$0xff]  ;;  %v6642_v41 = vrot.slane %v3514_v62, %v3410_v18 }
  0x34   :  { %2006 = vrot.lane.b32.xlu1 %v6620_v24, %s3339_s20  ;;  %2004 = vrot.lane.b32.xlu0 %v6621_v20, %s3339_s20  ;;  %v3839_v24 = vand.u32 15, %v1120_v37  ;;  %v3843_v20 = vand.u32 15, %v1484_v61  ;;  %v6628_v37 = vrot.slane %v3491_v53, %v3397_v11  ;;  %v3869_v53 = vand.u32 15, %v683_v55  ;;  %6633 = vst [vmem:[#allocation38_spill] sm:$0xff] %v3893_v1 }
  0x35   :  { %v3885_v55 = vand.u32 15, %v1121_v43  ;;  %v3889_v61 = vand.u32 15, %v1486_v0  ;;  %v3898_v43 = vand.u32 15, %v318_v13  ;;  %v1124_v0 = vshra.s32 %v35_v33, 12  ;;  %6639 = vst [vmem:[#allocation42_spill] sm:$0xff] %v3921_v58 }
  0x36   :  { %6623 = vst [vmem:[#allocation30_spill] sm:$0xff] %v3843_v20  ;;  %v1123_v20 = vshra.s32 %v34_v50, 12  ;;  %v320_v1 = vshra.s32 %v35_v33, 4  ;;  %v3945_v13 = vand.u32 15, %v1489_v2  ;;  %v6650_v2 = vrot.slane %v3516_v63, %v3397_v11 }
  0x37   :  { %6630 = vst [vmem:[#allocation35_spill] sm:$0xff] %v3885_v55  ;;  %6632 = vst [vmem:[#allocation37_spill] sm:$0xff] %v3889_v61  ;;  %v3925_v14 = vand.u32 15, %v1124_v0  ;;  %v1853_v61 = vshra.s32 %v34_v50, 20  ;;  %v1126_v0 = vshra.s32 %v37_v51, 12  ;;  %v322_v58 = vshra.s32 %v37_v51, 4 }
  0x38   :  { %1341 = vrot.lane.b32.xlu1 %v3531_v5, %s3338_s17  ;;  %452 = vrot.lane.b32.xlu0 %v6628_v37, %s3340_s21  ;;  %v3887_v37 = vand.u32 15, %v1122_v31  ;;  %6635 = vst [vmem:[#allocation40_spill] sm:$0xff] %v3898_v43  ;;  %v3900_v31 = vand.u32 15, %v1851_v12  ;;  %v3943_v43 = vand.u32 15, %v1488_v27  ;;  %6645 = vst [vmem:[#allocation46_spill] sm:$0xff] %v3945_v13  ;;  %v6649_v27 = vrot.slane %v3516_v63, %v3410_v18 }
  0x39   :  { %6641 = vst [vmem:[#allocation44_spill] sm:$0xff] %v3925_v14  ;;  %v1491_v14 = vshra.s32 %v37_v51, 16  ;;  %v4003_v13 = vand.u32 15, %v322_v58 }
  0x3a   :  { %6631 = vst [vmem:[#allocation36_spill] sm:$0xff] %v3887_v37  ;;  %6636 = vst [vmem:[#allocation41_spill] sm:$0xff] %v3900_v31  ;;  %v1854_v37 = vshra.s32 %v35_v33, 20  ;;  %v687_v31 = vshra.s32 %v37_v51, 8 }
  0x3b   :  { %6644 = vst [vmem:[#allocation45_spill] sm:$0xff] %v3943_v43  ;;  %6659 = vst [vmem:[#allocation56_spill] sm:$0xff] %v4003_v13 }
  0x3c   :  { %2117 = vrot.lane.b32.xlu1 %v6629_v17, %s3339_s20  ;;  %1706 = vrot.lane.b32.xlu0 %v3531_v5, %s3337_s16  ;;  %v684_v17 = vshra.s32 %v34_v50, 8  ;;  %v3896_v5 = vand.u32 15, %v317_v49  ;;  %v319_v49 = vshra.s32 %v34_v50, 4  ;;  %v3954_v50 = vand.u32 15, %v1853_v61 }
  0x3e   :  { %6634 = vst [vmem:[#allocation39_spill] sm:$0xff] %v3896_v5  ;;  %v3916_v21 = vand.u32 15, %v684_v17  ;;  %6648 = vst [vmem:[#allocation49_spill] sm:$0xff] %v3954_v50  ;;  %v1856_v5 = vshra.s32 %v37_v51, 20 }
  0x40   :  { %537 = vrot.lane.b32.xlu1 %v6637_v42, %s3340_s21  ;;  %2119 = vrot.lane.b32.xlu0 %v6638_v26, %s3339_s20  ;;  %v36_v42 = vld [vmem:[%s6457_s1 + $0x50] sm:$0xff]  ;;  %v3923_v26 = vand.u32 15, %v1123_v20  ;;  %v6643_v20 = vrot.slane %v3514_v62, %v3397_v11  ;;  %v3950_v62 = vand.u32 15, %v319_v49 }
  0x41   :  { %v686_v17 = vshra.s32 %v36_v42, 8  ;;  %v1125_v33 = vshra.s32 %v36_v42, 12  ;;  %v1490_v61 = vshra.s32 %v36_v42, 16  ;;  %v1855_v63 = vshra.s32 %v36_v42, 20 }
  0x42   :  { %6640 = vst [vmem:[#allocation43_spill] sm:$0xff] %v3923_v26  ;;  %6646 = vst [vmem:[#allocation47_spill] sm:$0xff] %v3950_v62  ;;  %v321_v26 = vshra.s32 %v36_v42, 4  ;;  %v6655_v42 = vrot.slane %v3537_v7, %v3397_v11  ;;  %v4008_v62 = vand.u32 15, %v1856_v5 }
  0x43   :  { %v3966_v49 = vand.u32 15, %v686_v17  ;;  %v3972_v12 = vand.u32 15, %v1125_v33  ;;  %v3983_v33 = vand.u32 15, %v1126_v0  ;;  %v3999_v0 = vand.u32 15, %v1491_v14 }
  0x44   :  { %2010 = vrot.lane.b32.xlu1 %v6642_v41, %s3339_s20  ;;  %2008 = vrot.lane.b32.xlu0 %v6643_v20, %s3339_s20  ;;  %v3952_v20 = vand.u32 15, %v320_v1  ;;  %v3964_v41 = vand.u32 15, %v1854_v37  ;;  %v3968_v1 = vand.u32 15, %v687_v31  ;;  %v38_v37 = vld [vmem:[%s6457_s1 + $0x60] sm:$0xff]  ;;  %v39_v31 = vld [vmem:[%s6457_s1 + $0x68] sm:$0xff]  ;;  %6661 = vst [vmem:[#allocation58_spill] sm:$0xff] %v4008_v62  ;;  %v6662_v14 = vrot.slane %v3552_v15, %v3397_v11 }
  0x45   :  { %6652 = vst [vmem:[#allocation51_spill] sm:$0xff] %v3972_v12  ;;  %6653 = vst [vmem:[#allocation52_spill] sm:$0xff] %v3983_v33  ;;  %v689_v50 = vshra.s32 %v39_v31, 8  ;;  %v323_v51 = vshra.s32 %v38_v37, 4  ;;  %v1858_v43 = vshra.s32 %v39_v31, 20  ;;  %v6665_v12 = vrot.slane %v3552_v15, %v3410_v18 }
  0x46   :  { %6647 = vst [vmem:[#allocation48_spill] sm:$0xff] %v3952_v20  ;;  %6651 = vst [vmem:[#allocation50_spill] sm:$0xff] %v3964_v41  ;;  %v688_v20 = vshra.s32 %v38_v37, 8  ;;  %v324_v41 = vshra.s32 %v39_v31, 4 }
  0x47   :  { %6657 = vst [vmem:[#allocation54_spill] sm:$0xff] %v3999_v0  ;;  %v4020_v55 = vand.u32 15, %v689_v50  ;;  %v41_v50 = vld [vmem:[%s6457_s1 + $0x78] sm:$0xff]  ;;  %v1857_v0 = vshra.s32 %v38_v37, 20  ;;  %v4047_v58 = vand.u32 15, %v323_v51 }
  0x48   :  { %841 = vrot.lane.b32.xlu1 %v6649_v27, %s3336_s13  ;;  %839 = vrot.lane.b32.xlu0 %v6650_v2, %s3336_s13  ;;  %v6654_v27 = vrot.slane %v3537_v7, %v3410_v18  ;;  %v3996_v2 = vand.u32 15, %v1490_v61  ;;  %v4005_v7 = vand.u32 15, %v1855_v63  ;;  %v4010_v17 = vand.u32 15, %v688_v20 }
  0x49   :  { %v1128_v61 = vshra.s32 %v39_v31, 12  ;;  %v1493_v63 = vshra.s32 %v39_v31, 16  ;;  %6668 = vst [vmem:[#allocation63_spill] sm:$0xff] %v4047_v58  ;;  %v4051_v31 = vand.u32 15, %v324_v41  ;;  %v691_v5 = vshra.s32 %v41_v50, 8  ;;  %v4080_v41 = vld [vmem:[%s6457_s1 + $0x88] sm:$0xff] }
  0x4a   :  { %6656 = vst [vmem:[#allocation53_spill] sm:$0xff] %v3996_v2  ;;  %6660 = vst [vmem:[#allocation57_spill] sm:$0xff] %v4005_v7  ;;  %v1130_v7 = vshra.s32 %v41_v50, 12  ;;  %v1495_v51 = vshra.s32 %v41_v50, 16 }
  0x4b   :  { %v4030_v2 = vand.u32 15, %v1128_v61  ;;  %v4045_v33 = vand.u32 15, %v1493_v63  ;;  %6669 = vst [vmem:[#allocation64_spill] sm:$0xff] %v4051_v31 }
  0x4c   :  { %2123 = vrot.lane.b32.xlu1 %v6654_v27, %s3339_s20  ;;  %2121 = vrot.lane.b32.xlu0 %v6655_v42, %s3339_s20  ;;  %v4001_v27 = vand.u32 15, %v321_v26  ;;  %v1127_v42 = vshra.s32 %v38_v37, 12  ;;  %v1492_v26 = vshra.s32 %v38_v37, 16  ;;  %v4086_v37 = vand.u32 15, %v1495_v51 }
  0x4d   :  { %6664 = vst [vmem:[#allocation60_spill] sm:$0xff] %v4030_v2  ;;  %6667 = vst [vmem:[#allocation62_spill] sm:$0xff] %v4045_v33  ;;  %v326_v2 = vshra.s32 %v41_v50, 4  ;;  %v1860_v33 = vshra.s32 %v41_v50, 20  ;;  %v1862_v51 = vshra.s32 %v4080_v41, 20  ;;  %v693_v50 = vshra.s32 %v4080_v41, 8 }
  0x4e   :  { %6658 = vst [vmem:[#allocation55_spill] sm:$0xff] %v4001_v27  ;;  %v4022_v20 = vand.u32 15, %v1127_v42  ;;  %v4043_v61 = vand.u32 15, %v1492_v26  ;;  %v4056_v26 = vand.u32 15, %v1858_v43  ;;  %v4082_v27 = vand.u32 15, %v1130_v7  ;;  %6674 = vst [vmem:[#allocation69_spill] sm:$0xff] %v4086_v37 }
  0x4f   :  { %v4101_v31 = vand.u32 15, %v326_v2  ;;  %v2299_v2 = vshra.s32 %v4080_v41, 24  ;;  %v4124_v7 = vand.u32 15, %v693_v50  ;;  %v1132_v37 = vshra.s32 %v4080_v41, 12 }
  0x50   :  { %953 = vrot.lane.b32.xlu1 %v6662_v14, %s3336_s13  ;;  %2425 = vrot.lane.b32.xlu0 %v3582_v39, %s3341_s26  ;;  %6663 = vst [vmem:[#allocation59_spill] sm:$0xff] %v4022_v20  ;;  %v40_v14 = vld [vmem:[%s6457_s1 + $0x70] sm:$0xff]  ;;  %6666 = vst [vmem:[#allocation61_spill] sm:$0xff] %v4043_v61  ;;  %v4110_v61 = vand.u32 15, %v1860_v33  ;;  %v3226_v50 = vshrl.u32 %v4080_v41, 28 }
  0x51   :  { %v690_v13 = vshra.s32 %v40_v14, 8  ;;  %v1129_v62 = vshra.s32 %v40_v14, 12  ;;  %v1494_v15 = vshra.s32 %v40_v14, 16  ;;  %6671 = vst [vmem:[#allocation66_spill] sm:$0xff] %v4056_v26  ;;  %v325_v42 = vshra.s32 %v40_v14, 4  ;;  %6672 = vst [vmem:[#allocation67_spill] sm:$0xff] %v4082_v27 }
  0x52   :  { %6675 = vst [vmem:[#allocation70_spill] sm:$0xff] %v4101_v31  ;;  %6677 = vst [vmem:[#allocation72_spill] sm:$0xff] %v4110_v61  ;;  %v4160_v61 = vld [vmem:[%s6457_s1 + $0x90] sm:$0xff]  ;;  %v3209_v26 = vshrl.u32 %v3433_v29, 28 }
  0x53   :  { %v4058_v63 = vand.u32 15, %v690_v13  ;;  %v4070_v13 = vand.u32 15, %v1129_v62  ;;  %v1859_v62 = vshra.s32 %v40_v14, 20  ;;  %v4099_v43 = vand.u32 15, %v325_v42  ;;  %6681 = vst [vmem:[#allocation76_spill] sm:$0xff] %v4124_v7 }
  0x54   :  { %1258 = vrot.lane.b32.xlu1 %v3594_v59, %s3338_s17  ;;  %955 = vrot.lane.b32.xlu0 %v6665_v12, %s3336_s13  ;;  %v4054_v12 = vand.u32 15, %v1857_v0  ;;  %v4067_v0 = vand.u32 15, %v691_v5  ;;  %v4084_v5 = vand.u32 15, %v1494_v15 }
  0x55   :  { %v4103_v58 = vand.u32 15, %v1859_v62  ;;  %v4120_v62 = vand.u32 15, %v1862_v51  ;;  %v2283_v51 = vshra.s32 %v3438_v30, 24 }
  0x56   :  { %6670 = vst [vmem:[#allocation65_spill] sm:$0xff] %v4054_v12  ;;  %6673 = vst [vmem:[#allocation68_spill] sm:$0xff] %v4084_v5  ;;  %v4133_v5 = vand.u32 15, %v2299_v2  ;;  %v4165_v2 = vld [vmem:[%s6457_s1 + $0x98] sm:$0xff] }
  0x57   :  { %6676 = vst [vmem:[#allocation71_spill] sm:$0xff] %v4103_v58  ;;  %6679 = vst [vmem:[#allocation74_spill] sm:$0xff] %v4120_v62 }
  0x58   :  { %2790 = vrot.lane.b32.xlu1 %v3582_v39, %s3342_s6  ;;  %2421 = vrot.lane.b32.xlu0 %v3585_v40, %s3341_s26  ;;  %v4075_v39 = vld [vmem:[%s6457_s1 + $0x80] sm:$0xff]  ;;  %6683 = vst [vmem:[#allocation78_spill] sm:$0xff] %v4133_v5 }
  0x59   :  { %v1861_v15 = vshra.s32 %v4075_v39, 20  ;;  %v692_v14 = vshra.s32 %v4075_v39, 8  ;;  %v2298_v42 = vshra.s32 %v4075_v39, 24  ;;  %v1131_v33 = vshra.s32 %v4075_v39, 12 }
  0x5a   :  { %v3225_v12 = vshrl.u32 %v4075_v39, 28  ;;  %v327_v62 = vshra.s32 %v4075_v39, 4 }
  0x5b   :  { %v4112_v20 = vand.u32 15, %v1861_v15  ;;  %v4139_v27 = vand.u32 15, %v1131_v33  ;;  %v4149_v15 = vand.u32 15, %v1132_v37  ;;  %v4153_v33 = vand.u32 15, %v2283_v51 }
  0x5c   :  { %2510 = vrot.lane.b32.xlu1 %v3620_v25, %s3341_s26  ;;  %1623 = vrot.lane.b32.xlu0 %v3594_v59, %s3337_s16  ;;  %v4122_v59 = vand.u32 15, %v692_v14  ;;  %v1497_v51 = vshra.s32 %v4080_v41, 16  ;;  %v4172_v7 = vcvt.s32.f32 %v3225_v12  ;;  %v328_v37 = vshra.s32 %v4080_v41, 4 }
  0x5d   :  { %6678 = vst [vmem:[#allocation73_spill] sm:$0xff] %v4112_v20  ;;  %6684 = vst [vmem:[#allocation79_spill] sm:$0xff] %v4139_v27  ;;  %v1496_v20 = vshra.s32 %v4075_v39, 16  ;;  %v4192_v27 = vcvt.s32.f32 %v3209_v26  ;;  %v695_v41 = vshra.s32 %v4165_v2, 8  ;;  %v2300_v12 = vshra.s32 %v4160_v61, 24 }
  0x5e   :  { %6680 = vst [vmem:[#allocation75_spill] sm:$0xff] %v4122_v59  ;;  %6685 = vst [vmem:[#allocation80_spill] sm:$0xff] %v4149_v15  ;;  %v3210_v59 = vshrl.u32 %v3438_v30, 28  ;;  %v4198_v15 = vand.u32 15, %v327_v62  ;;  %v2301_v30 = vshra.s32 %v4165_v2, 24  ;;  %v6704_v62 = vrot.slane %v3591_v46, %v3397_v11 }
  0x5f   :  { %6687 = vst [vmem:[#allocation82_spill] sm:$0xff] %v4153_v33  ;;  %6688 = vst [vmem:[#allocation83_spill] sm:$0xff] %v4172_v7  ;;  %v4186_v7 = vcvt.s32.f32 %v3226_v50  ;;  %v4188_v39 = vand.u32 15, %v1496_v20  ;;  %v4206_v20 = vand.u32 15, %v328_v37  ;;  %v2285_v37 = vshra.s32 %v3700_v32, 24 }
  0x60   :  { %2786 = vrot.lane.b32.xlu0 %v3585_v40, %s3342_s6  ;;  %454 = vrot.lane.b32.xlu1 %v3597_v35, %s3340_s21  ;;  %v4131_v40 = vand.u32 15, %v2298_v42  ;;  %v2282_v35 = vshra.s32 %v3433_v29, 24  ;;  %v1863_v29 = vshra.s32 %v4160_v61, 20  ;;  %v1864_v42 = vshra.s32 %v4165_v2, 20  ;;  %6692 = vst [vmem:[#allocation87_spill] sm:$0xff] %v4192_v27  ;;  %6694 = vst [vmem:[#allocation89_spill] sm:$0xff] %v4198_v15 }
  0x61   :  { %6689 = vst [vmem:[#allocation84_spill] sm:$0xff] %v4186_v7  ;;  %6690 = vst [vmem:[#allocation85_spill] sm:$0xff] %v4188_v39  ;;  %v1134_v27 = vshra.s32 %v4165_v2, 12  ;;  %v4220_v7 = vand.u32 15, %v2300_v12  ;;  %v6705_v12 = vrot.slane %v3591_v46, %v3410_v18  ;;  %v4249_v46 = vand.u32 15, %v2285_v37 }
  0x62   :  { %6682 = vst [vmem:[#allocation77_spill] sm:$0xff] %v4131_v40  ;;  %v4151_v14 = vand.u32 15, %v2282_v35  ;;  %v4196_v35 = vcvt.s32.f32 %v3210_v59  ;;  %6695 = vst [vmem:[#allocation90_spill] sm:$0xff] %v4206_v20  ;;  %v4208_v26 = vand.u32 15, %v1863_v29  ;;  %v4210_v50 = vand.u32 15, %v1864_v42 }
  0x63   :  { %6700 = vst [vmem:[#allocation95_spill] sm:$0xff] %v4220_v7  ;;  %v4225_v29 = vand.u32 15, %v2301_v30  ;;  %6707 = vst [vmem:[#allocation100_spill] sm:$0xff] %v4249_v46  ;;  %v6709_v42 = vrot.slane %v3612_v22, %v3397_v11  ;;  %v6710_v20 = vrot.slane %v3612_v22, %v3410_v18  ;;  %v3212_v39 = vshrl.u32 %v3700_v32, 28 }
  0x64   :  { %1343 = vrot.lane.b32.xlu0 %v3623_v34, %s3338_s17  ;;  %2506 = vrot.lane.b32.xlu1 %v3608_v4, %s3341_s26  ;;  %6686 = vst [vmem:[#allocation81_spill] sm:$0xff] %v4151_v14  ;;  %6693 = vst [vmem:[#allocation88_spill] sm:$0xff] %v4196_v35  ;;  %v1133_v35 = vshra.s32 %v4160_v61, 12  ;;  %v329_v37 = vshra.s32 %v4160_v61, 4  ;;  %v330_v14 = vshra.s32 %v4165_v2, 4  ;;  %v6733_v40 = vrot.slane %v3630_v44, %v3410_v18 }
  0x65   :  { %6696 = vst [vmem:[#allocation91_spill] sm:$0xff] %v4208_v26  ;;  %6697 = vst [vmem:[#allocation92_spill] sm:$0xff] %v4210_v50 }
  0x66   :  { %6701 = vst [vmem:[#allocation96_spill] sm:$0xff] %v4225_v29 }
  0x68   :  { %2875 = vrot.lane.b32.xlu0 %v3620_v25, %s3342_s6  ;;  %1708 = vrot.lane.b32.xlu1 %v3623_v34, %s3337_s16  ;;  %v4190_v25 = vand.u32 15, %v1497_v51  ;;  %v694_v34 = vshra.s32 %v4160_v61, 8  ;;  %v4215_v51 = vand.u32 15, %v695_v41  ;;  %v4229_v41 = vand.u32 15, %v1134_v27 }
  0x69   :  { %v3211_v27 = vshrl.u32 %v3678_v52, 28 }
  0x6a   :  { %6691 = vst [vmem:[#allocation86_spill] sm:$0xff] %v4190_v25  ;;  %v4212_v59 = vand.u32 15, %v694_v34  ;;  %6699 = vst [vmem:[#allocation94_spill] sm:$0xff] %v4215_v51  ;;  %v4227_v34 = vand.u32 15, %v1133_v35  ;;  %v1498_v25 = vshra.s32 %v4160_v61, 16  ;;  %v4256_v35 = vld [vmem:[%s6457_s1 + $0xa0] sm:$0xff] }
  0x6b   :  { %6703 = vst [vmem:[#allocation98_spill] sm:$0xff] %v4229_v41  ;;  %v1865_v41 = vshra.s32 %v4256_v35, 20 }
  0x6c   :  { %2871 = vrot.lane.b32.xlu0 %v3608_v4, %s3342_s6  ;;  %539 = vrot.lane.b32.xlu1 %v3626_v28, %s3340_s21  ;;  %6698 = vst [vmem:[#allocation93_spill] sm:$0xff] %v4212_v59  ;;  %v2284_v28 = vshra.s32 %v3678_v52, 24  ;;  %6702 = vst [vmem:[#allocation97_spill] sm:$0xff] %v4227_v34  ;;  %v3228_v4 = vshrl.u32 %v4165_v2, 28  ;;  %v4266_v30 = vand.u32 15, %v1498_v25  ;;  %v696_v52 = vshra.s32 %v4256_v35, 8 }
  0x6d   :  { %v6715_v25 = vrot.slane %v3616_v23, %v3397_v11  ;;  %v4306_v34 = vcvt.s32.f32 %v3211_v27  ;;  %v4312_v46 = vand.u32 15, %v1865_v41  ;;  %v1500_v27 = vshra.s32 %v4256_v35, 16 }
  0x6e   :  { %v4244_v15 = vand.u32 15, %v2284_v28  ;;  %v4261_v28 = vld [vmem:[%s6457_s1 + $0xa8] sm:$0xff]  ;;  %6708 = vst [vmem:[#allocation101_spill] sm:$0xff] %v4266_v30 }
  0x6f   :  { %v697_v32 = vshra.s32 %v4261_v28, 8  ;;  %6717 = vst [vmem:[#allocation106_spill] sm:$0xff] %v4306_v34  ;;  %6720 = vst [vmem:[#allocation109_spill] sm:$0xff] %v4312_v46  ;;  %v4353_v7 = vand.u32 15, %v1500_v27 }
  0x70   :  { %2012 = vrot.lane.b32.xlu0 %v6704_v62, %s3339_s20  ;;  %2014 = vrot.lane.b32.xlu1 %v6705_v12, %s3339_s20  ;;  %6706 = vst [vmem:[#allocation99_spill] sm:$0xff] %v4244_v15  ;;  %v1499_v62 = vshra.s32 %v4165_v2, 16  ;;  %v3227_v12 = vshrl.u32 %v4160_v61, 28  ;;  %v2302_v61 = vshra.s32 %v4256_v35, 24  ;;  %v2303_v2 = vshra.s32 %v4261_v28, 24 }
  0x71   :  { %6731 = vst [vmem:[#allocation119_spill] sm:$0xff] %v4353_v7  ;;  %v6741_v7 = vcvt.s32.f32 %v3816_v6 }
  0x72   :  { %v4276_v33 = vand.u32 15, %v1499_v62  ;;  %v4286_v22 = vcvt.s32.f32 %v3227_v12  ;;  %v4290_v62 = vand.u32 15, %v329_v37  ;;  %v2286_v12 = vshra.s32 %v3770_v45, 24 }
  0x73   :  { %v2287_v37 = vshra.s32 %v3775_v57, 24  ;;  %v4327_v41 = vand.u32 15, %v2303_v2  ;;  %v3230_v2 = vshrl.u32 %v4261_v28, 28 }
  0x74   :  { %843 = vrot.lane.b32.xlu0 %v6709_v42, %s3336_s13  ;;  %845 = vrot.lane.b32.xlu1 %v6710_v20, %s3336_s13  ;;  %6711 = vst [vmem:[#allocation102_spill] sm:$0xff] %v4276_v33  ;;  %v1866_v42 = vshra.s32 %v4261_v28, 20  ;;  %6712 = vst [vmem:[#allocation103_spill] sm:$0xff] %v4286_v22  ;;  %v4288_v20 = vcvt.s32.f32 %v3228_v4  ;;  %v6716_v4 = vrot.slane %v3616_v23, %v3410_v18  ;;  %v4310_v22 = vand.u32 15, %v330_v14 }
  0x75   :  { %6714 = vst [vmem:[#allocation105_spill] sm:$0xff] %v4290_v62  ;;  %v1135_v23 = vshra.s32 %v4256_v35, 12  ;;  %v4325_v14 = vand.u32 15, %v2302_v61  ;;  %6725 = vst [vmem:[#allocation114_spill] sm:$0xff] %v4327_v41  ;;  %v4339_v34 = vand.u32 15, %v2286_v12  ;;  %v3229_v61 = vshrl.u32 %v4256_v35, 28 }
  0x76   :  { %6713 = vst [vmem:[#allocation104_spill] sm:$0xff] %v4288_v20  ;;  %v4308_v20 = vcvt.s32.f32 %v3212_v39  ;;  %6719 = vst [vmem:[#allocation108_spill] sm:$0xff] %v4310_v22  ;;  %v4314_v15 = vand.u32 15, %v1866_v42  ;;  %v4323_v39 = vand.u32 15, %v697_v32  ;;  %v6726_v42 = vrot.slane %v3630_v44, %v3397_v11  ;;  %v4381_v12 = vld [vmem:[%s6457_s1 + $0xb8] sm:$0xff] }
  0x77   :  { %6724 = vst [vmem:[#allocation113_spill] sm:$0xff] %v4325_v14  ;;  %6729 = vst [vmem:[#allocation117_spill] sm:$0xff] %v4339_v34  ;;  %v4341_v32 = vand.u32 15, %v2287_v37  ;;  %v1501_v62 = vshra.s32 %v4261_v28, 16  ;;  %v4375_v29 = vcvt.s32.f32 %v3230_v2  ;;  %v6740_v22 = vcvt.s32.f32 %v3807_v3 }
  0x78   :  { %2125 = vrot.lane.b32.xlu0 %v6715_v25, %s3339_s20  ;;  %2127 = vrot.lane.b32.xlu1 %v6716_v4, %s3339_s20  ;;  %6718 = vst [vmem:[#allocation107_spill] sm:$0xff] %v4308_v20  ;;  %6721 = vst [vmem:[#allocation110_spill] sm:$0xff] %v4314_v15  ;;  %v4316_v25 = vand.u32 15, %v696_v52  ;;  %v1136_v4 = vshra.s32 %v4261_v28, 12  ;;  %v4335_v52 = vand.u32 15, %v1135_v23  ;;  %v3214_v23 = vshrl.u32 %v3775_v57, 28 }
  0x79   :  { %6723 = vst [vmem:[#allocation112_spill] sm:$0xff] %v4323_v39  ;;  %6730 = vst [vmem:[#allocation118_spill] sm:$0xff] %v4341_v32  ;;  %v4355_v5 = vand.u32 15, %v1501_v62  ;;  %v4370_v62 = vld [vmem:[%s6457_s1 + $0xb0] sm:$0xff]  ;;  %v6736_v57 = vcvt.s32.f32 %v3692_v36  ;;  %v6742_v36 = vcvt.s32.f32 %v3864_v47  ;;  %v6786_v15 = vld [vmem:[#allocation15_spill] sm:$0xff] }
  0x7a   :  { %6722 = vst [vmem:[#allocation111_spill] sm:$0xff] %v4316_v25  ;;  %6727 = vst [vmem:[#allocation115_spill] sm:$0xff] %v4335_v52  ;;  %v4337_v20 = vand.u32 15, %v1136_v4  ;;  %v3213_v4 = vshrl.u32 %v3770_v45, 28  ;;  %v6787_v46 = vcvt.s32.f32 %v6786_v15 }
  0x7b   :  { %6732 = vst [vmem:[#allocation120_spill] sm:$0xff] %v4355_v5  ;;  %6735 = vst [vmem:[#allocation122_spill] sm:$0xff] %v4375_v29 }
  0x7c   :  { %2427 = vrot.lane.b32.xlu0 %v3703_v48, %s3341_s26  ;;  %957 = vrot.lane.b32.xlu1 %v6726_v42, %s3336_s13  ;;  %6728 = vst [vmem:[#allocation116_spill] sm:$0xff] %v4337_v20 }
  0x7e   :  { %v946_v33 = vpop.permute.xlu1 %945  ;;  %v832_v30 = vpop.permute.xlu0 %831 }
  0x80   :  { %959 = vrot.lane.b32.xlu0 %v6733_v40, %s3336_s13  ;;  %1260 = vrot.lane.b32.xlu1 %v3665_v16, %s3338_s17  ;;  %v4373_v40 = vcvt.s32.f32 %v3229_v61  ;;  %v6737_v61 = vcvt.s32.f32 %v3694_v38 }
  0x82   :  { %6734 = vst [vmem:[#allocation121_spill] sm:$0xff] %v4373_v40  ;;  %v948_v37 = vpop.permute.xlu1 %947  ;;  %v834_v27 = vpop.permute.xlu0 %833  ;;  %v6748_v40 = vld [vmem:[#allocation14_spill] sm:$0xff] }
  0x83   :  { %v4388_v2 = vsel %vm847_vm0, %v946_v33, %v948_v37  ;;  %v848_v45 = vsel %vm847_vm0, %v832_v30, %v834_v27  ;;  %v6738_v33 = vcvt.s32.f32 %v3746_v56  ;;  %v6739_v27 = vcvt.s32.f32 %v3748_v54 }
  0x84   :  { %2423 = vrot.lane.b32.xlu0 %v3668_v8, %s3341_s26  ;;  %2792 = vrot.lane.b32.xlu1 %v3703_v48, %s3342_s6  ;;  %v856_v42 = vmul.f32 %v848_v45, %v6736_v57  ;;  %v857_v18 = vmul.f32 %v848_v45, %v6737_v61  ;;  %v860_v5 = vmul.f32 %v848_v45, %v6740_v22  ;;  %v6744_v22 = vcvt.s32.f32 %v3542_v9 }
  0x85   :  { %v858_v37 = vmul.f32 %v848_v45, %v6738_v33  ;;  %v859_v44 = vmul.f32 %v848_v45, %v6739_v27  ;;  %v861_v48 = vmul.f32 %v848_v45, %v6741_v7  ;;  %v4412_v57 = vmul.f32 %v848_v45, %v6742_v36  ;;  %v6746_v36 = vld [vmem:[#allocation13_spill] sm:$0xff] }
  0x86   :  { %v4414_v38 = vpop.permute.xlu1 %1619  ;;  %v1255_v61 = vpop.permute.xlu0 %1254  ;;  %v969_v56 = vsub.f32 %v856_v42, %v4388_v2  ;;  %v970_v33 = vsub.f32 %v857_v18, %v4388_v2  ;;  %v6743_v27 = vcvt.s32.f32 %v3869_v53  ;;  %v6745_v7 = vcvt.s32.f32 %v3573_v19  ;;  %v6750_v53 = vld [vmem:[#allocation18_spill] sm:$0xff] }
  0x87   :  { %v971_v54 = vsub.f32 %v858_v37, %v4388_v2  ;;  %v1266_v6 = vmul.f32 %v1255_v61, %v6744_v22  ;;  %v6747_v30 = vcvt.s32.f32 %v6746_v36  ;;  %v6749_v42 = vcvt.s32.f32 %v6748_v40  ;;  %v6754_v22 = vld [vmem:[#allocation22_spill] sm:$0xff]  ;;  %v6756_v36 = vld [vmem:[#allocation23_spill] sm:$0xff] }
  0x88   :  { %v863_v3 = vmul.f32 %v848_v45, %v6743_v27  ;;  %v1267_v47 = vmul.f32 %v1255_v61, %v6745_v7  ;;  %1625 = vrot.lane.b32.xlu0 %v3665_v16, %s3337_s16  ;;  %2512 = vrot.lane.b32.xlu1 %v6750_v53, %s3341_s26  ;;  %v4439_v9 = vpack.c.bf16 %v970_v33, %v969_v56  ;;  %v6751_v45 = vld [vmem:[#allocation21_spill] sm:$0xff]  ;;  %v6755_v40 = vcvt.s32.f32 %v6754_v22  ;;  %v6758_v16 = vld [vmem:[#allocation24_spill] sm:$0xff] }
  0x89   :  { %v4428_v29 = vmul.f32 %v4414_v38, %v6747_v30  ;;  %v4433_v18 = vmul.f32 %v4414_v38, %v6749_v42  ;;  %v972_v19 = vsub.f32 %v859_v44, %v4388_v2  ;;  %v6752_v37 = vcvt.s32.f32 %v6751_v45  ;;  %v6760_v45 = vld [vmem:[#allocation29_spill] sm:$0xff] }
  0x8a   :  { %v4444_v30 = vcvt.s32.f32 %v3213_v4  ;;  %v1269_v7 = vmul.f32 %v1255_v61, %v6755_v40  ;;  %v6757_v42 = vcvt.s32.f32 %v6756_v36  ;;  %v6759_v34 = vcvt.s32.f32 %v6758_v16  ;;  %v2003_v33 = vpop.permute.xlu1 %2002  ;;  %v2001_v44 = vpop.permute.xlu0 %2000  ;;  %v6763_v16 = vld [vmem:[#allocation30_spill] sm:$0xff] }
  0x8b   :  { %v1268_v27 = vmul.f32 %v1255_v61, %v6752_v37  ;;  %v973_v56 = vsub.f32 %v860_v5, %v4388_v2  ;;  %v4455_v52 = vpack.c.bf16 %v972_v19, %v971_v54  ;;  %v974_v4 = vsub.f32 %v861_v48, %v4388_v2  ;;  %v6765_v5 = vld [vmem:[#allocation31_spill] sm:$0xff] }
  0x8c   :  { %6753 = vst [vmem:[#allocation13_spill] sm:$0xff] %v4444_v30  ;;  %v1633_v32 = vmul.f32 %v4414_v38, %v6757_v42  ;;  %v1634_v20 = vmul.f32 %v4414_v38, %v6759_v34  ;;  %v6761_v37 = vcvt.s32.f32 %v6760_v45  ;;  %v6762_v40 = vcvt.s32.f32 %v3839_v24  ;;  %2788 = vrot.lane.b32.xlu0 %v3668_v8, %s3342_s6  ;;  %v6767_v24 = vld [vmem:[#allocation10_spill] sm:$0xff]  ;;  %v6768_v19 = vld [vmem:[#allocation19_spill] sm:$0xff]  ;;  %v6770_v45 = vld [vmem:[#allocation20_spill] sm:$0xff] }
  0x8d   :  { %v4463_v42 = vsel %vm1083_vm1, %v2001_v44, %v2003_v33  ;;  %v6764_v30 = vcvt.s32.f32 %v6763_v16  ;;  %v6766_v41 = vcvt.s32.f32 %v6765_v5  ;;  %v975_v48 = vsub.f32 %v4412_v57, %v4388_v2  ;;  %456 = vrot.lane.b32.xlu1 %v6767_v24, %s3340_s21  ;;  %v6775_v8 = vld [vmem:[#allocation28_spill] sm:$0xff] }
  0x8e   :  { %v1270_v22 = vmul.f32 %v1255_v61, %v6761_v37  ;;  %v1271_v36 = vmul.f32 %v1255_v61, %v6762_v40  ;;  %v6769_v33 = vcvt.s32.f32 %v6768_v19  ;;  %v4492_v16 = vcvt.s32.f32 %v3214_v23  ;;  %v4513_v23 = vpop.permute.xlu0 %450 }
  0x8f   :  { %v1635_v34 = vmul.f32 %v4414_v38, %v6764_v30  ;;  %v1636_v54 = vmul.f32 %v4414_v38, %v6766_v41  ;;  %v6771_v30 = vcvt.s32.f32 %v6770_v45  ;;  %v6772_v41 = vld [vmem:[#allocation27_spill] sm:$0xff]  ;;  %v6776_v5 = vcvt.s32.f32 %v6775_v8 }
  0x90   :  { %v4480_v44 = vmul.f32 %v4463_v42, %v6769_v33  ;;  %v6773_v40 = vcvt.s32.f32 %v6772_v41  ;;  %6774 = vst [vmem:[#allocation14_spill] sm:$0xff] %v4492_v16  ;;  %v4499_v19 = vpack.c.bf16 %v974_v4, %v973_v56  ;;  %v6777_v33 = vld [vmem:[#allocation34_spill] sm:$0xff]  ;;  %v976_v8 = vsub.f32 %v863_v3, %v4388_v2  ;;  %v6782_v4 = vld [vmem:[#allocation36_spill] sm:$0xff]  ;;  %v6788_v3 = vld [vmem:[#allocation17_spill] sm:$0xff] }
  0x91   :  { %v4485_v37 = vmul.f32 %v4463_v42, %v6771_v30  ;;  %v4497_v24 = vmul.f32 %v4463_v42, %v6776_v5  ;;  %v6778_v14 = vcvt.s32.f32 %v6777_v33  ;;  %v6779_v30 = vcvt.s32.f32 %v3862_v10  ;;  %v6780_v5 = vld [vmem:[#allocation35_spill] sm:$0xff] }
  0x92   :  { %v4490_v57 = vmul.f32 %v4463_v42, %v6773_v40  ;;  %v4511_v40 = vpop.permute.xlu1 %1339  ;;  %v6781_v16 = vcvt.s32.f32 %v6780_v5  ;;  %v6783_v33 = vcvt.s32.f32 %v6782_v4  ;;  %v462_v2 = vmul.f32 %v4513_v23, %v6787_v46  ;;  %v6791_v4 = vld [vmem:[#allocation12_spill] sm:$0xff]  ;;  %v1705_v58 = vpop.permute.xlu0 %1704 }
  0x93   :  { %v4504_v45 = vmul.f32 %v4463_v42, %v6778_v14  ;;  %v4509_v41 = vmul.f32 %v4463_v42, %v6779_v30  ;;  %v6784_v14 = vld [vmem:[#allocation37_spill] sm:$0xff]  ;;  %v1351_v30 = vsub.f32 %v1266_v6, %v4511_v40  ;;  %v1352_v25 = vsub.f32 %v1267_v47, %v4511_v40  ;;  %2508 = vrot.lane.b32.xlu1 %v6791_v4, %s3341_s26 }
  0x94   :  { %v4518_v56 = vmul.f32 %v1255_v61, %v6781_v16  ;;  %v4522_v11 = vmul.f32 %v1255_v61, %v6783_v33  ;;  %v6785_v39 = vcvt.s32.f32 %v6784_v14  ;;  %v6789_v16 = vcvt.s32.f32 %v6788_v3  ;;  %v6790_v61 = vld [vmem:[#allocation11_spill] sm:$0xff]  ;;  %v6792_v33 = vld [vmem:[#allocation25_spill] sm:$0xff] }
  0x95   :  { %1345 = vrot.lane.b32.xlu0 %v6790_v61, %s3338_s17  ;;  %v1354_v6 = vsub.f32 %v1269_v7, %v4511_v40  ;;  %v6793_v47 = vcvt.s32.f32 %v6792_v33  ;;  %v6794_v46 = vshra.s32 %v4256_v35, 4  ;;  %v1383_v3 = vpack.c.bf16 %v1352_v25, %v1351_v30  ;;  %v6797_v33 = vld [vmem:[#allocation32_spill] sm:$0xff]  ;;  %v6799_v35 = vld [vmem:[#allocation33_spill] sm:$0xff] }
  0x96   :  { %v4527_v10 = vmul.f32 %v4414_v38, %v6785_v39  ;;  %v463_v5 = vmul.f32 %v4513_v23, %v6789_v16  ;;  %v1353_v39 = vsub.f32 %v1268_v27, %v4511_v40  ;;  %v6795_v16 = vld [vmem:[#allocation26_spill] sm:$0xff]  ;;  %v1355_v50 = vsub.f32 %v1270_v22, %v4511_v40  ;;  %v2114_v27 = vpop.permute.xlu1 %2113 }
  0x97   :  { %v464_v15 = vmul.f32 %v4513_v23, %v6793_v47  ;;  %v4548_v14 = vand.u32 15, %v6794_v46  ;;  %v6796_v51 = vcvt.s32.f32 %v6795_v16  ;;  %v1356_v26 = vsub.f32 %v1271_v36, %v4511_v40  ;;  %1710 = vrot.lane.b32.xlu1 %v6790_v61, %s3337_s16 }
  0x98   :  { %v4555_v7 = vpack.c.bf16 %v1354_v6, %v1353_v39  ;;  %v6798_v31 = vcvt.s32.f32 %v6797_v33  ;;  %v6800_v46 = vcvt.s32.f32 %v6799_v35  ;;  %v4563_v30 = vpack.c.bf16 %v976_v8, %v975_v48 }
  0x99   :  { %v465_v59 = vmul.f32 %v4513_v23, %v6796_v51  ;;  %v1716_v51 = vsub.f32 %v4428_v29, %v1705_v58  ;;  %v1717_v22 = vsub.f32 %v4433_v18, %v1705_v58  ;;  %v1718_v16 = vsub.f32 %v1633_v32, %v1705_v58  ;;  %2877 = vrot.lane.b32.xlu0 %v6750_v53, %s3342_s6  ;;  %v2116_v53 = vpop.permute.xlu0 %2115 }
  0x9a   :  { %v466_v47 = vmul.f32 %v4513_v23, %v6798_v31  ;;  %v467_v25 = vmul.f32 %v4513_v23, %v6800_v46  ;;  %v1719_v36 = vsub.f32 %v1634_v20, %v1705_v58  ;;  %v4571_v39 = vpack.c.bf16 %v1356_v26, %v1355_v50  ;;  %v536_v18 = vpop.permute.xlu1 %535  ;;  %v6802_v26 = vld [vmem:[#allocation38_spill] sm:$0xff] }
  0x9b   :  { %v1720_v31 = vsub.f32 %v1635_v34, %v1705_v58  ;;  %v1721_v6 = vsub.f32 %v1636_v54, %v1705_v58  ;;  %v6801_v33 = vshra.s32 %v4261_v28, 4  ;;  %v1748_v8 = vpack.c.bf16 %v1717_v22, %v1716_v51  ;;  %v6804_v54 = vld [vmem:[#allocation39_spill] sm:$0xff] }
  0x9c   :  { %v4577_v29 = vpack.c.bf16 %v1719_v36, %v1718_v16  ;;  %v1357_v20 = vsub.f32 %v4518_v56, %v4511_v40  ;;  %v1358_v32 = vsub.f32 %v4522_v11, %v4511_v40  ;;  %v6803_v50 = vcvt.s32.f32 %v6802_v26  ;;  %v6806_v11 = vld [vmem:[#allocation16_spill] sm:$0xff] }
  0x9d   :  { %v4575_v48 = vand.u32 15, %v6801_v33  ;;  %v4583_v61 = vpack.c.bf16 %v1721_v6, %v1720_v31  ;;  %v1722_v28 = vsub.f32 %v4527_v10, %v1705_v58  ;;  %v6805_v35 = vcvt.s32.f32 %v6804_v54  ;;  %2873 = vrot.lane.b32.xlu0 %v6791_v4, %s3342_s6  ;;  %541 = vrot.lane.b32.xlu1 %v6806_v11, %s3340_s21  ;;  %v836_v4 = vpop.permute.xlu0 %835 }
  0x9e   :  { %v1638_v34 = vmul.f32 %v4414_v38, %v6803_v50  ;;  %v2129_v51 = vsel %vm1083_vm1, %v2114_v27, %v2116_v53  ;;  %v547_v56 = vsub.f32 %v462_v2, %v536_v18  ;;  %v548_v22 = vsub.f32 %v463_v5, %v536_v18  ;;  %v838_v27 = vpop.permute.xlu1 %837 }
  0x9f   :  { %v468_v46 = vmul.f32 %v4513_v23, %v6805_v35  ;;  %v549_v16 = vsub.f32 %v464_v15, %v536_v18  ;;  %v2137_v40 = vsub.f32 %v4480_v44, %v2129_v51  ;;  %v2138_v38 = vsub.f32 %v4485_v37, %v2129_v51 }
  0xa0   :  { %v550_v10 = vsub.f32 %v465_v59, %v536_v18  ;;  %v6807_v36 = vshra.s32 %v4370_v62, 20  ;;  %v579_v6 = vpack.c.bf16 %v548_v22, %v547_v56  ;;  %v2139_v2 = vsub.f32 %v4490_v57, %v2129_v51 }
  0xa1   :  { %v2140_v5 = vsub.f32 %v4497_v24, %v2129_v51  ;;  %v551_v15 = vsub.f32 %v466_v47, %v536_v18  ;;  %v2169_v33 = vpack.c.bf16 %v2138_v38, %v2137_v40  ;;  %v552_v26 = vsub.f32 %v467_v25, %v536_v18  ;;  %1415 = vrot.lane.b32.xlu1 %v1383_v3, %s3339_s20  ;;  %v6808_v47 = vld [vmem:[#allocation40_spill] sm:$0xff] }
  0xa2   :  { %v4601_v31 = vand.u32 15, %v6807_v36  ;;  %v4605_v53 = vpack.c.bf16 %v550_v10, %v549_v16  ;;  %v2141_v44 = vsub.f32 %v4504_v45, %v2129_v51  ;;  %v849_v59 = vsel %vm847_vm0, %v836_v4, %v838_v27  ;;  %1033 = vrot.lane.b32.xlu0 %v4439_v9, %s3341_s26  ;;  %v6815_v10 = vld [vmem:[#allocation42_spill] sm:$0xff] }
  0xa3   :  { %v4609_v37 = vpack.c.bf16 %v2140_v5, %v2139_v2  ;;  %v2142_v50 = vsub.f32 %v4509_v41, %v2129_v51  ;;  %v4612_v54 = vpack.c.bf16 %v1358_v32, %v1357_v20  ;;  %v4617_v57 = vpack.c.bf16 %v552_v26, %v551_v15  ;;  %v6811_v20 = vld [vmem:[#allocation41_spill] sm:$0xff] }
  0xa4   :  { %v1723_v24 = vsub.f32 %v1638_v34, %v1705_v58  ;;  %v6809_v25 = vcvt.s32.f32 %v6808_v47  ;;  %v6810_v35 = vshra.s32 %v4381_v12, 20  ;;  %v553_v41 = vsub.f32 %v468_v46, %v536_v18  ;;  %v952_v58 = vpop.permute.xlu1 %951  ;;  %v950_v34 = vpop.permute.xlu0 %949 }
  0xa5   :  { %v4626_v22 = vpack.c.bf16 %v2142_v50, %v2141_v44  ;;  %v6812_v32 = vcvt.s32.f32 %v6811_v20  ;;  %v6813_v9 = vcvt.s32.f32 %v3913_v60  ;;  %v6814_v40 = vcvt.s32.f32 %v3916_v21  ;;  %611 = vrot.lane.b32.xlu1 %v579_v6, %s3342_s6  ;;  %v6823_v20 = vld [vmem:[#allocation43_spill] sm:$0xff] }
  0xa6   :  { %v469_v45 = vmul.f32 %v4513_v23, %v6809_v25  ;;  %v4624_v56 = vand.u32 15, %v6810_v35  ;;  %v4634_v11 = vpack.c.bf16 %v1723_v24, %v1722_v28  ;;  %v6816_v36 = vcvt.s32.f32 %v6815_v10  ;;  %1780 = vrot.lane.b32.xlu0 %v1748_v8, %s3337_s16  ;;  %v6869_v28 = vld [vmem:[#allocation48_spill] sm:$0xff] }
  0xa7   :  { %v2030_v3 = vmul.f32 %v4463_v42, %v6812_v32  ;;  %v2031_v16 = vmul.f32 %v4463_v42, %v6813_v9  ;;  %v864_v38 = vmul.f32 %v849_v59, %v6814_v40  ;;  %v4641_v46 = vsel %vm847_vm0, %v950_v34, %v952_v58  ;;  %v6825_v9 = vld [vmem:[#allocation44_spill] sm:$0xff]  ;;  %v6827_v58 = vld [vmem:[#allocation45_spill] sm:$0xff]  ;;  %v6829_v40 = vld [vmem:[#allocation46_spill] sm:$0xff] }
  0xa8   :  { %v554_v23 = vsub.f32 %v469_v45, %v536_v18  ;;  %v865_v2 = vmul.f32 %v849_v59, %v6816_v36  ;;  %v6817_v60 = vcvt.s32.f32 %v3966_v49  ;;  %v6818_v26 = vcvt.s32.f32 %v3968_v1  ;;  %v1622_v50 = vpop.permute.xlu1 %1621  ;;  %v1257_v6 = vpop.permute.xlu0 %1256  ;;  %v6833_v36 = vld [vmem:[#allocation52_spill] sm:$0xff] }
  0xa9   :  { %v2143_v5 = vsub.f32 %v2030_v3, %v2129_v51  ;;  %v2144_v15 = vsub.f32 %v2031_v16, %v2129_v51  ;;  %v977_v21 = vsub.f32 %v864_v38, %v4641_v46  ;;  %v6819_v44 = vcvt.s32.f32 %v4010_v17  ;;  %1035 = vrot.lane.b32.xlu1 %v4455_v52, %s3341_s26 }
  0xaa   :  { %v866_v27 = vmul.f32 %v849_v59, %v6817_v60  ;;  %v4647_v42 = vpack.c.bf16 %v554_v23, %v553_v41  ;;  %v978_v18 = vsub.f32 %v865_v2, %v4641_v46  ;;  %v867_v51 = vmul.f32 %v849_v59, %v6818_v26  ;;  %2201 = vrot.lane.b32.xlu0 %v2169_v33, %s3338_s17  ;;  %v6835_v60 = vld [vmem:[#allocation53_spill] sm:$0xff] }
  0xab   :  { %v4652_v4 = vpack.c.bf16 %v2144_v15, %v2143_v5  ;;  %v868_v8 = vmul.f32 %v849_v59, %v6819_v44  ;;  %v6820_v47 = vcvt.s32.f32 %v4020_v55  ;;  %v6821_v45 = vcvt.s32.f32 %v4058_v63  ;;  %v6867_v15 = vld [vmem:[#allocation47_spill] sm:$0xff] }
  0xac   :  { %v979_v49 = vsub.f32 %v866_v27, %v4641_v46  ;;  %v4659_v24 = vpack.c.bf16 %v978_v18, %v977_v21  ;;  %v6822_v41 = vcvt.s32.f32 %v4067_v0  ;;  %v6824_v32 = vcvt.s32.f32 %v6823_v20  ;;  %v6831_v0 = vld [vmem:[#allocation51_spill] sm:$0xff]  ;;  %v6837_v18 = vld [vmem:[#allocation54_spill] sm:$0xff] }
  0xad   :  { %v869_v25 = vmul.f32 %v849_v59, %v6820_v47  ;;  %v4665_v35 = vmul.f32 %v849_v59, %v6821_v45  ;;  %v6826_v17 = vcvt.s32.f32 %v6825_v9  ;;  %v6828_v34 = vcvt.s32.f32 %v6827_v58  ;;  %v2005_v47 = vpop.permute.xlu0 %2004  ;;  %v6841_v9 = vld [vmem:[#allocation60_spill] sm:$0xff]  ;;  %1782 = vrot.lane.b32.xlu1 %v4577_v29, %s3337_s16 }
  0xae   :  { %v871_v1 = vmul.f32 %v849_v59, %v6822_v41  ;;  %v1274_v3 = vmul.f32 %v1257_v6, %v6824_v32  ;;  %v6830_v55 = vcvt.s32.f32 %v6829_v40  ;;  %v980_v63 = vsub.f32 %v867_v51, %v4641_v46  ;;  %v2007_v51 = vpop.permute.xlu1 %2006  ;;  %v6839_v41 = vld [vmem:[#allocation59_spill] sm:$0xff]  ;;  %1417 = vrot.lane.b32.xlu0 %v4555_v7, %s3339_s20 }
  0xaf   :  { %v1275_v16 = vmul.f32 %v1257_v6, %v6826_v17  ;;  %v4675_v23 = vmul.f32 %v1622_v50, %v6828_v34  ;;  %v6832_v59 = vcvt.s32.f32 %v6831_v0  ;;  %v6834_v2 = vcvt.s32.f32 %v6833_v36  ;;  %v6843_v34 = vld [vmem:[#allocation61_spill] sm:$0xff] }
  0xb0   :  { %v4679_v38 = vmul.f32 %v1622_v50, %v6830_v55  ;;  %v6836_v27 = vcvt.s32.f32 %v6835_v60  ;;  %v6838_v26 = vcvt.s32.f32 %v6837_v18  ;;  %v981_v44 = vsub.f32 %v868_v8, %v4641_v46  ;;  %v6846_v8 = vld [vmem:[#allocation62_spill] sm:$0xff] }
  0xb1   :  { %v1276_v10 = vmul.f32 %v1257_v6, %v6832_v59  ;;  %v1277_v5 = vmul.f32 %v1257_v6, %v6834_v2  ;;  %v982_v52 = vsub.f32 %v869_v25, %v4641_v46  ;;  %v4698_v45 = vpack.c.bf16 %v980_v63, %v979_v49  ;;  %v6848_v63 = vld [vmem:[#allocation49_spill] sm:$0xff]  ;;  %2203 = vrot.lane.b32.xlu1 %v4609_v37, %s3338_s17 }
  0xb2   :  { %v4692_v21 = vmul.f32 %v1622_v50, %v6836_v27  ;;  %v1642_v33 = vmul.f32 %v1622_v50, %v6838_v26  ;;  %v6840_v20 = vcvt.s32.f32 %v6839_v41  ;;  %v6842_v17 = vcvt.s32.f32 %v6841_v9  ;;  %v6850_v27 = vld [vmem:[#allocation50_spill] sm:$0xff]  ;;  %v6856_v41 = vld [vmem:[#allocation65_spill] sm:$0xff]  ;;  %613 = vrot.lane.b32.xlu0 %v4605_v53, %s3342_s6 }
  0xb3   :  { %v6844_v40 = vcvt.s32.f32 %v6843_v34  ;;  %v4707_v0 = vsel %vm1083_vm1, %v2005_v47, %v2007_v51  ;;  %v4709_v59 = vpack.c.bf16 %v982_v52, %v981_v44  ;;  %v6847_v25 = vcvt.s32.f32 %v6846_v8  ;;  %v6852_v44 = vld [vmem:[#allocation57_spill] sm:$0xff]  ;;  %v6854_v51 = vld [vmem:[#allocation58_spill] sm:$0xff] }
  0xb4   :  { %v1278_v32 = vmul.f32 %v1257_v6, %v6840_v20  ;;  %v1279_v58 = vmul.f32 %v1257_v6, %v6842_v17  ;;  %v983_v49 = vsub.f32 %v4665_v35, %v4641_v46  ;;  %v6849_v2 = vcvt.s32.f32 %v6848_v63  ;;  %v6858_v17 = vld [vmem:[#allocation66_spill] sm:$0xff]  ;;  %v4753_v63 = vpop.permute.xlu0 %452 }
  0xb5   :  { %v1643_v55 = vmul.f32 %v1622_v50, %v6844_v40  ;;  %6845 = vst [vmem:[#allocation18_spill] sm:$0xff] %v4709_v59  ;;  %v1644_v36 = vmul.f32 %v1622_v50, %v6847_v25  ;;  %v6851_v18 = vcvt.s32.f32 %v6850_v27  ;;  %v6853_v52 = vcvt.s32.f32 %v6852_v44  ;;  %v4751_v25 = vpop.permute.xlu1 %1341  ;;  %v6877_v59 = vld [vmem:[#allocation64_spill] sm:$0xff]  ;;  %1419 = vrot.lane.b32.xlu1 %v4571_v39, %s3339_s20 }
  0xb6   :  { %v4722_v60 = vmul.f32 %v4707_v0, %v6849_v2  ;;  %v6855_v47 = vcvt.s32.f32 %v6854_v51  ;;  %v6857_v20 = vcvt.s32.f32 %v6856_v41  ;;  %v6859_v34 = vcvt.s32.f32 %v6858_v17  ;;  %v6863_v51 = vld [vmem:[#allocation68_spill] sm:$0xff]  ;;  %1037 = vrot.lane.b32.xlu0 %v4499_v19, %s3341_s26 }
  0xb7   :  { %v4727_v26 = vmul.f32 %v4707_v0, %v6851_v18  ;;  %v4732_v35 = vmul.f32 %v4707_v0, %v6853_v52  ;;  %v984_v8 = vsub.f32 %v871_v1, %v4641_v46  ;;  %v6860_v2 = vcvt.s32.f32 %v4070_v13  ;;  %v6861_v18 = vld [vmem:[#allocation67_spill] sm:$0xff] }
  0xb8   :  { %v4738_v29 = vmul.f32 %v4707_v0, %v6855_v47  ;;  %v4743_v9 = vmul.f32 %v4707_v0, %v6857_v20  ;;  %v4748_v40 = vmul.f32 %v4707_v0, %v6859_v34  ;;  %v6862_v44 = vcvt.s32.f32 %v6861_v18  ;;  %v6865_v20 = vld [vmem:[#allocation69_spill] sm:$0xff] }
  0xb9   :  { %v4757_v27 = vmul.f32 %v1257_v6, %v6860_v2  ;;  %v6864_v47 = vcvt.s32.f32 %v6863_v51  ;;  %v6866_v17 = vcvt.s32.f32 %v6865_v20  ;;  %v1359_v46 = vsub.f32 %v1274_v3, %v4751_v25  ;;  %v6873_v20 = vld [vmem:[#allocation56_spill] sm:$0xff]  ;;  %615 = vrot.lane.b32.xlu1 %v4617_v57, %s3342_s6 }
  0xba   :  { %v4761_v52 = vmul.f32 %v1257_v6, %v6862_v44  ;;  %v1360_v1 = vsub.f32 %v1275_v16, %v4751_v25  ;;  %v6868_v13 = vcvt.s32.f32 %v6867_v15  ;;  %v6870_v18 = vcvt.s32.f32 %v6869_v28  ;;  %v6871_v44 = vld [vmem:[#allocation55_spill] sm:$0xff]  ;;  %v3281_v28 = vld [vmem:[%s6457_s1 + $0x8] sm:$0xff]  ;;  %1784 = vrot.lane.b32.xlu0 %v4583_v61, %s3337_s16 }
  0xbb   :  { %v4765_v41 = vmul.f32 %v1622_v50, %v6864_v47  ;;  %v4769_v34 = vmul.f32 %v1622_v50, %v6866_v17  ;;  %v1361_v50 = vsub.f32 %v1276_v10, %v4751_v25  ;;  %v1362_v3 = vsub.f32 %v1277_v5, %v4751_v25  ;;  %v2118_v5 = vpop.permute.xlu1 %2117 }
  0xbc   :  { %v470_v2 = vmul.f32 %v4753_v63, %v6868_v13  ;;  %v471_v6 = vmul.f32 %v4753_v63, %v6870_v18  ;;  %v6872_v16 = vcvt.s32.f32 %v6871_v44  ;;  %v59_v51 = vand.u32 15, %v3281_v28  ;;  %v1707_v13 = vpop.permute.xlu0 %1706  ;;  %v6875_v44 = vld [vmem:[#allocation63_spill] sm:$0xff] }
  0xbd   :  { %v4791_v47 = vpack.c.bf16 %v1360_v1, %v1359_v46  ;;  %v6874_v53 = vcvt.s32.f32 %v6873_v20  ;;  %v1363_v37 = vsub.f32 %v1278_v32, %v4751_v25  ;;  %v1364_v10 = vsub.f32 %v1279_v58, %v4751_v25  ;;  %1039 = vrot.lane.b32.xlu1 %v4563_v30, %s3341_s26 }
  0xbe   :  { %v472_v15 = vmul.f32 %v4753_v63, %v6872_v16  ;;  %v4798_v18 = vpack.c.bf16 %v1362_v3, %v1361_v50  ;;  %v6876_v16 = vcvt.s32.f32 %v6875_v44  ;;  %v6878_v28 = vcvt.s32.f32 %v6877_v59  ;;  %2205 = vrot.lane.b32.xlu0 %v4626_v22, %s3338_s17  ;;  %v6882_v22 = vld [vmem:[#allocation71_spill] sm:$0xff] }
  0xbf   :  { %v473_v17 = vmul.f32 %v4753_v63, %v6874_v53  ;;  %v4806_v1 = vpack.c.bf16 %v984_v8, %v983_v49  ;;  %v1724_v20 = vsub.f32 %v4675_v23, %v1707_v13  ;;  %v1725_v32 = vsub.f32 %v4679_v38, %v1707_v13  ;;  %v538_v19 = vpop.permute.xlu1 %537 }
  0xc0   :  { %v474_v7 = vmul.f32 %v4753_v63, %v6876_v16  ;;  %v475_v46 = vmul.f32 %v4753_v63, %v6878_v28  ;;  %v1726_v58 = vsub.f32 %v4692_v21, %v1707_v13  ;;  %v1727_v53 = vsub.f32 %v1642_v33, %v1707_v13  ;;  %v2120_v33 = vpop.permute.xlu0 %2119 }
  0xc1   :  { %v4815_v50 = vpack.c.bf16 %v1364_v10, %v1363_v37  ;;  %v1728_v59 = vsub.f32 %v1643_v55, %v1707_v13  ;;  %v1729_v3 = vsub.f32 %v1644_v36, %v1707_v13  ;;  %v4817_v44 = vcvt.s32.f32 %v59_v51  ;;  %1786 = vrot.lane.b32.xlu1 %v4634_v11, %s3337_s16  ;;  %v6903_v11 = vld [vmem:[#allocation93_spill] sm:$0xff] }
  0xc2   :  { %v4819_v49 = vpack.c.bf16 %v1725_v32, %v1724_v20  ;;  %v4821_v23 = vpack.c.bf16 %v1727_v53, %v1726_v58  ;;  %v1365_v38 = vsub.f32 %v4757_v27, %v4751_v25  ;;  %v1366_v21 = vsub.f32 %v4761_v52, %v4751_v25  ;;  %1421 = vrot.lane.b32.xlu0 %v4612_v54, %s3339_s20 }
  0xc3   :  { %v4827_v8 = vpack.c.bf16 %v1729_v3, %v1728_v59  ;;  %v1730_v39 = vsub.f32 %v4765_v41, %v1707_v13  ;;  %v1731_v55 = vsub.f32 %v4769_v34, %v1707_v13  ;;  %v6879_v36 = vcvt.s32.f32 %v4099_v43  ;;  %v3282_v43 = vld [vmem:[%s6457_s1] sm:$0xff] }
  0xc4   :  { %v2130_v37 = vsel %vm1083_vm1, %v2118_v5, %v2120_v33  ;;  %v555_v10 = vsub.f32 %v470_v2, %v538_v19  ;;  %v556_v16 = vsub.f32 %v471_v6, %v538_v19  ;;  %v557_v27 = vsub.f32 %v472_v15, %v538_v19  ;;  %v2011_v15 = vpop.permute.xlu1 %2010  ;;  %v2009_v13 = vpop.permute.xlu0 %2008 }
  0xc5   :  { %v476_v51 = vmul.f32 %v4753_v63, %v6879_v36  ;;  %v2145_v25 = vsub.f32 %v4722_v60, %v2130_v37  ;;  %v2146_v52 = vsub.f32 %v4727_v26, %v2130_v37  ;;  %v558_v41 = vsub.f32 %v473_v17, %v538_v19  ;;  %2207 = vrot.lane.b32.xlu1 %v4652_v4, %s3338_s17 }
  0xc6   :  { %v58_v34 = vand.u32 15, %v3282_v43  ;;  %v4844_v5 = vpack.c.bf16 %v556_v16, %v555_v10  ;;  %v2147_v2 = vsub.f32 %v4732_v35, %v2130_v37  ;;  %v2148_v6 = vsub.f32 %v4738_v29, %v2130_v37  ;;  %617 = vrot.lane.b32.xlu0 %v4647_v42, %s3342_s6 }
  0xc7   :  { %v559_v61 = vsub.f32 %v474_v7, %v538_v19  ;;  %v4848_v57 = vpack.c.bf16 %v2146_v52, %v2145_v25  ;;  %v4850_v60 = vpack.c.bf16 %v558_v41, %v557_v27  ;;  %v560_v26 = vsub.f32 %v475_v46, %v538_v19  ;;  %v6888_v25 = vld [vmem:[#allocation74_spill] sm:$0xff] }
  0xc8   :  { %v2149_v17 = vsub.f32 %v4743_v9, %v2130_v37  ;;  %v4854_v28 = vsel %vm1083_vm1, %v2009_v13, %v2011_v15  ;;  %v4856_v20 = vpack.c.bf16 %v2148_v6, %v2147_v2  ;;  %v2150_v32 = vsub.f32 %v4748_v40, %v2130_v37  ;;  %v6880_v9 = vld [vmem:[#allocation70_spill] sm:$0xff]  ;;  %v840_v36 = vpop.permute.xlu0 %839  ;;  %v6893_v15 = vld [vmem:[#allocation92_spill] sm:$0xff] }
  0xc9   :  { %v4859_v35 = vpack.c.bf16 %v1366_v21, %v1365_v38  ;;  %v4865_v7 = vpack.c.bf16 %v560_v26, %v559_v61  ;;  %v4867_v29 = vpack.c.bf16 %v1731_v55, %v1730_v39  ;;  %v6881_v46 = vcvt.s32.f32 %v6880_v9  ;;  %v3283_v40 = vld [vmem:[%s6457_s1 + $0x10] sm:$0xff]  ;;  %v6884_v21 = vld [vmem:[#allocation72_spill] sm:$0xff]  ;;  %v842_v55 = vpop.permute.xlu1 %841  ;;  %1423 = vrot.lane.b32.xlu1 %v4791_v47, %s3339_s20 }
  0xca   :  { %v60_v53 = vand.u32 15, %v3283_v40  ;;  %v4875_v59 = vpack.c.bf16 %v2150_v32, %v2149_v17  ;;  %v561_v3 = vsub.f32 %v476_v51, %v538_v19  ;;  %v6883_v38 = vcvt.s32.f32 %v6882_v22  ;;  %v6890_v51 = vld [vmem:[#allocation91_spill] sm:$0xff]  ;;  %v4901_v26 = vld.sshfl [vmem:[%s6458_s2] sm:$0x33 pattern:$0x75316420]  ;;  %1041 = vrot.lane.b32.xlu0 %v4659_v24, %s3341_s26 }
  0xcb   :  { %v477_v58 = vmul.f32 %v4753_v63, %v6881_v46  ;;  %v6885_v33 = vcvt.s32.f32 %v6884_v21  ;;  %v6886_v63 = vld [vmem:[#allocation73_spill] sm:$0xff]  ;;  %v6889_v52 = vcvt.s32.f32 %v6888_v25  ;;  %v6891_v43 = vcvt.s32.f32 %v6890_v51  ;;  %6895 = vst [vmem:[#allocation22_spill] sm:$0xff] %v4901_v26  ;;  %v6897_v32 = vld [vmem:[#allocation75_spill] sm:$0xff]  ;;  %v6899_v46 = vld [vmem:[#allocation76_spill] sm:$0xff] }
  0xcc   :  { %v2038_v30 = vmul.f32 %v4707_v0, %v6883_v38  ;;  %v6887_v16 = vcvt.s32.f32 %v6886_v63  ;;  %v4893_v6 = vsel %vm847_vm0, %v840_v36, %v842_v55  ;;  %v6894_v13 = vcvt.s32.f32 %v6893_v15  ;;  %v4922_v22 = vld.sshfl [vmem:[%s6459_s3] sm:$0x33 pattern:$0x75316420]  ;;  %v6905_v21 = vld [vmem:[#allocation94_spill] sm:$0xff]  ;;  %v3284_v55 = vld [vmem:[%s6457_s1 + $0x18] sm:$0xff]  ;;  %v2122_v63 = vpop.permute.xlu0 %2121 }
  0xcd   :  { %v2039_v39 = vmul.f32 %v4707_v0, %v6885_v33  ;;  %v562_v10 = vsub.f32 %v477_v58, %v538_v19  ;;  %v2041_v41 = vmul.f32 %v4854_v28, %v6889_v52  ;;  %v2042_v2 = vmul.f32 %v4854_v28, %v6891_v43  ;;  %6892 = vst [vmem:[#allocation21_spill] sm:$0xff] %v4893_v6  ;;  %v6909_v52 = vld [vmem:[#allocation110_spill] sm:$0xff] }
  0xce   :  { %v2040_v27 = vmul.f32 %v4854_v28, %v6887_v16  ;;  %v2151_v61 = vsub.f32 %v2038_v30, %v2130_v37  ;;  %v2043_v19 = vmul.f32 %v4854_v28, %v6894_v13  ;;  %v6898_v9 = vcvt.s32.f32 %v6897_v32  ;;  %6901 = vst [vmem:[#allocation24_spill] sm:$0xff] %v4922_v22  ;;  %v6913_v13 = vld [vmem:[#allocation7_spill] sm:$0xff]  ;;  %1788 = vrot.lane.b32.xlu0 %v4819_v49, %s3337_s16 }
  0xcf   :  { %v2152_v0 = vsub.f32 %v2039_v39, %v2130_v37  ;;  %v4907_v17 = vpack.c.bf16 %v562_v10, %v561_v3  ;;  %v6900_v58 = vcvt.s32.f32 %v6899_v46  ;;  %v92_v54 = vcvt.s32.f32 %v58_v34  ;;  %v2124_v10 = vpop.permute.xlu1 %2123  ;;  %v6907_v34 = vld [vmem:[#allocation109_spill] sm:$0xff]  ;;  %v6915_v46 = vld [vmem:[#allocation112_spill] sm:$0xff]  ;;  %619 = vrot.lane.b32.xlu1 %v4844_v5, %s3342_s6  ;;  %v6946_v5 = vld [vmem:[#allocation98_spill] sm:$0xff] }
  0xd0   :  { %v4912_v37 = vmul.f32 %v4893_v6, %v6898_v9  ;;  %v6904_v3 = vcvt.s32.f32 %v6903_v11  ;;  %v6906_v33 = vcvt.s32.f32 %v6905_v21  ;;  %v61_v36 = vand.u32 15, %v3284_v55  ;;  %v4981_v4 = vpop.permute.xlu0 %2425 }
  0xd1   :  { %6896 = vst [vmem:[#allocation23_spill] sm:$0xff] %v4907_v17  ;;  %v4917_v40 = vmul.f32 %v4893_v6, %v6900_v58  ;;  %v4924_v38 = vpack.c.bf16 %v2152_v0, %v2151_v61  ;;  %v6908_v16 = vcvt.s32.f32 %v6907_v34  ;;  %v6910_v51 = vcvt.s32.f32 %v6909_v52  ;;  %v6911_v61 = vld [vmem:[#allocation111_spill] sm:$0xff]  ;;  %v6918_v52 = vld [vmem:[#allocation8_spill] sm:$0xff]  ;;  %6920 = vst [vmem:[#allocation19_spill] sm:$0xff] %v4981_v4 }
  0xd2   :  { %v4929_v30 = vmul.f32 %v4893_v6, %v6904_v3  ;;  %v4934_v39 = vmul.f32 %v4893_v6, %v6906_v33  ;;  %v6912_v0 = vcvt.s32.f32 %v6911_v61  ;;  %v4952_v32 = vrot.slane %v4901_v26, %v6913_v13  ;;  %2209 = vrot.lane.b32.xlu0 %v4848_v57, %s3338_s17 }
  0xd3   :  { %6902 = vst [vmem:[#allocation29_spill] sm:$0xff] %v4924_v38  ;;  %v2044_v25 = vmul.f32 %v4854_v28, %v6908_v16  ;;  %v2045_v43 = vmul.f32 %v4854_v28, %v6910_v51  ;;  %v4955_v9 = vsel %vm1083_vm1, %v2122_v63, %v2124_v10  ;;  %v6916_v58 = vcvt.s32.f32 %v6915_v46  ;;  %v954_v51 = vpop.permute.xlu1 %953  ;;  %1043 = vrot.lane.b32.xlu1 %v4698_v45, %s3341_s26  ;;  %v6975_v38 = vld [vmem:[#allocation121_spill] sm:$0xff] }
  0xd4   :  { %v4948_v15 = vmul.f32 %v4893_v6, %v6912_v0  ;;  %6914 = vst [vmem:[#allocation30_spill] sm:$0xff] %v4952_v32  ;;  %v4964_v3 = vrot.slane %v4922_v22, %v6913_v13  ;;  %v94_v21 = vcvt.s32.f32 %v60_v53  ;;  %v2153_v33 = vsub.f32 %v2040_v27, %v4955_v9  ;;  %v6925_v0 = vld [vmem:[#allocation78_spill] sm:$0xff] }
  0xd5   :  { %v4960_v11 = vmul.f32 %v4893_v6, %v6916_v58  ;;  %v2154_v55 = vsub.f32 %v2041_v41, %v4955_v9  ;;  %v2155_v10 = vsub.f32 %v2042_v2, %v4955_v9  ;;  %v1934_v63 = vcvt.s32.f32 %v4624_v56  ;;  %v6955_v22 = vld [vmem:[#allocation82_spill] sm:$0xff] }
  0xd6   :  { %6917 = vst [vmem:[#allocation31_spill] sm:$0xff] %v4964_v3  ;;  %v2156_v34 = vsub.f32 %v2043_v19, %v4955_v9  ;;  %v2157_v16 = vsub.f32 %v2044_v25, %v4955_v9  ;;  %v2158_v53 = vsub.f32 %v2045_v43, %v4955_v9  ;;  %v4979_v42 = vrot.slane %v4952_v32, %v6918_v52  ;;  %v6923_v25 = vld [vmem:[#allocation77_spill] sm:$0xff] }
  0xd7   :  { %v4983_v27 = vpack.c.bf16 %v2154_v55, %v2153_v33  ;;  %v4987_v41 = vrot.slane %v4964_v3, %v6918_v52  ;;  %v95_v56 = vcvt.s32.f32 %v61_v36  ;;  %v6922_v2 = vcvt.s32.f32 %v4601_v31  ;;  %v6928_v31 = vld [vmem:[#allocation95_spill] sm:$0xff]  ;;  %v6942_v3 = vld [vmem:[#allocation80_spill] sm:$0xff]  ;;  %1425 = vrot.lane.b32.xlu0 %v4798_v18, %s3339_s20  ;;  %1790 = vrot.lane.b32.xlu1 %v4821_v23, %s3337_s16 }
  0xd8   :  { %6919 = vst [vmem:[#allocation10_spill] sm:$0xff] %v4979_v42  ;;  %v6924_v43 = vcvt.s32.f32 %v6923_v25  ;;  %v6926_v46 = vcvt.s32.f32 %v6925_v0  ;;  %v5004_v33 = vpack.c.bf16 %v2156_v34, %v2155_v10  ;;  %v5007_v55 = vmul.f32 %v4854_v28, %v1934_v63  ;;  %v6930_v25 = vld [vmem:[#allocation96_spill] sm:$0xff]  ;;  %v6933_v63 = vld [vmem:[#allocation113_spill] sm:$0xff] }
  0xd9   :  { %6921 = vst [vmem:[#allocation20_spill] sm:$0xff] %v4983_v27  ;;  %v4992_v19 = vmul.f32 %v4854_v28, %v6922_v2  ;;  %v6929_v36 = vcvt.s32.f32 %v6928_v31  ;;  %v170_v28 = vmul.f32 %v4979_v42, %v4817_v44  ;;  %v5025_v10 = vpack.c.bf16 %v2158_v53, %v2157_v16  ;;  %v6971_v27 = vld [vmem:[#allocation117_spill] sm:$0xff] }
  0xda   :  { %v4997_v61 = vmul.f32 %v4981_v4, %v6924_v43  ;;  %v5002_v58 = vmul.f32 %v4981_v4, %v6926_v46  ;;  %6927 = vst [vmem:[#allocation27_spill] sm:$0xff] %v5004_v33  ;;  %v6931_v43 = vcvt.s32.f32 %v6930_v25  ;;  %v169_v24 = vmul.f32 %v4979_v42, %v92_v54  ;;  %v6935_v46 = vld [vmem:[#allocation114_spill] sm:$0xff]  ;;  %v5038_v25 = vpop.permute.xlu1 %1258 }
  0xdb   :  { %v5016_v2 = vmul.f32 %v4981_v4, %v6929_v36  ;;  %6932 = vst [vmem:[#allocation28_spill] sm:$0xff] %v5025_v10  ;;  %v6934_v47 = vcvt.s32.f32 %v6933_v63  ;;  %v6936_v31 = vcvt.s32.f32 %v6935_v46  ;;  %6937 = vst [vmem:[#allocation34_spill] sm:$0xff] %v5038_v25  ;;  %v247_v44 = vsub.f32 %v170_v28, %v4987_v41  ;;  %621 = vrot.lane.b32.xlu0 %v4850_v60, %s3342_s6 }
  0xdc   :  { %v5021_v0 = vmul.f32 %v4981_v4, %v6931_v43  ;;  %v956_v43 = vpop.permute.xlu0 %955  ;;  %v5042_v16 = vmul.f32 %v4979_v42, %v94_v21  ;;  %v5045_v54 = vmul.f32 %v4979_v42, %v95_v56  ;;  %v6943_v32 = vcvt.s32.f32 %v6942_v3  ;;  %v6973_v42 = vld [vmem:[#allocation118_spill] sm:$0xff]  ;;  %2211 = vrot.lane.b32.xlu1 %v4856_v20, %s3338_s17  ;;  %v7001_v20 = vld [vmem:[#allocation108_spill] sm:$0xff] }
  0xdd   :  { %v5031_v34 = vmul.f32 %v4981_v4, %v6934_v47  ;;  %v5036_v36 = vmul.f32 %v4981_v4, %v6936_v31  ;;  %v5050_v63 = vsel %vm847_vm0, %v954_v51, %v956_v43  ;;  %v6940_v47 = vld [vmem:[#allocation79_spill] sm:$0xff]  ;;  %v6947_v21 = vcvt.s32.f32 %v6946_v5 }
  0xde   :  { %6938 = vst [vmem:[#allocation35_spill] sm:$0xff] %v5042_v16  ;;  %6939 = vst [vmem:[#allocation36_spill] sm:$0xff] %v5050_v63  ;;  %v6941_v46 = vcvt.s32.f32 %v6940_v47  ;;  %v5060_v28 = vmul.f32 %v5038_v25, %v6943_v32  ;;  %v985_v51 = vsub.f32 %v4912_v37, %v5050_v63  ;;  %v986_v56 = vsub.f32 %v4917_v40, %v5050_v63  ;;  %v6944_v47 = vld [vmem:[#allocation97_spill] sm:$0xff]  ;;  %v5089_v53 = vpop.permute.xlu1 %2790  ;;  %v7005_v16 = vld [vmem:[#allocation14_spill] sm:$0xff] }
  0xdf   :  { %v987_v3 = vsub.f32 %v4929_v30, %v5050_v63  ;;  %v698_v32 = vshra.s32 %v4370_v62, 8  ;;  %v988_v43 = vsub.f32 %v4934_v39, %v5050_v63  ;;  %v5085_v37 = vmul.f32 %v5038_v25, %v6947_v21  ;;  %6948 = vst [vmem:[#allocation37_spill] sm:$0xff] %v5089_v53  ;;  %v6953_v21 = vld [vmem:[#allocation81_spill] sm:$0xff] }
  0xe0   :  { %v5055_v31 = vmul.f32 %v5038_v25, %v6941_v46  ;;  %v6945_v46 = vcvt.s32.f32 %v6944_v47  ;;  %v989_v40 = vsub.f32 %v4948_v15, %v5050_v63  ;;  %v5091_v30 = vpop.permute.xlu0 %2421  ;;  %v5093_v10 = vpack.c.bf16 %v986_v56, %v985_v51  ;;  %v6957_v56 = vld [vmem:[#allocation83_spill] sm:$0xff]  ;;  %1427 = vrot.lane.b32.xlu1 %v4815_v50, %s3339_s20 }
  0xe1   :  { %6949 = vst [vmem:[#allocation15_spill] sm:$0xff] %v5091_v30  ;;  %v990_v39 = vsub.f32 %v4960_v11, %v5050_v63  ;;  %v246_v47 = vsub.f32 %v169_v24, %v4987_v41  ;;  %v6954_v13 = vcvt.s32.f32 %v6953_v21  ;;  %v6956_v26 = vcvt.s32.f32 %v6955_v22  ;;  %v6958_v24 = vld [vmem:[#allocation116_spill] sm:$0xff] }
  0xe2   :  { %v5080_v49 = vmul.f32 %v5038_v25, %v6945_v46  ;;  %6950 = vst [vmem:[#allocation17_spill] sm:$0xff] %v5093_v10  ;;  %v6951_v46 = vld [vmem:[#allocation115_spill] sm:$0xff]  ;;  %v5115_v11 = vmul.f32 %v5089_v53, %v6957_v56  ;;  %v6959_v33 = vcvt.s32.f32 %v6958_v24  ;;  %v6964_v24 = vld [vmem:[#allocation100_spill] sm:$0xff]  ;;  %v6974_v4 = vcvt.s32.f32 %v6973_v42  ;;  %v6978_v42 = vld [vmem:[#allocation122_spill] sm:$0xff] }
  0xe3   :  { %v6952_v52 = vcvt.s32.f32 %v6951_v46  ;;  %v5106_v15 = vmul.f32 %v5091_v30, %v6954_v13  ;;  %v5111_v51 = vmul.f32 %v5091_v30, %v6956_v26  ;;  %v6960_v13 = vld [vmem:[#allocation84_spill] sm:$0xff]  ;;  %v5130_v26 = vpack.c.bf16 %v988_v43, %v987_v3  ;;  %v6966_v10 = vld [vmem:[#allocation103_spill] sm:$0xff] }
  0xe4   :  { %v5120_v46 = vmul.f32 %v5038_v25, %v6959_v33  ;;  %v5128_v22 = vmul.f32 %v5089_v53, %v6960_v13  ;;  %v699_v33 = vshra.s32 %v4381_v12, 8  ;;  %v5145_v45 = vmul.f32 %v5089_v53, %v6966_v10  ;;  %v6967_v13 = vld [vmem:[#allocation104_spill] sm:$0xff]  ;;  %623 = vrot.lane.b32.xlu1 %v4865_v7, %s3342_s6 }
  0xe5   :  { %v5101_v5 = vmul.f32 %v5038_v25, %v6952_v52  ;;  %6961 = vst [vmem:[#allocation11_spill] sm:$0xff] %v5130_v26  ;;  %v6962_v52 = vld [vmem:[#allocation99_spill] sm:$0xff]  ;;  %v6965_v25 = vcvt.s32.f32 %v6964_v24  ;;  %v5149_v3 = vmul.f32 %v5089_v53, %v6967_v13  ;;  %v278_v43 = vpack.c.bf16 %v247_v44, %v246_v47 }
  0xe6   :  { %v6963_v21 = vcvt.s32.f32 %v6962_v52  ;;  %v5151_v52 = vpop.permute.xlu1 %2510  ;;  %v5155_v26 = vpack.c.bf16 %v990_v39, %v989_v40  ;;  %v6972_v24 = vcvt.s32.f32 %v6971_v27  ;;  %v5165_v10 = vmul.f32 %v5091_v30, %v6974_v4  ;;  %v6976_v39 = vld [vmem:[#allocation85_spill] sm:$0xff] }
  0xe7   :  { %v5141_v57 = vmul.f32 %v5091_v30, %v6965_v25  ;;  %6968 = vst [vmem:[#allocation12_spill] sm:$0xff] %v5151_v52  ;;  %v5169_v13 = vmul.f32 %v5089_v53, %v6975_v38  ;;  %v2534_v44 = vsub.f32 %v4997_v61, %v5151_v52  ;;  %v2535_v40 = vsub.f32 %v5002_v58, %v5151_v52  ;;  %v6979_v38 = vld [vmem:[#allocation86_spill] sm:$0xff] }
  0xe8   :  { %v5135_v56 = vmul.f32 %v5091_v30, %v6963_v21  ;;  %v5153_v21 = vpop.permute.xlu0 %1623  ;;  %6970 = vst [vmem:[#allocation26_spill] sm:$0xff] %v5155_v26  ;;  %v5160_v25 = vmul.f32 %v5091_v30, %v6972_v24  ;;  %v6977_v27 = vcvt.s32.f32 %v6976_v39  ;;  %295 = vst.msk [vmem:[#allocation2] sm:$0xff] %vm294_vm2, %v278_v43  ;;  %v5183_v4 = vmul.f32 %v5089_v53, %v6978_v42  ;;  %v6982_v42 = vld [vmem:[#allocation101_spill] sm:$0xff] }
  0xe9   :  { %6969 = vst [vmem:[#allocation25_spill] sm:$0xff] %v5153_v21  ;;  %v6980_v61 = vcvt.s32.f32 %v6979_v38  ;;  %v2536_v24 = vsub.f32 %v5016_v2, %v5151_v52  ;;  %v2537_v43 = vsub.f32 %v5021_v0, %v5151_v52  ;;  %v5198_v39 = vand.u32 15, %v698_v32  ;;  %v6985_v32 = vld [vmem:[#allocation102_spill] sm:$0xff]  ;;  %1047 = vrot.lane.b32.xlu1 %v4806_v1, %s3341_s26 }
  0xea   :  { %v5178_v47 = vmul.f32 %v5153_v21, %v6977_v27  ;;  %v5200_v27 = vpack.c.bf16 %v2535_v40, %v2534_v44  ;;  %v6983_v18 = vcvt.s32.f32 %v6982_v42  ;;  %v2538_v23 = vsub.f32 %v5031_v34, %v5151_v52  ;;  %v5213_v2 = vpop.permute.xlu1 %454  ;;  %v6987_v42 = vld [vmem:[#allocation119_spill] sm:$0xff]  ;;  %v6989_v34 = vld [vmem:[#allocation120_spill] sm:$0xff] }
  0xeb   :  { %v5192_v58 = vmul.f32 %v5153_v21, %v6980_v61  ;;  %v2539_v38 = vsub.f32 %v5036_v36, %v5151_v52  ;;  %v5215_v0 = vpack.c.bf16 %v2537_v43, %v2536_v24  ;;  %v6986_v44 = vcvt.s32.f32 %v6985_v32  ;;  %v6992_v24 = vld [vmem:[#allocation88_spill] sm:$0xff]  ;;  %v6993_v32 = vld [vmem:[#allocation89_spill] sm:$0xff] }
  0xec   :  { %6981 = vst [vmem:[#allocation32_spill] sm:$0xff] %v5200_v27  ;;  %v5205_v26 = vmul.f32 %v5153_v21, %v6983_v18  ;;  %v5211_v61 = vpop.permute.xlu0 %2786  ;;  %v6988_v18 = vcvt.s32.f32 %v6987_v42  ;;  %v6990_v30 = vcvt.s32.f32 %v6989_v34  ;;  %v6991_v27 = vld [vmem:[#allocation87_spill] sm:$0xff]  ;;  %v2305_v1 = vshra.s32 %v4381_v12, 24 }
  0xed   :  { %6984 = vst [vmem:[#allocation33_spill] sm:$0xff] %v5215_v0  ;;  %v5220_v40 = vmul.f32 %v5153_v21, %v6986_v44  ;;  %v5234_v52 = vmul.f32 %v5211_v61, %v6991_v27  ;;  %v5238_v43 = vmul.f32 %v5211_v61, %v6992_v24  ;;  %v6994_v44 = vcvt.s32.f32 %v6993_v32  ;;  %v6997_v24 = vld [vmem:[#allocation106_spill] sm:$0xff]  ;;  %1794 = vrot.lane.b32.xlu1 %v4867_v29, %s3337_s16  ;;  %v7014_v29 = vld [vmem:[#allocation21_spill] sm:$0xff] }
  0xee   :  { %v5225_v53 = vmul.f32 %v5153_v21, %v6988_v18  ;;  %v5230_v36 = vmul.f32 %v5153_v21, %v6990_v30  ;;  %v6995_v30 = vld [vmem:[#allocation90_spill] sm:$0xff]  ;;  %v5258_v32 = vmul.f32 %v5211_v61, %v6997_v24  ;;  %v5264_v18 = vand.u32 15, %v699_v33  ;;  %v6999_v21 = vld [vmem:[#allocation105_spill] sm:$0xff]  ;;  %v5284_v33 = vpop.permute.xlu1 %2506 }
  0xef   :  { %v5243_v42 = vmul.f32 %v5213_v2, %v6994_v44  ;;  %v6996_v27 = vcvt.s32.f32 %v6995_v30  ;;  %v6998_v44 = vld [vmem:[#allocation107_spill] sm:$0xff]  ;;  %v7000_v60 = vcvt.s32.f32 %v6999_v21  ;;  %v7002_v30 = vcvt.s32.f32 %v7001_v20  ;;  %v7004_v24 = vld [vmem:[#allocation13_spill] sm:$0xff] }
  0xf0   :  { %v5262_v0 = vmul.f32 %v5211_v61, %v6998_v44  ;;  %v5276_v63 = vpack.c.bf16 %v2539_v38, %v2538_v23  ;;  %v5280_v6 = vmul.f32 %v5211_v61, %v7004_v24  ;;  %v5282_v44 = vpop.permute.xlu0 %1343  ;;  %v5288_v21 = vmul.f32 %v5211_v61, %v7005_v16 }
  0xf1   :  { %v5254_v34 = vmul.f32 %v5213_v2, %v6996_v27  ;;  %v5269_v17 = vmul.f32 %v5213_v2, %v7000_v60  ;;  %v5274_v27 = vmul.f32 %v5213_v2, %v7002_v30  ;;  %v7006_v20 = vcvt.s32.f32 %v4548_v14 }
  0xf2   :  { %7003 = vst [vmem:[#allocation38_spill] sm:$0xff] %v5276_v63  ;;  %v7007_v38 = vcvt.s32.f32 %v4575_v48  ;;  %v1367_v24 = vsub.f32 %v5055_v31, %v5282_v44  ;;  %v1368_v16 = vsub.f32 %v5060_v28, %v5282_v44  ;;  %v2518_v63 = vsub.f32 %v5106_v15, %v5284_v33 }
  0xf3   :  { %v5295_v23 = vmul.f32 %v5213_v2, %v7006_v20  ;;  %v2519_v14 = vsub.f32 %v5111_v51, %v5284_v33  ;;  %v7008_v20 = vld [vmem:[#allocation18_spill] sm:$0xff]  ;;  %v1369_v48 = vsub.f32 %v5080_v49, %v5282_v44  ;;  %v1370_v31 = vsub.f32 %v5085_v37, %v5282_v44 }
  0xf4   :  { %v5300_v30 = vmul.f32 %v5213_v2, %v7007_v38  ;;  %1045 = vrot.lane.b32.xlu0 %v7008_v20, %s3341_s26  ;;  %v7009_v28 = vsub.f32 %v4992_v19, %v4955_v9  ;;  %v7010_v15 = vsub.f32 %v5007_v55, %v4955_v9  ;;  %v764_v51 = vcvt.s32.f32 %v5198_v39  ;;  %v5335_v37 = vpop.permute.xlu0 %2875  ;;  %v5337_v19 = vpop.permute.xlu1 %1708  ;;  %v7015_v39 = vld [vmem:[#allocation36_spill] sm:$0xff] }
  0xf5   :  { %v5327_v20 = vpack.c.bf16 %v1368_v16, %v1367_v24  ;;  %v5329_v60 = vpack.c.bf16 %v2519_v14, %v2518_v63  ;;  %v2520_v50 = vsub.f32 %v5135_v56, %v5284_v33  ;;  %v2521_v49 = vsub.f32 %v5141_v57, %v5284_v33 }
  0xf6   :  { %v5324_v38 = vpack.c.bf16 %v7010_v15, %v7009_v28  ;;  %v1371_v9 = vsub.f32 %v5101_v5, %v5282_v44  ;;  %v1372_v55 = vsub.f32 %v5120_v46, %v5282_v44  ;;  %v2522_v63 = vsub.f32 %v5160_v25, %v5284_v33 }
  0xf7   :  { %v2523_v24 = vsub.f32 %v5165_v10, %v5284_v33  ;;  %v2899_v56 = vsub.f32 %v5115_v11, %v5335_v37  ;;  %v2900_v57 = vsub.f32 %v5128_v22, %v5335_v37  ;;  %v1732_v16 = vsub.f32 %v5178_v47, %v5337_v19 }
  0xf8   :  { %v1733_v5 = vsub.f32 %v5192_v58, %v5337_v19  ;;  %1792 = vrot.lane.b32.xlu0 %v4827_v8, %s3337_s16  ;;  %v5359_v46 = vpack.c.bf16 %v1370_v31, %v1369_v48  ;;  %v2901_v11 = vsub.f32 %v5145_v45, %v5335_v37  ;;  %v2902_v22 = vsub.f32 %v5149_v3, %v5335_v37  ;;  %v5374_v58 = vpop.permute.xlu0 %2871  ;;  %v5376_v14 = vpop.permute.xlu1 %539 }
  0xf9   :  { %v765_v25 = vcvt.s32.f32 %v5264_v18  ;;  %v5366_v10 = vpack.c.bf16 %v2900_v57, %v2899_v56  ;;  %v5368_v47 = vpack.c.bf16 %v2521_v49, %v2520_v50  ;;  %v1734_v8 = vsub.f32 %v5205_v26, %v5337_v19 }
  0xfa   :  { %v1735_v7 = vsub.f32 %v5220_v40, %v5337_v19  ;;  %v5378_v45 = vpack.c.bf16 %v1733_v5, %v1732_v16  ;;  %v5380_v48 = vpack.c.bf16 %v2902_v22, %v2901_v11  ;;  %v5382_v3 = vpack.c.bf16 %v1372_v55, %v1371_v9 }
  0xfb   :  { %v5384_v18 = vpack.c.bf16 %v2523_v24, %v2522_v63  ;;  %v2883_v31 = vsub.f32 %v5234_v52, %v5374_v58  ;;  %v2884_v26 = vsub.f32 %v5238_v43, %v5374_v58  ;;  %v563_v40 = vsub.f32 %v5243_v42, %v5376_v14 }
  0xfc   :  { %v564_v28 = vsub.f32 %v5254_v34, %v5376_v14  ;;  %2213 = vrot.lane.b32.xlu0 %v4875_v59, %s3338_s17  ;;  %v2885_v15 = vsub.f32 %v5258_v32, %v5374_v58  ;;  %v2886_v52 = vsub.f32 %v5262_v0, %v5374_v58  ;;  %v2903_v43 = vsub.f32 %v5169_v13, %v5335_v37  ;;  %v2013_v49 = vpop.permute.xlu0 %2012  ;;  %v2015_v32 = vpop.permute.xlu1 %2014 }
  0xfd   :  { %v2304_v42 = vshra.s32 %v4370_v62, 24  ;;  %v5405_v50 = vpack.c.bf16 %v1735_v7, %v1734_v8  ;;  %v565_v34 = vsub.f32 %v5269_v17, %v5376_v14  ;;  %v566_v59 = vsub.f32 %v5274_v27, %v5376_v14  ;;  %v3285_v7 = vld [vmem:[%s6457_s1 + $0x20] sm:$0xff] }
  0xfe   :  { %v5412_v9 = vpack.c.bf16 %v2884_v26, %v2883_v31  ;;  %v5414_v0 = vpack.c.bf16 %v564_v28, %v563_v40  ;;  %v5416_v55 = vpack.c.bf16 %v2886_v52, %v2885_v15  ;;  %v2904_v62 = vsub.f32 %v5183_v4, %v5335_v37  ;;  %v7016_v28 = vld [vmem:[#allocation23_spill] sm:$0xff]  ;;  %v7017_v15 = vld [vmem:[#allocation29_spill] sm:$0xff] }
  0xff   :  { %v1736_v13 = vsub.f32 %v5225_v53, %v5337_v19  ;;  %v1737_v17 = vsub.f32 %v5230_v36, %v5337_v19  ;;  %v2887_v12 = vsub.f32 %v5280_v6, %v5374_v58  ;;  %v2888_v27 = vsub.f32 %v5288_v21, %v5374_v58  ;;  %v7011_v53 = vld [vmem:[#allocation35_spill] sm:$0xff]  ;;  %2215 = vrot.lane.b32.xlu1 %v7017_v15, %s3338_s17 }
 0x100   :  { %v5429_v63 = vsel %vm1083_vm1, %v2013_v49, %v2015_v32  ;;  %1429 = vrot.lane.b32.xlu0 %v4859_v35, %s3339_s20  ;;  %v5435_v4 = vpack.c.bf16 %v566_v59, %v565_v34  ;;  %v7012_v36 = vsub.f32 %v7011_v53, %v4987_v41  ;;  %v7013_v6 = vsub.f32 %v5045_v54, %v4987_v41  ;;  %v844_v5 = vpop.permute.xlu0 %843  ;;  %v846_v11 = vpop.permute.xlu1 %845  ;;  %v5476_v59 = vld [vmem:[%s6457_s1 + $0xb0] sm:$0xff]  ;;  %v5482_v49 = vld [vmem:[%s6457_s1 + $0xb8] sm:$0xff] }
 0x101   :  { %v2336_v56 = vand.u32 15, %v2304_v42  ;;  %v5443_v21 = vpack.c.bf16 %v2904_v62, %v2903_v43  ;;  %v567_v57 = vsub.f32 %v5295_v23, %v5376_v14  ;;  %v568_v35 = vsub.f32 %v5300_v30, %v5376_v14  ;;  %v5488_v62 = vld [vmem:[%s6457_s1 + $0x30] sm:$0xff] }
 0x102   :  { %v279_v24 = vpack.c.bf16 %v7013_v6, %v7012_v36  ;;  %v878_v16 = vmul.f32 %v7014_v29, %v764_v51  ;;  %v879_v54 = vmul.f32 %v7014_v29, %v765_v25  ;;  %v2337_v22 = vand.u32 15, %v2305_v1  ;;  %v3286_v51 = vld [vmem:[%s6457_s1 + $0x28] sm:$0xff]  ;;  %v7018_v36 = vld [vmem:[#allocation19_spill] sm:$0xff] }
 0x103   :  { %v2370_v8 = vcvt.s32.f32 %v2336_v56  ;;  %v62_v23 = vand.u32 15, %v3285_v7  ;;  %v5457_v31 = vpack.c.bf16 %v1737_v17, %v1736_v13  ;;  %v5459_v30 = vpack.c.bf16 %v2888_v27, %v2887_v12 }
 0x104   :  { %296 = vst.msk [vmem:[#allocation2 + $0x18] sm:$0xff] %vm294_vm2, %v279_v24  ;;  %v991_v26 = vsub.f32 %v878_v16, %v7015_v39  ;;  %v63_v40 = vand.u32 15, %v3286_v51  ;;  %v5466_v25 = vsel %vm847_vm0, %v844_v5, %v846_v11  ;;  %625 = vrot.lane.b32.xlu0 %v7016_v28, %s3342_s6  ;;  %v992_v52 = vsub.f32 %v879_v54, %v7015_v39  ;;  %v2126_v17 = vpop.permute.xlu0 %2125  ;;  %v2128_v12 = vpop.permute.xlu1 %2127  ;;  %v7019_v24 = vld [vmem:[#allocation10_spill] sm:$0xff]  ;;  %v7020_v54 = vld [vmem:[#allocation20_spill] sm:$0xff] }
 0x105   :  { %v2371_v43 = vcvt.s32.f32 %v2337_v22  ;;  %v96_v42 = vcvt.s32.f32 %v62_v23  ;;  %v1137_v1 = vshra.s32 %v5476_v59, 12  ;;  %v1138_v32 = vshra.s32 %v5482_v49, 12  ;;  %v7021_v22 = vld [vmem:[#allocation17_spill] sm:$0xff] }
 0x106   :  { %v97_v34 = vcvt.s32.f32 %v63_v40  ;;  %v2288_v13 = vshra.s32 %v5488_v62, 24  ;;  %v5491_v27 = vpack.c.bf16 %v568_v35, %v567_v57  ;;  %v5493_v53 = vpack.c.bf16 %v992_v52, %v991_v26  ;;  %1049 = vrot.lane.b32.xlu1 %v7021_v22, %s3341_s26  ;;  %v7022_v57 = vld [vmem:[#allocation12_spill] sm:$0xff] }
 0x107   :  { %v2455_v6 = vmul.f32 %v7018_v36, %v2370_v8  ;;  %v173_v56 = vmul.f32 %v7019_v24, %v96_v42  ;;  %v2456_v29 = vmul.f32 %v7018_v36, %v2371_v43  ;;  %v1169_v5 = vand.u32 15, %v1137_v1  ;;  %v5508_v8 = vld [vmem:[%s6457_s1 + $0x38] sm:$0xff]  ;;  %v7023_v36 = vld [vmem:[#allocation34_spill] sm:$0xff] }
 0x108   :  { %v174_v16 = vmul.f32 %v7019_v24, %v97_v34  ;;  %v1170_v11 = vand.u32 15, %v1138_v32  ;;  %2217 = vrot.lane.b32.xlu0 %v7020_v54, %s3338_s17  ;;  %v2289_v23 = vshra.s32 %v5508_v8, 24  ;;  %v2320_v39 = vand.u32 15, %v2288_v13  ;;  %v5513_v15 = vpop.permute.xlu0 %2427  ;;  %v958_v52 = vpop.permute.xlu1 %957 }
 0x109   :  { %v2540_v35 = vsub.f32 %v2455_v6, %v7022_v57  ;;  %v250_v7 = vsub.f32 %v173_v56, %v4987_v41  ;;  %v1203_v51 = vcvt.s32.f32 %v1169_v5  ;;  %v3231_v28 = vshrl.u32 %v5476_v59, 28  ;;  %v7024_v5 = vld [vmem:[#allocation32_spill] sm:$0xff] }
 0x10a   :  { %v251_v26 = vsub.f32 %v174_v16, %v4987_v41  ;;  %v1204_v40 = vcvt.s32.f32 %v1170_v11  ;;  %v2541_v43 = vsub.f32 %v2456_v29, %v7022_v57  ;;  %v2321_v42 = vand.u32 15, %v2289_v23  ;;  %1431 = vrot.lane.b32.xlu1 %v5327_v20, %s3339_s20 }
 0x10b   :  { %v2354_v34 = vcvt.s32.f32 %v2320_v39  ;;  %v3232_v1 = vshrl.u32 %v5482_v49, 28  ;;  %v1288_v6 = vmul.f32 %v7023_v36, %v1203_v51  ;;  %v2735_v56 = vcvt.s32.f32 %v3231_v28  ;;  %v7026_v51 = vld [vmem:[#allocation37_spill] sm:$0xff] }
 0x10c   :  { %v280_v32 = vpack.c.bf16 %v251_v26, %v250_v7  ;;  %v1289_v13 = vmul.f32 %v7023_v36, %v1204_v40  ;;  %v5520_v16 = vsel %vm1083_vm1, %v2126_v17, %v2128_v12  ;;  %2598 = vrot.lane.b32.xlu0 %v7024_v5, %s3336_s13  ;;  %v2355_v29 = vcvt.s32.f32 %v2321_v42  ;;  %v7025_v7 = vld [vmem:[#allocation15_spill] sm:$0xff]  ;;  %v960_v12 = vpop.permute.xlu0 %959  ;;  %v5532_v39 = vpop.permute.xlu1 %1260 }
 0x10d   :  { %v2736_v11 = vcvt.s32.f32 %v3232_v1  ;;  %v1502_v54 = vshra.s32 %v5476_v59, 16  ;;  %v1373_v22 = vsub.f32 %v1288_v6, %v5282_v44  ;;  %v2439_v23 = vmul.f32 %v7025_v7, %v2354_v34 }
 0x10e   :  { %297 = vst.msk [vmem:[#allocation2 + $0x30] sm:$0xff] %vm294_vm2, %v280_v32  ;;  %v1374_v57 = vsub.f32 %v1289_v13, %v5282_v44  ;;  %v1503_v17 = vshra.s32 %v5482_v49, 16  ;;  %v5534_v26 = vpack.c.bf16 %v2541_v43, %v2540_v35  ;;  %v2440_v20 = vmul.f32 %v7025_v7, %v2355_v29  ;;  %2963 = vrot.lane.b32.xlu1 %v5366_v10, %s3340_s21 }
 0x10f   :  { %v2820_v40 = vmul.f32 %v7026_v51, %v2735_v56  ;;  %v1534_v28 = vand.u32 15, %v1502_v54  ;;  %v5539_v42 = vsel %vm847_vm0, %v958_v52, %v960_v12  ;;  %v2524_v1 = vsub.f32 %v2439_v23, %v5284_v33 }
 0x110   :  { %v2821_v44 = vmul.f32 %v7026_v51, %v2736_v11  ;;  %v1535_v34 = vand.u32 15, %v1503_v17  ;;  %2582 = vrot.lane.b32.xlu0 %v5329_v60, %s3336_s13  ;;  %v5547_v35 = vpack.c.bf16 %v1374_v57, %v1373_v22  ;;  %v2525_v43 = vsub.f32 %v2440_v20, %v5284_v33  ;;  %v5554_v5 = vpop.permute.xlu0 %2423  ;;  %v5556_v60 = vpop.permute.xlu1 %2792  ;;  %v7027_v11 = vld [vmem:[#allocation25_spill] sm:$0xff] }
 0x111   :  { %v1568_v32 = vcvt.s32.f32 %v1534_v28  ;;  %v3215_v36 = vshrl.u32 %v5488_v62, 28  ;;  %v3216_v6 = vshrl.u32 %v5508_v8, 28  ;;  %v333_v13 = vshra.s32 %v5476_v59, 4  ;;  %v5565_v59 = vld [vmem:[%s6457_s1 + $0xc0] sm:$0xff] }
 0x112   :  { %v1569_v52 = vcvt.s32.f32 %v1535_v34  ;;  %v334_v56 = vshra.s32 %v5482_v49, 4  ;;  %v2905_v10 = vsub.f32 %v2820_v40, %v5335_v37  ;;  %v2906_v29 = vsub.f32 %v2821_v44, %v5335_v37  ;;  %2947 = vrot.lane.b32.xlu1 %v5412_v9, %s3340_s21 }
 0x113   :  { %v1653_v33 = vmul.f32 %v7027_v11, %v1568_v32  ;;  %v2719_v54 = vcvt.s32.f32 %v3215_v36  ;;  %v2720_v57 = vcvt.s32.f32 %v3216_v6  ;;  %v365_v7 = vand.u32 15, %v333_v13 }
 0x114   :  { %v1654_v22 = vmul.f32 %v7027_v11, %v1569_v52  ;;  %v366_v23 = vand.u32 15, %v334_v56  ;;  %1796 = vrot.lane.b32.xlu0 %v5378_v45, %s3337_s16  ;;  %v5571_v37 = vpack.c.bf16 %v2525_v43, %v2524_v1  ;;  %v64_v17 = vand.u32 15, %v5488_v62  ;;  %v5583_v45 = vld [vmem:[%s6457_s1 + $0xc8] sm:$0xff]  ;;  %v5585_v9 = vpop.permute.xlu0 %1625  ;;  %v5587_v1 = vpop.permute.xlu1 %2512  ;;  %v7028_v52 = vld [vmem:[#allocation27_spill] sm:$0xff] }
 0x115   :  { %v1738_v49 = vsub.f32 %v1653_v33, %v5337_v19  ;;  %v65_v12 = vand.u32 15, %v5508_v8  ;;  %v5578_v51 = vmul.f32 %v5211_v61, %v2719_v54  ;;  %v399_v40 = vcvt.s32.f32 %v365_v7 }
 0x116   :  { %v1739_v20 = vsub.f32 %v1654_v22, %v5337_v19  ;;  %v400_v28 = vcvt.s32.f32 %v366_v23  ;;  %v5589_v44 = vpack.c.bf16 %v2906_v29, %v2905_v10  ;;  %v98_v62 = vcvt.s32.f32 %v64_v17  ;;  %2219 = vrot.lane.b32.xlu1 %v7028_v52, %s3338_s17  ;;  %v7029_v17 = vld [vmem:[#allocation11_spill] sm:$0xff] }
 0x117   :  { %v99_v8 = vcvt.s32.f32 %v65_v12  ;;  %v1869_v19 = vshra.s32 %v5565_v59, 20  ;;  %v2805_v43 = vmul.f32 %v5211_v61, %v2720_v57  ;;  %v2889_v32 = vsub.f32 %v5578_v51, %v5374_v58  ;;  %v7030_v12 = vld [vmem:[#allocation33_spill] sm:$0xff] }
 0x118   :  { %v5592_v34 = vpack.c.bf16 %v1739_v20, %v1738_v49  ;;  %v484_v36 = vmul.f32 %v5213_v2, %v399_v40  ;;  %627 = vrot.lane.b32.xlu0 %v5414_v0, %s3342_s6  ;;  %v175_v6 = vmul.f32 %v7019_v24, %v98_v62  ;;  %v1870_v56 = vshra.s32 %v5583_v45, 20  ;;  %v5609_v54 = vpop.permute.xlu0 %2788  ;;  %v5611_v0 = vpop.permute.xlu1 %456 }
 0x119   :  { %v176_v13 = vmul.f32 %v7019_v24, %v99_v8  ;;  %v1901_v10 = vand.u32 15, %v1869_v19  ;;  %v2890_v61 = vsub.f32 %v2805_v43, %v5374_v58  ;;  %v485_v29 = vmul.f32 %v5213_v2, %v400_v28 }
 0x11a   :  { %v569_v11 = vsub.f32 %v484_v36, %v5376_v14  ;;  %v700_v33 = vshra.s32 %v5565_v59, 8  ;;  %v252_v22 = vsub.f32 %v175_v6, %v4987_v41  ;;  %v1902_v24 = vand.u32 15, %v1870_v56  ;;  %2600 = vrot.lane.b32.xlu1 %v7030_v12, %s3336_s13 }
 0x11b   :  { %v253_v57 = vsub.f32 %v176_v13, %v4987_v41  ;;  %v1935_v7 = vcvt.s32.f32 %v1901_v10  ;;  %v570_v23 = vsub.f32 %v485_v29, %v5376_v14  ;;  %v701_v58 = vshra.s32 %v5583_v45, 8 }
 0x11c   :  { %v732_v49 = vand.u32 15, %v700_v33  ;;  %v2306_v2 = vshra.s32 %v5565_v59, 24  ;;  %1051 = vrot.lane.b32.xlu0 %v7029_v17, %s3341_s26  ;;  %v1936_v51 = vcvt.s32.f32 %v1902_v24  ;;  %v2307_v41 = vshra.s32 %v5583_v45, 24  ;;  %v5625_v19 = vpop.permute.xlu0 %1345  ;;  %v5627_v43 = vpop.permute.xlu1 %2508 }
 0x11d   :  { %v281_v20 = vpack.c.bf16 %v253_v57, %v252_v22  ;;  %v2048_v40 = vmul.f32 %v5429_v63, %v1935_v7  ;;  %v733_v28 = vand.u32 15, %v701_v58  ;;  %v1139_v8 = vshra.s32 %v5565_v59, 12  ;;  %v5642_v7 = vld [vmem:[%s6457_s1 + $0x40] sm:$0xff] }
 0x11e   :  { %v766_v62 = vcvt.s32.f32 %v732_v49  ;;  %v2338_v14 = vand.u32 15, %v2306_v2  ;;  %v2049_v36 = vmul.f32 %v5429_v63, %v1936_v51  ;;  %v2339_v6 = vand.u32 15, %v2307_v41  ;;  %2584 = vrot.lane.b32.xlu1 %v5368_v47, %s3336_s13  ;;  %v5659_v41 = vld [vmem:[%s6457_s1 + $0x48] sm:$0xff] }
 0x11f   :  { %298 = vst.msk [vmem:[#allocation2 + $0x48] sm:$0xff] %vm294_vm2, %v281_v20  ;;  %v2161_v52 = vsub.f32 %v2048_v40, %v5520_v16  ;;  %v1140_v13 = vshra.s32 %v5583_v45, 12  ;;  %v767_v56 = vcvt.s32.f32 %v733_v28  ;;  %v1171_v33 = vand.u32 15, %v1139_v8 }
 0x120   :  { %v880_v10 = vmul.f32 %v5466_v25, %v766_v62  ;;  %v2372_v29 = vcvt.s32.f32 %v2338_v14  ;;  %1433 = vrot.lane.b32.xlu0 %v5359_v46, %s3339_s20  ;;  %v2162_v22 = vsub.f32 %v2049_v36, %v5520_v16  ;;  %v2373_v57 = vcvt.s32.f32 %v2339_v6  ;;  %v5649_v47 = vpop.permute.xlu0 %2877  ;;  %v5651_v12 = vpop.permute.xlu1 %1710  ;;  %v7031_v36 = vld [vmem:[#allocation22_spill] sm:$0xff] }
 0x121   :  { %v1172_v24 = vand.u32 15, %v1140_v13  ;;  %v66_v58 = vand.u32 15, %v5642_v7  ;;  %v5645_v49 = vpack.c.bf16 %v2890_v61, %v2889_v32  ;;  %v881_v2 = vmul.f32 %v5466_v25, %v767_v56  ;;  %v7032_v56 = vld [vmem:[#allocation24_spill] sm:$0xff] }
 0x122   :  { %v2457_v46 = vmul.f32 %v5513_v15, %v2372_v29  ;;  %v1205_v17 = vcvt.s32.f32 %v1171_v33  ;;  %v5653_v20 = vpack.c.bf16 %v570_v23, %v569_v11  ;;  %v993_v51 = vsub.f32 %v880_v10, %v5539_v42  ;;  %1798 = vrot.lane.b32.xlu1 %v5405_v50, %s3337_s16 }
 0x123   :  { %v1206_v40 = vcvt.s32.f32 %v1172_v24  ;;  %v67_v32 = vand.u32 15, %v5659_v41  ;;  %v5662_v61 = vpack.c.bf16 %v2162_v22, %v2161_v52  ;;  %v994_v28 = vsub.f32 %v881_v2, %v5539_v42 }
 0x124   :  { %v2458_v62 = vmul.f32 %v5513_v15, %v2373_v57  ;;  %v2542_v14 = vsub.f32 %v2457_v46, %v5587_v1  ;;  %2965 = vrot.lane.b32.xlu0 %v5380_v48, %s3340_s21  ;;  %v1290_v11 = vmul.f32 %v5532_v39, %v1205_v17  ;;  %v100_v8 = vcvt.s32.f32 %v66_v58  ;;  %v5679_v50 = vpop.permute.xlu0 %2873  ;;  %v5681_v29 = vpop.permute.xlu1 %541  ;;  %v7033_v57 = vld [vmem:[#allocation7_spill] sm:$0xff] }
 0x125   :  { %v1291_v23 = vmul.f32 %v5532_v39, %v1206_v40  ;;  %v132_v52 = vcombine.high %v7031_v36, %v7031_v36  ;;  %v101_v13 = vcvt.s32.f32 %v67_v32  ;;  %v209_v48 = vcombine.high %v7032_v56, %v7032_v56 }
 0x126   :  { %v2543_v6 = vsub.f32 %v2458_v62, %v5587_v1  ;;  %v2290_v10 = vshra.s32 %v5642_v7, 24  ;;  %v1375_v33 = vsub.f32 %v1290_v11, %v5625_v19  ;;  %v2291_v58 = vshra.s32 %v5659_v41, 24  ;;  %629 = vrot.lane.b32.xlu1 %v5435_v4, %s3342_s6  ;;  %v7037_v62 = vld [vmem:[#allocation8_spill] sm:$0xff] }
 0x127   :  { %v1376_v22 = vsub.f32 %v1291_v23, %v5625_v19  ;;  %v5686_v24 = vrot.slane %v132_v52, %v7033_v57  ;;  %v5690_v2 = vrot.slane %v209_v48, %v7033_v57  ;;  %v3233_v17 = vshrl.u32 %v5565_v59, 28 }
 0x128   :  { %v2322_v46 = vand.u32 15, %v2290_v10  ;;  %v3234_v40 = vshrl.u32 %v5583_v45, 28  ;;  %2949 = vrot.lane.b32.xlu0 %v5416_v55, %s3340_s21  ;;  %v5698_v32 = vpack.c.bf16 %v994_v28, %v993_v51  ;;  %v2323_v23 = vand.u32 15, %v2291_v58  ;;  %v1416_v10 = vpop.permute.xlu1 %1415  ;;  %v1034_v57 = vpop.permute.xlu0 %1033 }
 0x129   :  { %7034 = vst [vmem:[#allocation39_spill] sm:$0xff] %v5686_v24  ;;  %7035 = vst [vmem:[#allocation16_spill] sm:$0xff] %v5690_v2  ;;  %v5702_v11 = vrot.slane %v5686_v24, %v7037_v62  ;;  %v1504_v36 = vshra.s32 %v5565_v59, 16  ;;  %v5707_v52 = vrot.slane %v5690_v2, %v7037_v62  ;;  %v2737_v48 = vcvt.s32.f32 %v3233_v17  ;;  %v7038_v17 = vld [vmem:[#allocation28_spill] sm:$0xff] }
 0x12a   :  { %7036 = vst [vmem:[#allocation40_spill] sm:$0xff] %v5698_v32  ;;  %v2356_v56 = vcvt.s32.f32 %v2322_v46  ;;  %v2738_v55 = vcvt.s32.f32 %v3234_v40  ;;  %v2357_v28 = vcvt.s32.f32 %v2323_v23  ;;  %v1505_v24 = vshra.s32 %v5583_v45, 16  ;;  %1084 = vst.msk [vmem:[#allocation2 + $0x8] sm:$0xff] %vm1083_vm1, %v1034_v57  ;;  %v7039_v40 = vld [vmem:[#allocation26_spill] sm:$0xff] }
 0x12b   :  { %v177_v4 = vmul.f32 %v5702_v11, %v100_v8  ;;  %v178_v51 = vmul.f32 %v5702_v11, %v101_v13  ;;  %v5713_v58 = vpack.c.bf16 %v2543_v6, %v2542_v14  ;;  %v5715_v32 = vpack.c.bf16 %v1376_v22, %v1375_v33  ;;  %1053 = vrot.lane.b32.xlu1 %v7039_v40, %s3341_s26 }
 0x12c   :  { %v2441_v2 = vmul.f32 %v5554_v5, %v2356_v56  ;;  %v1536_v46 = vand.u32 15, %v1504_v36  ;;  %2221 = vrot.lane.b32.xlu0 %v7038_v17, %s3338_s17  ;;  %1464 = vst.msk [vmem:[#allocation2 + $0x8] sm:$0xff] %vm1463_vm3, %v1416_v10  ;;  %v2822_v14 = vmul.f32 %v5556_v60, %v2737_v48  ;;  %v1537_v6 = vand.u32 15, %v1505_v24  ;;  %v1781_v56 = vpop.permute.xlu0 %1780  ;;  %v612_v17 = vpop.permute.xlu1 %611  ;;  %v5734_v48 = vld [vmem:[%s6457_s1 + $0xd0] sm:$0xff] }
 0x12d   :  { %v254_v8 = vsub.f32 %v177_v4, %v5707_v52  ;;  %v255_v13 = vsub.f32 %v178_v51, %v5707_v52  ;;  %v2442_v33 = vmul.f32 %v5554_v5, %v2357_v28  ;;  %v2823_v23 = vmul.f32 %v5556_v60, %v2738_v55  ;;  %1829 = vst.msk [vmem:[#allocation2 + $0x8] sm:$0xff] %vm1828_vm4, %v1781_v56  ;;  %v7040_v28 = vld [vmem:[#allocation38_spill] sm:$0xff] }
 0x12e   :  { %v2526_v22 = vsub.f32 %v2441_v2, %v5627_v43  ;;  %v1570_v36 = vcvt.s32.f32 %v1536_v46  ;;  %v2907_v40 = vsub.f32 %v2822_v14, %v5649_v47  ;;  %v1571_v10 = vcvt.s32.f32 %v1537_v6  ;;  %660 = vst.msk [vmem:[#allocation2] sm:$0xff] %vm659_vm5, %v612_v17 }
 0x12f   :  { %v282_v62 = vpack.c.bf16 %v255_v13, %v254_v8  ;;  %v3217_v4 = vshrl.u32 %v5642_v7, 28  ;;  %v2908_v24 = vsub.f32 %v2823_v23, %v5649_v47  ;;  %v3218_v55 = vshrl.u32 %v5659_v41, 28  ;;  %v5745_v7 = vld [vmem:[%s6457_s1 + $0xd8] sm:$0xff]  ;;  %1082 = vst.msk [vmem:[#allocation2] sm:$0xff] %vm1081_vm6, %v1034_v57  ;;  %1435 = vrot.lane.b32.xlu1 %v5382_v3, %s3339_s20 }
 0x130   :  { %v1655_v2 = vmul.f32 %v5585_v9, %v1570_v36  ;;  %v335_v51 = vshra.s32 %v5565_v59, 4  ;;  %2602 = vrot.lane.b32.xlu0 %v7040_v28, %s3336_s13  ;;  %v2527_v46 = vsub.f32 %v2442_v33, %v5627_v43  ;;  %v1656_v41 = vmul.f32 %v5585_v9, %v1571_v10  ;;  %v2202_v23 = vpop.permute.xlu0 %2201  ;;  %v1036_v36 = vpop.permute.xlu1 %1035 }
 0x131   :  { %299 = vst.msk [vmem:[#allocation2 + $0x60] sm:$0xff] %vm294_vm2, %v282_v62  ;;  %v2721_v59 = vcvt.s32.f32 %v3217_v4  ;;  %v336_v8 = vshra.s32 %v5583_v45, 4  ;;  %v2722_v14 = vcvt.s32.f32 %v3218_v55  ;;  %v1871_v57 = vshra.s32 %v5734_v48, 20  ;;  %v5768_v4 = vld [vmem:[%s6457_s1 + $0x50] sm:$0xff] }
 0x132   :  { %v1740_v13 = vsub.f32 %v1655_v2, %v5651_v12  ;;  %v367_v6 = vand.u32 15, %v335_v51  ;;  %v1741_v56 = vsub.f32 %v1656_v41, %v5651_v12  ;;  %v1872_v33 = vshra.s32 %v5745_v7, 20  ;;  %2250 = vst.msk [vmem:[#allocation2 + $0x8] sm:$0xff] %vm2249_vm7, %v2202_v23 }
 0x133   :  { %v2806_v3 = vmul.f32 %v5609_v54, %v2721_v59  ;;  %v368_v62 = vand.u32 15, %v336_v8  ;;  %2251 = vst.msk [vmem:[#allocation2 + $0x10] sm:$0xff] %vm847_vm0, %v2202_v23  ;;  %v2807_v45 = vmul.f32 %v5609_v54, %v2722_v14  ;;  %v1903_v10 = vand.u32 15, %v1871_v57  ;;  %2967 = vrot.lane.b32.xlu1 %v5443_v21, %s3340_s21 }
 0x134   :  { %1086 = vst.msk [vmem:[#allocation2 + $0x20] sm:$0xff] %vm1083_vm1, %v1036_v36  ;;  %v401_v17 = vcvt.s32.f32 %v367_v6  ;;  %v68_v2 = vand.u32 15, %v5768_v4  ;;  %2586 = vrot.lane.b32.xlu0 %v5384_v18, %s3336_s13  ;;  %v5775_v55 = vpack.c.bf16 %v2908_v24, %v2907_v40  ;;  %v1904_v41 = vand.u32 15, %v1872_v33  ;;  %v5784_v6 = vld [vmem:[%s6457_s1 + $0x58] sm:$0xff]  ;;  %v1418_v57 = vpop.permute.xlu0 %1417  ;;  %v1783_v21 = vpop.permute.xlu1 %1782 }
 0x135   :  { %v2891_v51 = vsub.f32 %v2806_v3, %v5679_v50  ;;  %v402_v28 = vcvt.s32.f32 %v368_v62  ;;  %v5778_v59 = vpack.c.bf16 %v2527_v46, %v2526_v22  ;;  %v2892_v8 = vsub.f32 %v2807_v45, %v5679_v50  ;;  %1465 = vst.msk [vmem:[#allocation2 + $0x20] sm:$0xff] %vm1463_vm3, %v1418_v57 }
 0x136   :  { %v1937_v14 = vcvt.s32.f32 %v1903_v10  ;;  %v69_v18 = vand.u32 15, %v5784_v6  ;;  %v5788_v40 = vmul.f32 %v5611_v0, %v401_v17  ;;  %v1938_v24 = vcvt.s32.f32 %v1904_v41  ;;  %1830 = vst.msk [vmem:[#allocation2 + $0x20] sm:$0xff] %vm1828_vm4, %v1783_v21 }
 0x137   :  { %v102_v23 = vcvt.s32.f32 %v68_v2  ;;  %v702_v22 = vshra.s32 %v5734_v48, 8  ;;  %v5792_v46 = vpack.c.bf16 %v1741_v56, %v1740_v13  ;;  %v5794_v3 = vpack.c.bf16 %v2892_v8, %v2891_v51  ;;  %2951 = vrot.lane.b32.xlu1 %v5459_v30, %s3340_s21 }
 0x138   :  { %v487_v62 = vmul.f32 %v5611_v0, %v402_v28  ;;  %v103_v33 = vcvt.s32.f32 %v69_v18  ;;  %1800 = vrot.lane.b32.xlu0 %v5457_v31, %s3337_s16  ;;  %v571_v45 = vsub.f32 %v5788_v40, %v5681_v29  ;;  %v5805_v17 = vmul.f32 %v5429_v63, %v1937_v14  ;;  %v614_v28 = vpop.permute.xlu0 %613  ;;  %v2204_v41 = vpop.permute.xlu1 %2203 }
 0x139   :  { %v179_v13 = vmul.f32 %v5702_v11, %v102_v23  ;;  %v703_v56 = vshra.s32 %v5745_v7, 8  ;;  %v734_v51 = vand.u32 15, %v702_v22  ;;  %v2308_v31 = vshra.s32 %v5734_v48, 24  ;;  %v3015_v30 = vld [vmem:[#allocation2 + $0x8] sm:$0xff]  ;;  %661 = vst.msk [vmem:[#allocation2 + $0x18] sm:$0xff] %vm659_vm5, %v614_v28  ;;  %v3014_v22 = vld [vmem:[#allocation2] sm:$0xff] }
 0x13a   :  { %v572_v10 = vsub.f32 %v487_v62, %v5681_v29  ;;  %v180_v2 = vmul.f32 %v5702_v11, %v103_v33  ;;  %v5813_v8 = vmul.f32 %v5429_v63, %v1938_v24  ;;  %2252 = vst.msk [vmem:[#allocation2 + $0x20] sm:$0xff] %vm2249_vm7, %v2204_v41  ;;  %3089 = vmatprep.subr.bf16.mxu0 %v3015_v30  ;;  %v2309_v23 = vshra.s32 %v5745_v7, 24 }
 0x13b   :  { %v256_v18 = vsub.f32 %v179_v13, %v5707_v52  ;;  %v735_v57 = vand.u32 15, %v703_v56  ;;  %2253 = vst.msk [vmem:[#allocation2 + $0x28] sm:$0xff] %vm847_vm0, %v2204_v41  ;;  %v768_v40 = vcvt.s32.f32 %v734_v51  ;;  %v2340_v24 = vand.u32 15, %v2308_v31  ;;  %2223 = vrot.lane.b32.xlu1 %v5324_v38, %s3338_s17  ;;  %3090 = vmatpush1.bf16.msra.mxu0 %v3014_v22 }
 0x13c   :  { %v257_v21 = vsub.f32 %v180_v2, %v5707_v52  ;;  %1085 = vst.msk [vmem:[#allocation2 + $0x18] sm:$0xff] %vm1081_vm6, %v1036_v36  ;;  %631 = vrot.lane.b32.xlu0 %v5491_v27, %s3342_s6  ;;  %v2164_v62 = vsub.f32 %v5813_v8, %v5520_v16  ;;  %v1141_v13 = vshra.s32 %v5734_v48, 12  ;;  %v1142_v56 = vshra.s32 %v5745_v7, 12  ;;  %v1038_v28 = vpop.permute.xlu0 %1037  ;;  %v1420_v27 = vpop.permute.xlu1 %1419 }
 0x13d   :  { %v769_v33 = vcvt.s32.f32 %v735_v57  ;;  %v882_v51 = vmul.f32 %v5466_v25, %v768_v40  ;;  %v2341_v36 = vand.u32 15, %v2309_v23  ;;  %v2374_v31 = vcvt.s32.f32 %v2340_v24  ;;  %1088 = vst.msk [vmem:[#allocation2 + $0x38] sm:$0xff] %vm1083_vm1, %v1038_v28 }
 0x13e   :  { %v283_v2 = vpack.c.bf16 %v257_v21, %v256_v18  ;;  %v1173_v38 = vand.u32 15, %v1141_v13  ;;  %v1174_v30 = vand.u32 15, %v1142_v56  ;;  %v2292_v14 = vshra.s32 %v5768_v4, 24  ;;  %1466 = vst.msk [vmem:[#allocation2 + $0x38] sm:$0xff] %vm1463_vm3, %v1420_v27 }
 0x13f   :  { %v883_v41 = vmul.f32 %v5466_v25, %v769_v33  ;;  %v995_v8 = vsub.f32 %v882_v51, %v5539_v42  ;;  %v2375_v57 = vcvt.s32.f32 %v2341_v36  ;;  %v2459_v18 = vmul.f32 %v5513_v15, %v2374_v31  ;;  %2604 = vrot.lane.b32.xlu1 %v5534_v26, %s3336_s13 }
 0x140   :  { %300 = vst.msk [vmem:[#allocation2 + $0x78] sm:$0xff] %vm294_vm2, %v283_v2  ;;  %v2293_v21 = vshra.s32 %v5784_v6, 24  ;;  %1055 = vrot.lane.b32.xlu0 %v5493_v53, %s3341_s26  ;;  %v1207_v23 = vcvt.s32.f32 %v1173_v38  ;;  %v1208_v24 = vcvt.s32.f32 %v1174_v30  ;;  %v2324_v22 = vand.u32 15, %v2292_v14  ;;  %v5852_v2 = vld [vmem:[%s6457_s1 + $0x60] sm:$0xff]  ;;  %v1785_v51 = vpop.permute.xlu0 %1784  ;;  %v616_v36 = vpop.permute.xlu1 %615  ;;  %v5868_v30 = vld [vmem:[%s6457_s1 + $0x68] sm:$0xff] }
 0x141   :  { %v996_v40 = vsub.f32 %v883_v41, %v5539_v42  ;;  %v5846_v33 = vpack.c.bf16 %v572_v10, %v571_v45  ;;  %v2460_v13 = vmul.f32 %v5513_v15, %v2375_v57  ;;  %v70_v53 = vand.u32 15, %v5852_v2  ;;  %v3018_v26 = vld [vmem:[#allocation2 + $0x20] sm:$0xff]  ;;  %1831 = vst.msk [vmem:[#allocation2 + $0x38] sm:$0xff] %vm1828_vm4, %v1785_v51 }
 0x142   :  { %v2325_v56 = vand.u32 15, %v2293_v21  ;;  %v2544_v31 = vsub.f32 %v2459_v18, %v5587_v1  ;;  %v5857_v27 = vmul.f32 %v5532_v39, %v1207_v23  ;;  %v5860_v45 = vmul.f32 %v5532_v39, %v1208_v24  ;;  %662 = vst.msk [vmem:[#allocation2 + $0x30] sm:$0xff] %vm659_vm5, %v616_v36  ;;  %3091 = vmatprep.subr.bf16.mxu0 %v3018_v26 }
 0x143   :  { %v2358_v10 = vcvt.s32.f32 %v2324_v22  ;;  %v3017_v14 = vld [vmem:[#allocation2 + $0x18] sm:$0xff]  ;;  %v2545_v41 = vsub.f32 %v2460_v13, %v5587_v1  ;;  %v71_v57 = vand.u32 15, %v5868_v30  ;;  %v104_v18 = vcvt.s32.f32 %v70_v53  ;;  %1087 = vst.msk [vmem:[#allocation2 + $0x30] sm:$0xff] %vm1081_vm6, %v1038_v28  ;;  %2588 = vrot.lane.b32.xlu1 %v5571_v37, %s3336_s13 }
 0x144   :  { %v2359_v38 = vcvt.s32.f32 %v2325_v56  ;;  %1437 = vrot.lane.b32.xlu0 %v5547_v35, %s3339_s20  ;;  %v7041_v21 = vsub.f32 %v5805_v17, %v5520_v16  ;;  %v5881_v24 = vpack.c.bf16 %v996_v40, %v995_v8  ;;  %v1377_v22 = vsub.f32 %v5857_v27, %v5625_v19  ;;  %3092 = vmatpush1.bf16.msra.mxu0 %v3017_v14  ;;  %v2206_v17 = vpop.permute.xlu0 %2205 }
 0x145   :  { %v3235_v13 = vshrl.u32 %v5734_v48, 28  ;;  %v1378_v28 = vsub.f32 %v5860_v45, %v5625_v19  ;;  %v5889_v35 = vmul.f32 %v5554_v5, %v2358_v10  ;;  %v105_v37 = vcvt.s32.f32 %v71_v57  ;;  %2254 = vst.msk [vmem:[#allocation2 + $0x38] sm:$0xff] %vm2249_vm7, %v2206_v17 }
 0x146   :  { %v5879_v23 = vpack.c.bf16 %v2164_v62, %v7041_v21  ;;  %v181_v56 = vmul.f32 %v5702_v11, %v104_v18  ;;  %v1040_v62 = vpop.permute.xlu1 %1039  ;;  %v5892_v53 = vpack.c.bf16 %v2545_v41, %v2544_v31  ;;  %v5895_v8 = vmul.f32 %v5554_v5, %v2359_v38  ;;  %2255 = vst.msk [vmem:[#allocation2 + $0x40] sm:$0xff] %vm847_vm0, %v2206_v17 }
 0x147   :  { %v3236_v40 = vshrl.u32 %v5745_v7, 28  ;;  %v2739_v51 = vcvt.s32.f32 %v3235_v13  ;;  %1090 = vst.msk [vmem:[#allocation2 + $0x50] sm:$0xff] %vm1083_vm1, %v1040_v62  ;;  %v2528_v36 = vsub.f32 %v5889_v35, %v5627_v43  ;;  %v182_v26 = vmul.f32 %v5702_v11, %v105_v37  ;;  %1802 = vrot.lane.b32.xlu1 %v5592_v34, %s3337_s16 }
 0x148   :  { %v258_v31 = vsub.f32 %v181_v56, %v5707_v52  ;;  %v1506_v27 = vshra.s32 %v5734_v48, 16  ;;  %2969 = vrot.lane.b32.xlu0 %v5589_v44, %s3340_s21  ;;  %v1507_v14 = vshra.s32 %v5745_v7, 16  ;;  %v3219_v41 = vshrl.u32 %v5768_v4, 28  ;;  %v1422_v13 = vpop.permute.xlu0 %1421  ;;  %v5922_v4 = vld [vmem:[%s6457_s1 + $0xe0] sm:$0xff] }
 0x149   :  { %v2740_v45 = vcvt.s32.f32 %v3236_v40  ;;  %v2824_v10 = vmul.f32 %v5556_v60, %v2739_v51  ;;  %v2529_v38 = vsub.f32 %v5895_v8, %v5627_v43  ;;  %v259_v57 = vsub.f32 %v182_v26, %v5707_v52  ;;  %1467 = vst.msk [vmem:[#allocation2 + $0x50] sm:$0xff] %vm1463_vm3, %v1422_v13 }
 0x14a   :  { %v1538_v18 = vand.u32 15, %v1506_v27  ;;  %v3220_v21 = vshrl.u32 %v5784_v6, 28  ;;  %v1787_v44 = vpop.permute.xlu1 %1786  ;;  %v1539_v56 = vand.u32 15, %v1507_v14  ;;  %v2723_v17 = vcvt.s32.f32 %v3219_v41 }
 0x14b   :  { %v2825_v37 = vmul.f32 %v5556_v60, %v2740_v45  ;;  %v2909_v34 = vsub.f32 %v2824_v10, %v5649_v47  ;;  %v284_v8 = vpack.c.bf16 %v259_v57, %v258_v31  ;;  %v337_v6 = vshra.s32 %v5734_v48, 4  ;;  %1832 = vst.msk [vmem:[#allocation2 + $0x50] sm:$0xff] %vm1828_vm4, %v1787_v44  ;;  %633 = vrot.lane.b32.xlu1 %v5653_v20, %s3342_s6  ;;  %v5937_v31 = vld [vmem:[%s6457_s1 + $0xe8] sm:$0xff] }
 0x14c   :  { %v1572_v40 = vcvt.s32.f32 %v1538_v18  ;;  %v2724_v51 = vcvt.s32.f32 %v3220_v21  ;;  %2953 = vrot.lane.b32.xlu0 %v5645_v49, %s3340_s21  ;;  %v1573_v27 = vcvt.s32.f32 %v1539_v56  ;;  %v2808_v45 = vmul.f32 %v5609_v54, %v2723_v17  ;;  %v618_v41 = vpop.permute.xlu0 %617  ;;  %v3021_v18 = vld [vmem:[#allocation2 + $0x38] sm:$0xff] }
 0x14d   :  { %v2910_v26 = vsub.f32 %v2825_v37, %v5649_v47  ;;  %v338_v10 = vshra.s32 %v5745_v7, 4  ;;  %301 = vst.msk [vmem:[#allocation2 + $0x90] sm:$0xff] %vm294_vm2, %v284_v8  ;;  %v369_v14 = vand.u32 15, %v337_v6  ;;  %v1873_v20 = vshra.s32 %v5922_v4, 20  ;;  %3093 = vmatprep.subr.bf16.mxu0 %v3021_v18  ;;  %v3020_v8 = vld [vmem:[#allocation2 + $0x30] sm:$0xff] }
 0x14e   :  { %v1657_v48 = vmul.f32 %v5585_v9, %v1572_v40  ;;  %v2809_v49 = vmul.f32 %v5609_v54, %v2724_v51  ;;  %v2208_v57 = vpop.permute.xlu1 %2207  ;;  %v5943_v21 = vpack.c.bf16 %v1378_v28, %v1377_v22  ;;  %v1658_v7 = vmul.f32 %v5585_v9, %v1573_v27  ;;  %663 = vst.msk [vmem:[#allocation2 + $0x48] sm:$0xff] %vm659_vm5, %v618_v41  ;;  %v7042_v28 = vld [vmem:[#allocation40_spill] sm:$0xff] }
 0x14f   :  { %v2893_v13 = vsub.f32 %v2808_v45, %v5679_v50  ;;  %v370_v44 = vand.u32 15, %v338_v10  ;;  %2256 = vst.msk [vmem:[#allocation2 + $0x50] sm:$0xff] %vm2249_vm7, %v2208_v57  ;;  %v403_v17 = vcvt.s32.f32 %v369_v14  ;;  %v1874_v22 = vshra.s32 %v5937_v31, 20  ;;  %1057 = vrot.lane.b32.xlu1 %v7042_v28, %s3341_s26  ;;  %3094 = vmatpush1.bf16.msra.mxu0 %v3020_v8 }
 0x150   :  { %2257 = vst.msk [vmem:[#allocation2 + $0x58] sm:$0xff] %vm847_vm0, %v2208_v57  ;;  %v1742_v37 = vsub.f32 %v1657_v48, %v5651_v12  ;;  %v2894_v56 = vsub.f32 %v2809_v49, %v5679_v50  ;;  %2225 = vrot.lane.b32.xlu0 %v5662_v61, %s3338_s17  ;;  %v1743_v40 = vsub.f32 %v1658_v7, %v5651_v12  ;;  %v1905_v6 = vand.u32 15, %v1873_v20  ;;  %v1042_v48 = vpop.permute.xlu0 %1041 }
 0x151   :  { %1089 = vst.msk [vmem:[#allocation2 + $0x48] sm:$0xff] %vm1081_vm6, %v1040_v62  ;;  %v404_v51 = vcvt.s32.f32 %v370_v44  ;;  %v704_v27 = vshra.s32 %v5922_v4, 8  ;;  %v5963_v45 = vpack.c.bf16 %v2529_v38, %v2528_v36  ;;  %v5965_v62 = vpack.c.bf16 %v2910_v26, %v2909_v34  ;;  %v5977_v38 = vld [vmem:[%s6457_s1 + $0x70] sm:$0xff]  ;;  %v5990_v44 = vld [vmem:[%s6457_s1 + $0x78] sm:$0xff] }
 0x152   :  { %v1906_v10 = vand.u32 15, %v1874_v22  ;;  %v705_v61 = vshra.s32 %v5937_v31, 8  ;;  %v1424_v49 = vpop.permute.xlu1 %1423  ;;  %v5968_v14 = vpack.c.bf16 %v2894_v56, %v2893_v13  ;;  %v488_v41 = vmul.f32 %v5611_v0, %v403_v17  ;;  %1092 = vst.msk [vmem:[#allocation2 + $0x68] sm:$0xff] %vm1083_vm1, %v1042_v48 }
 0x153   :  { %v1939_v20 = vcvt.s32.f32 %v1905_v6  ;;  %v736_v57 = vand.u32 15, %v704_v27  ;;  %v5972_v18 = vpack.c.bf16 %v1743_v40, %v1742_v37  ;;  %v72_v34 = vand.u32 15, %v5977_v38  ;;  %1468 = vst.msk [vmem:[#allocation2 + $0x68] sm:$0xff] %vm1463_vm3, %v1424_v49  ;;  %1439 = vrot.lane.b32.xlu1 %v5715_v32, %s3339_s20 }
 0x154   :  { %v1940_v35 = vcvt.s32.f32 %v1906_v10  ;;  %v737_v36 = vand.u32 15, %v705_v61  ;;  %2606 = vrot.lane.b32.xlu0 %v5713_v58, %s3336_s13  ;;  %v489_v26 = vmul.f32 %v5611_v0, %v404_v51  ;;  %v73_v37 = vand.u32 15, %v5990_v44  ;;  %v1789_v28 = vpop.permute.xlu0 %1788 }
 0x155   :  { %v2052_v7 = vmul.f32 %v5429_v63, %v1939_v20  ;;  %v770_v13 = vcvt.s32.f32 %v736_v57  ;;  %v573_v56 = vsub.f32 %v488_v41, %v5681_v29  ;;  %v106_v22 = vcvt.s32.f32 %v72_v34  ;;  %1833 = vst.msk [vmem:[#allocation2 + $0x68] sm:$0xff] %vm1828_vm4, %v1789_v28 }
 0x156   :  { %v771_v17 = vcvt.s32.f32 %v737_v36  ;;  %v2310_v58 = vshra.s32 %v5922_v4, 24  ;;  %v620_v32 = vpop.permute.xlu1 %619  ;;  %v3024_v8 = vld [vmem:[#allocation2 + $0x50] sm:$0xff]  ;;  %v574_v40 = vsub.f32 %v489_v26, %v5681_v29  ;;  %v2053_v51 = vmul.f32 %v5429_v63, %v1940_v35 }
 0x157   :  { %v2165_v6 = vsub.f32 %v2052_v7, %v5520_v16  ;;  %v107_v27 = vcvt.s32.f32 %v73_v37  ;;  %664 = vst.msk [vmem:[#allocation2 + $0x60] sm:$0xff] %vm659_vm5, %v620_v32  ;;  %3095 = vmatprep.subr.bf16.mxu0 %v3024_v8  ;;  %v884_v61 = vmul.f32 %v5466_v25, %v770_v13  ;;  %v183_v41 = vmul.f32 %v5702_v11, %v106_v22 }
 0x158   :  { %v3023_v10 = vld [vmem:[#allocation2 + $0x48] sm:$0xff]  ;;  %v885_v49 = vmul.f32 %v5466_v25, %v771_v17  ;;  %v2311_v20 = vshra.s32 %v5937_v31, 24  ;;  %1091 = vst.msk [vmem:[#allocation2 + $0x60] sm:$0xff] %vm1081_vm6, %v1042_v48  ;;  %2590 = vrot.lane.b32.xlu0 %v5778_v59, %s3336_s13  ;;  %2971 = vrot.lane.b32.xlu1 %v5775_v55, %s3340_s21  ;;  %v2166_v57 = vsub.f32 %v2053_v51, %v5520_v16  ;;  %v2342_v36 = vand.u32 15, %v2310_v58  ;;  %v2210_v37 = vpop.permute.xlu0 %2209 }
 0x159   :  { %v184_v35 = vmul.f32 %v5702_v11, %v107_v27  ;;  %v1143_v34 = vshra.s32 %v5922_v4, 12  ;;  %3096 = vmatpush1.bf16.msra.mxu0 %v3023_v10  ;;  %v997_v26 = vsub.f32 %v884_v61, %v5539_v42  ;;  %v260_v48 = vsub.f32 %v183_v41, %v5707_v52  ;;  %2258 = vst.msk [vmem:[#allocation2 + $0x68] sm:$0xff] %vm2249_vm7, %v2210_v37 }
 0x15a   :  { %v998_v7 = vsub.f32 %v885_v49, %v5539_v42  ;;  %v2343_v13 = vand.u32 15, %v2311_v20  ;;  %v1044_v59 = vpop.permute.xlu1 %1043  ;;  %v2376_v55 = vcvt.s32.f32 %v2342_v36  ;;  %v1144_v22 = vshra.s32 %v5937_v31, 12  ;;  %2259 = vst.msk [vmem:[#allocation2 + $0x70] sm:$0xff] %vm847_vm0, %v2210_v37 }
 0x15b   :  { %v261_v17 = vsub.f32 %v184_v35, %v5707_v52  ;;  %v1175_v28 = vand.u32 15, %v1143_v34  ;;  %1094 = vst.msk [vmem:[#allocation2 + $0x80] sm:$0xff] %vm1083_vm1, %v1044_v59  ;;  %v6020_v11 = vpack.c.bf16 %v574_v40, %v573_v56  ;;  %v2294_v32 = vshra.s32 %v5852_v2, 24 }
 0x15c   :  { %v2377_v58 = vcvt.s32.f32 %v2343_v13  ;;  %v2295_v8 = vshra.s32 %v5868_v30, 24  ;;  %1804 = vrot.lane.b32.xlu0 %v5792_v46, %s3337_s16  ;;  %2955 = vrot.lane.b32.xlu1 %v5794_v3, %s3340_s21  ;;  %v6028_v52 = vpack.c.bf16 %v2166_v57, %v2165_v6  ;;  %v1176_v27 = vand.u32 15, %v1144_v22  ;;  %v1426_v41 = vpop.permute.xlu0 %1425 }
 0x15d   :  { %v285_v51 = vpack.c.bf16 %v261_v17, %v260_v48  ;;  %v1209_v10 = vcvt.s32.f32 %v1175_v28  ;;  %v6030_v61 = vpack.c.bf16 %v998_v7, %v997_v26  ;;  %v2326_v56 = vand.u32 15, %v2294_v32  ;;  %1469 = vst.msk [vmem:[#allocation2 + $0x80] sm:$0xff] %vm1463_vm3, %v1426_v41 }
 0x15e   :  { %v2327_v40 = vand.u32 15, %v2295_v8  ;;  %v3237_v49 = vshrl.u32 %v5922_v4, 28  ;;  %v1791_v20 = vpop.permute.xlu1 %1790  ;;  %v2461_v46 = vmul.f32 %v5513_v15, %v2376_v55  ;;  %v2462_v35 = vmul.f32 %v5513_v15, %v2377_v58 }
 0x15f   :  { %302 = vst.msk [vmem:[#allocation2 + $0xa8] sm:$0xff] %vm294_vm2, %v285_v51  ;;  %v1210_v3 = vcvt.s32.f32 %v1176_v27  ;;  %v3238_v6 = vshrl.u32 %v5937_v31, 28  ;;  %v1294_v57 = vmul.f32 %v5532_v39, %v1209_v10  ;;  %v2360_v36 = vcvt.s32.f32 %v2326_v56  ;;  %v3026_v41 = vld [vmem:[#allocation2 + $0x60] sm:$0xff] }
 0x160   :  { %v2361_v34 = vcvt.s32.f32 %v2327_v40  ;;  %v2741_v26 = vcvt.s32.f32 %v3237_v49  ;;  %1834 = vst.msk [vmem:[#allocation2 + $0x80] sm:$0xff] %vm1828_vm4, %v1791_v20  ;;  %635 = vrot.lane.b32.xlu0 %v5846_v33, %s3342_s6  ;;  %2227 = vrot.lane.b32.xlu1 %v5879_v23, %s3338_s17  ;;  %v2546_v7 = vsub.f32 %v2461_v46, %v5587_v1  ;;  %v2547_v48 = vsub.f32 %v2462_v35, %v5587_v1  ;;  %v622_v58 = vpop.permute.xlu0 %621  ;;  %v3027_v32 = vld [vmem:[#allocation2 + $0x68] sm:$0xff] }
 0x161   :  { %v1295_v13 = vmul.f32 %v5532_v39, %v1210_v3  ;;  %v2742_v37 = vcvt.s32.f32 %v3238_v6  ;;  %v1379_v17 = vsub.f32 %v1294_v57, %v5625_v19  ;;  %v2445_v55 = vmul.f32 %v5554_v5, %v2360_v36  ;;  %665 = vst.msk [vmem:[#allocation2 + $0x78] sm:$0xff] %vm659_vm5, %v622_v58  ;;  %3097 = vmatprep.subr.bf16.mxu0 %v3027_v32  ;;  %v6073_v6 = vld [vmem:[%s6457_s1 + $0xf0] sm:$0xff]  ;;  %v6083_v57 = vld [vmem:[%s6457_s1 + $0xf8] sm:$0xff] }
 0x162   :  { %v2446_v22 = vmul.f32 %v5554_v5, %v2361_v34  ;;  %v2826_v28 = vmul.f32 %v5556_v60, %v2741_v26  ;;  %v2212_v33 = vpop.permute.xlu1 %2211  ;;  %v1508_v51 = vshra.s32 %v5922_v4, 16  ;;  %v1509_v27 = vshra.s32 %v5937_v31, 16  ;;  %1093 = vst.msk [vmem:[#allocation2 + $0x78] sm:$0xff] %vm1081_vm6, %v1044_v59  ;;  %3098 = vmatpush1.bf16.msra.mxu0 %v3026_v41 }
 0x163   :  { %v1380_v23 = vsub.f32 %v1295_v13, %v5625_v19  ;;  %v2827_v8 = vmul.f32 %v5556_v60, %v2742_v37  ;;  %2260 = vst.msk [vmem:[#allocation2 + $0x80] sm:$0xff] %vm2249_vm7, %v2212_v33  ;;  %v2530_v10 = vsub.f32 %v2445_v55, %v5627_v43  ;;  %v3221_v49 = vshrl.u32 %v5852_v2, 28 }
 0x164   :  { %2261 = vst.msk [vmem:[#allocation2 + $0x88] sm:$0xff] %vm847_vm0, %v2212_v33  ;;  %v2531_v56 = vsub.f32 %v2446_v22, %v5627_v43  ;;  %v2911_v40 = vsub.f32 %v2826_v28, %v5649_v47  ;;  %1059 = vrot.lane.b32.xlu0 %v5881_v24, %s3341_s26  ;;  %2608 = vrot.lane.b32.xlu1 %v5892_v53, %s3336_s13  ;;  %v1540_v35 = vand.u32 15, %v1508_v51  ;;  %v1541_v3 = vand.u32 15, %v1509_v27 }
 0x165   :  { %v6067_v20 = vpack.c.bf16 %v2547_v48, %v2546_v7  ;;  %v2912_v46 = vsub.f32 %v2827_v8, %v5649_v47  ;;  %v6075_v2 = vpack.c.bf16 %v1380_v23, %v1379_v17  ;;  %v3222_v24 = vshrl.u32 %v5868_v30, 28 }
 0x166   :  { %v6077_v59 = vpack.c.bf16 %v2531_v56, %v2530_v10  ;;  %v2725_v53 = vcvt.s32.f32 %v3221_v49  ;;  %v1046_v36 = vpop.permute.xlu0 %1045  ;;  %v1428_v34 = vpop.permute.xlu1 %1427  ;;  %v1574_v7 = vcvt.s32.f32 %v1540_v35  ;;  %v1575_v48 = vcvt.s32.f32 %v1541_v3 }
 0x167   :  { %v6085_v26 = vpack.c.bf16 %v2912_v46, %v2911_v40  ;;  %v339_v13 = vshra.s32 %v5922_v4, 4  ;;  %1096 = vst.msk [vmem:[#allocation2 + $0x98] sm:$0xff] %vm1083_vm1, %v1046_v36  ;;  %v2726_v37 = vcvt.s32.f32 %v3222_v24  ;;  %v340_v30 = vshra.s32 %v5937_v31, 4 }
 0x168   :  { %v2810_v17 = vmul.f32 %v5609_v54, %v2725_v53  ;;  %v1875_v55 = vshra.s32 %v6073_v6, 20  ;;  %1470 = vst.msk [vmem:[#allocation2 + $0x98] sm:$0xff] %vm1463_vm3, %v1428_v34  ;;  %1441 = vrot.lane.b32.xlu0 %v5943_v21, %s3339_s20  ;;  %2592 = vrot.lane.b32.xlu1 %v5963_v45, %s3336_s13  ;;  %v1659_v22 = vmul.f32 %v5585_v9, %v1574_v7  ;;  %v1876_v33 = vshra.s32 %v6083_v57, 20 }
 0x169   :  { %v1660_v28 = vmul.f32 %v5585_v9, %v1575_v48  ;;  %v371_v58 = vand.u32 15, %v339_v13  ;;  %v2811_v32 = vmul.f32 %v5609_v54, %v2726_v37  ;;  %v372_v8 = vand.u32 15, %v340_v30  ;;  %v3029_v41 = vld [vmem:[#allocation2 + $0x78] sm:$0xff] }
 0x16a   :  { %v2895_v23 = vsub.f32 %v2810_v17, %v5679_v50  ;;  %v1907_v51 = vand.u32 15, %v1875_v55  ;;  %v1793_v27 = vpop.permute.xlu0 %1792  ;;  %v624_v10 = vpop.permute.xlu1 %623  ;;  %v3030_v56 = vld [vmem:[#allocation2 + $0x80] sm:$0xff]  ;;  %v1744_v21 = vsub.f32 %v1659_v22, %v5651_v12  ;;  %v1908_v49 = vand.u32 15, %v1876_v33 }
 0x16b   :  { %v1745_v45 = vsub.f32 %v1660_v28, %v5651_v12  ;;  %v405_v40 = vcvt.s32.f32 %v371_v58  ;;  %1835 = vst.msk [vmem:[#allocation2 + $0x98] sm:$0xff] %vm1828_vm4, %v1793_v27  ;;  %3099 = vmatprep.subr.bf16.mxu0 %v3030_v56  ;;  %v2896_v46 = vsub.f32 %v2811_v32, %v5679_v50  ;;  %v406_v35 = vcvt.s32.f32 %v372_v8  ;;  %v3299_v27 = vld [vmem:[%s6457_s1 + $0x80] sm:$0xff] }
 0x16c   :  { %666 = vst.msk [vmem:[#allocation2 + $0x90] sm:$0xff] %vm659_vm5, %v624_v10  ;;  %v1941_v3 = vcvt.s32.f32 %v1907_v51  ;;  %v706_v24 = vshra.s32 %v6073_v6, 8  ;;  %2973 = vrot.lane.b32.xlu0 %v5965_v62, %s3340_s21  ;;  %1806 = vrot.lane.b32.xlu1 %v5972_v18, %s3337_s16  ;;  %v1942_v7 = vcvt.s32.f32 %v1908_v49  ;;  %v707_v48 = vshra.s32 %v6083_v57, 8 }
 0x16d   :  { %1095 = vst.msk [vmem:[#allocation2 + $0x90] sm:$0xff] %vm1081_vm6, %v1046_v36  ;;  %v6113_v53 = vpack.c.bf16 %v1745_v45, %v1744_v21  ;;  %v490_v34 = vmul.f32 %v5611_v0, %v405_v40  ;;  %3100 = vmatpush1.bf16.msra.mxu0 %v3029_v41  ;;  %v6117_v13 = vpack.c.bf16 %v2896_v46, %v2895_v23  ;;  %v2312_v28 = vshra.s32 %v6073_v6, 24 }
 0x16e   :  { %v491_v37 = vmul.f32 %v5611_v0, %v406_v35  ;;  %v2054_v36 = vmul.f32 %v5429_v63, %v1941_v3  ;;  %v738_v17 = vand.u32 15, %v706_v24  ;;  %v2214_v30 = vpop.permute.xlu0 %2213  ;;  %v1048_v62 = vpop.permute.xlu1 %1047  ;;  %v2055_v18 = vmul.f32 %v5429_v63, %v1942_v7  ;;  %v7043_v7 = vld [vmem:[#allocation30_spill] sm:$0xff] }
 0x16f   :  { %v575_v55 = vsub.f32 %v490_v34, %v5681_v29  ;;  %v739_v22 = vand.u32 15, %v707_v48  ;;  %2262 = vst.msk [vmem:[#allocation2 + $0x98] sm:$0xff] %vm2249_vm7, %v2214_v30  ;;  %v2313_v23 = vshra.s32 %v6083_v57, 24  ;;  %v2344_v51 = vand.u32 15, %v2312_v28 }
 0x170   :  { %2263 = vst.msk [vmem:[#allocation2 + $0xa0] sm:$0xff] %vm847_vm0, %v2214_v30  ;;  %v576_v58 = vsub.f32 %v491_v37, %v5681_v29  ;;  %v2167_v33 = vsub.f32 %v2054_v36, %v5520_v16  ;;  %v772_v32 = vcvt.s32.f32 %v738_v17  ;;  %2957 = vrot.lane.b32.xlu0 %v5968_v14, %s3340_s21  ;;  %637 = vrot.lane.b32.xlu1 %v6020_v11, %s3342_s6  ;;  %v74_v10 = vand.u32 15, %v3299_v27  ;;  %v3300_v14 = vld [vmem:[%s6457_s1 + $0x88] sm:$0xff]  ;;  %v7044_v36 = vld [vmem:[#allocation31_spill] sm:$0xff] }
 0x171   :  { %1098 = vst.msk [vmem:[#allocation2 + $0xb0] sm:$0xff] %vm1083_vm1, %v1048_v62  ;;  %v2168_v63 = vsub.f32 %v2055_v18, %v5520_v16  ;;  %v773_v8 = vcvt.s32.f32 %v739_v22  ;;  %v2345_v45 = vand.u32 15, %v2313_v23  ;;  %v75_v40 = vand.u32 15, %v3300_v14  ;;  %v7045_v18 = vld [vmem:[#allocation8_spill] sm:$0xff] }
 0x172   :  { %v6138_v56 = vpack.c.bf16 %v576_v58, %v575_v55  ;;  %v886_v21 = vmul.f32 %v5466_v25, %v772_v32  ;;  %v1430_v11 = vpop.permute.xlu0 %1429  ;;  %v1795_v49 = vpop.permute.xlu1 %1794  ;;  %v2378_v46 = vcvt.s32.f32 %v2344_v51  ;;  %v108_v35 = vcvt.s32.f32 %v74_v10 }
 0x173   :  { %v6144_v16 = vpack.c.bf16 %v2168_v63, %v2167_v33  ;;  %v887_v41 = vmul.f32 %v5466_v25, %v773_v8  ;;  %1471 = vst.msk [vmem:[#allocation2 + $0xb0] sm:$0xff] %vm1463_vm3, %v1430_v11  ;;  %v2379_v24 = vcvt.s32.f32 %v2345_v45  ;;  %v109_v34 = vcvt.s32.f32 %v75_v40 }
 0x174   :  { %v999_v3 = vsub.f32 %v886_v21, %v5539_v42  ;;  %v147_v48 = vcombine.high %v7043_v7, %v7043_v7  ;;  %1836 = vst.msk [vmem:[#allocation2 + $0xb0] sm:$0xff] %vm1828_vm4, %v1795_v49  ;;  %2229 = vrot.lane.b32.xlu0 %v6028_v52, %s3338_s17  ;;  %1061 = vrot.lane.b32.xlu1 %v6030_v61, %s3341_s26  ;;  %v1145_v30 = vshra.s32 %v6073_v6, 12  ;;  %v1146_v52 = vshra.s32 %v6083_v57, 12  ;;  %v3032_v10 = vld [vmem:[#allocation2 + $0x90] sm:$0xff] }
 0x175   :  { %v1000_v25 = vsub.f32 %v887_v41, %v5539_v42  ;;  %v2463_v37 = vmul.f32 %v5513_v15, %v2378_v46  ;;  %v224_v17 = vcombine.high %v7044_v36, %v7044_v36  ;;  %v2464_v55 = vmul.f32 %v5513_v15, %v2379_v24 }
 0x176   :  { %v6163_v22 = vrot.slane %v147_v48, %v7045_v18  ;;  %v2296_v28 = vshra.s32 %v5977_v38, 24  ;;  %v626_v61 = vpop.permute.xlu0 %625  ;;  %v2216_v58 = vpop.permute.xlu1 %2215  ;;  %v3033_v33 = vld [vmem:[#allocation2 + $0x98] sm:$0xff]  ;;  %v1177_v63 = vand.u32 15, %v1145_v30  ;;  %v1178_v27 = vand.u32 15, %v1146_v52 }
 0x177   :  { %v6167_v42 = vpack.c.bf16 %v1000_v25, %v999_v3  ;;  %v2548_v32 = vsub.f32 %v2463_v37, %v5587_v1  ;;  %v6171_v23 = vrot.slane %v224_v17, %v7045_v18  ;;  %667 = vst.msk [vmem:[#allocation2 + $0xa8] sm:$0xff] %vm659_vm5, %v626_v61  ;;  %3101 = vmatprep.subr.bf16.mxu0 %v3033_v33  ;;  %v2297_v45 = vshra.s32 %v5990_v44, 24 }
 0x178   :  { %2264 = vst.msk [vmem:[#allocation2 + $0xb0] sm:$0xff] %vm2249_vm7, %v2216_v58  ;;  %v2549_v15 = vsub.f32 %v2464_v55, %v5587_v1  ;;  %v185_v8 = vmul.f32 %v6163_v22, %v108_v35  ;;  %v186_v51 = vmul.f32 %v6163_v22, %v109_v34  ;;  %2610 = vrot.lane.b32.xlu0 %v6067_v20, %s3336_s13  ;;  %v1211_v21 = vcvt.s32.f32 %v1177_v63 }
 0x179   :  { %2265 = vst.msk [vmem:[#allocation2 + $0xb8] sm:$0xff] %vm847_vm0, %v2216_v58  ;;  %1443 = vrot.lane.b32.xlu1 %v6075_v2, %s3339_s20  ;;  %v2328_v14 = vand.u32 15, %v2296_v28  ;;  %v3239_v1 = vshrl.u32 %v6073_v6, 28  ;;  %3102 = vmatpush1.bf16.msra.mxu0 %v3032_v10  ;;  %v1212_v49 = vcvt.s32.f32 %v1178_v27  ;;  %v2329_v46 = vand.u32 15, %v2297_v45 }
 0x17a   :  { %1097 = vst.msk [vmem:[#allocation2 + $0xa8] sm:$0xff] %vm1081_vm6, %v1048_v62  ;;  %v6186_v40 = vpack.c.bf16 %v2549_v15, %v2548_v32  ;;  %v262_v11 = vsub.f32 %v185_v8, %v6171_v23  ;;  %v263_v62 = vsub.f32 %v186_v51, %v6171_v23  ;;  %v6190_v20 = vpop.permute.xlu0 %2217  ;;  %v6192_v41 = vpop.permute.xlu1 %1049  ;;  %v1296_v2 = vmul.f32 %v5532_v39, %v1211_v21 }
 0x17b   :  { %v2362_v35 = vcvt.s32.f32 %v2328_v14  ;;  %v3240_v3 = vshrl.u32 %v6083_v57, 28  ;;  %2267 = vst.msk [vmem:[#allocation2 + $0xd0] sm:$0xff] %vm847_vm0, %v6190_v20  ;;  %v1297_v34 = vmul.f32 %v5532_v39, %v1212_v49  ;;  %v2743_v7 = vcvt.s32.f32 %v3239_v1 }
 0x17c   :  { %1100 = vst.msk [vmem:[#allocation2 + $0xc8] sm:$0xff] %vm1083_vm1, %v6192_v41  ;;  %v286_v24 = vpack.c.bf16 %v263_v62, %v262_v11  ;;  %v1510_v48 = vshra.s32 %v6073_v6, 16  ;;  %2594 = vrot.lane.b32.xlu0 %v6077_v59, %s3336_s13  ;;  %v1381_v25 = vsub.f32 %v1296_v2, %v5625_v19  ;;  %v2363_v37 = vcvt.s32.f32 %v2329_v46 }
 0x17d   :  { %2975 = vrot.lane.b32.xlu1 %v6085_v26, %s3340_s21  ;;  %v2447_v36 = vmul.f32 %v5554_v5, %v2362_v35  ;;  %v2744_v17 = vcvt.s32.f32 %v3240_v3  ;;  %v1382_v30 = vsub.f32 %v1297_v34, %v5625_v19  ;;  %v2828_v39 = vmul.f32 %v5556_v60, %v2743_v7  ;;  %v3301_v3 = vld [vmem:[%s6457_s1 + $0x90] sm:$0xff] }
 0x17e   :  { %303 = vst.msk [vmem:[#allocation2 + $0xc0] sm:$0xff] %vm294_vm2, %v286_v24  ;;  %v1511_v55 = vshra.s32 %v6083_v57, 16  ;;  %v1542_v52 = vand.u32 15, %v1510_v48  ;;  %v2599_v28 = vpop.permute.xlu0 %2598  ;;  %v1432_v59 = vpop.permute.xlu1 %1431  ;;  %v2448_v26 = vmul.f32 %v5554_v5, %v2363_v37  ;;  %v3223_v32 = vshrl.u32 %v5977_v38, 28 }
 0x17f   :  { %v3036_v61 = vld [vmem:[#allocation2 + $0xb0] sm:$0xff]  ;;  %v2532_v58 = vsub.f32 %v2447_v36, %v5627_v43  ;;  %v2829_v33 = vmul.f32 %v5556_v60, %v2744_v17  ;;  %2639 = vst.msk [vmem:[#allocation2 + $0xd0] sm:$0xff] %vm2630_vm8, %v2599_v28  ;;  %v6218_v63 = vpack.c.bf16 %v1382_v30, %v1381_v25  ;;  %v2913_v15 = vsub.f32 %v2828_v39, %v5649_v47  ;;  %v3304_v39 = vld [vmem:[%s6457_s1 + $0xa8] sm:$0xff] }
 0x180   :  { %1472 = vst.msk [vmem:[#allocation2 + $0xc8] sm:$0xff] %vm1463_vm3, %v1432_v59  ;;  %3103 = vmatprep.subr.bf16.mxu0 %v3036_v61  ;;  %v1543_v8 = vand.u32 15, %v1511_v55  ;;  %v1576_v51 = vcvt.s32.f32 %v1542_v52  ;;  %1808 = vrot.lane.b32.xlu0 %v6113_v53, %s3337_s16  ;;  %v2533_v5 = vsub.f32 %v2448_v26, %v5627_v43  ;;  %v3224_v38 = vshrl.u32 %v5990_v44, 28 }
 0x181   :  { %v3035_v19 = vld [vmem:[#allocation2 + $0xa8] sm:$0xff]  ;;  %2959 = vrot.lane.b32.xlu1 %v6117_v13, %s3340_s21  ;;  %v2914_v60 = vsub.f32 %v2829_v33, %v5649_v47  ;;  %v2727_v27 = vcvt.s32.f32 %v3223_v32  ;;  %v341_v45 = vshra.s32 %v6073_v6, 4  ;;  %v342_v14 = vshra.s32 %v6083_v57, 4 }
 0x182   :  { %3104 = vmatpush1.bf16.msra.mxu0 %v3035_v19  ;;  %v1577_v10 = vcvt.s32.f32 %v1543_v8  ;;  %v1661_v21 = vmul.f32 %v5585_v9, %v1576_v51  ;;  %v2583_v1 = vpop.permute.xlu0 %2582  ;;  %v2964_v53 = vpop.permute.xlu1 %2963  ;;  %v6231_v11 = vpack.c.bf16 %v2533_v5, %v2532_v58  ;;  %v2728_v43 = vcvt.s32.f32 %v3224_v38 }
 0x183   :  { %v6233_v13 = vpack.c.bf16 %v2914_v60, %v2913_v15  ;;  %v2812_v47 = vmul.f32 %v5609_v54, %v2727_v27  ;;  %2631 = vst.msk [vmem:[#allocation2 + $0x10] sm:$0xff] %vm2630_vm8, %v2583_v1  ;;  %v373_v49 = vand.u32 15, %v341_v45  ;;  %v374_v2 = vand.u32 15, %v342_v14 }
 0x184   :  { %3004 = vst.msk [vmem:[#allocation2 + $0xd0] sm:$0xff] %vm2995_vm9, %v2964_v53  ;;  %v1662_v44 = vmul.f32 %v5585_v9, %v1577_v10  ;;  %v1746_v62 = vsub.f32 %v1661_v21, %v5651_v12  ;;  %639 = vrot.lane.b32.xlu0 %v6138_v56, %s3342_s6  ;;  %v2813_v46 = vmul.f32 %v5609_v54, %v2728_v43  ;;  %v76_v24 = vand.u32 15, %v3301_v3  ;;  %v3302_v9 = vld [vmem:[%s6457_s1 + $0x98] sm:$0xff]  ;;  %v3303_v54 = vld [vmem:[%s6457_s1 + $0xa0] sm:$0xff]  ;;  %v3308_v43 = vld [vmem:[%s6457_s1 + $0xc8] sm:$0xff] }
 0x185   :  { %2231 = vrot.lane.b32.xlu1 %v6144_v16, %s3338_s17  ;;  %v2897_v35 = vsub.f32 %v2812_v47, %v5679_v50  ;;  %v77_v34 = vand.u32 15, %v3302_v9  ;;  %v407_v56 = vcvt.s32.f32 %v373_v49  ;;  %v408_v48 = vcvt.s32.f32 %v374_v2  ;;  %v3307_v21 = vld [vmem:[%s6457_s1 + $0xc0] sm:$0xff]  ;;  %v7046_v49 = vld [vmem:[#allocation39_spill] sm:$0xff] }
 0x186   :  { %v1747_v7 = vsub.f32 %v1662_v44, %v5651_v12  ;;  %v78_v16 = vand.u32 15, %v3303_v54  ;;  %v1797_v25 = vpop.permute.xlu0 %1796  ;;  %v2948_v37 = vpop.permute.xlu1 %2947  ;;  %v2898_v36 = vsub.f32 %v2813_v46, %v5679_v50  ;;  %v110_v17 = vcvt.s32.f32 %v76_v24  ;;  %v7047_v2 = vld [vmem:[#allocation16_spill] sm:$0xff] }
 0x187   :  { %v111_v30 = vcvt.s32.f32 %v77_v34  ;;  %v79_v55 = vand.u32 15, %v3304_v39  ;;  %1837 = vst.msk [vmem:[#allocation2 + $0xc8] sm:$0xff] %vm1828_vm4, %v1797_v25  ;;  %v492_v52 = vmul.f32 %v5611_v0, %v407_v56  ;;  %v493_v28 = vmul.f32 %v5611_v0, %v408_v48  ;;  %v3309_v34 = vld [vmem:[%s6457_s1 + $0xd0] sm:$0xff]  ;;  %v3280_v39 = vld [vmem:[%s6456_s0 + $0x4] ss:$8 sps:$4 sm:$0xff]  }
 0x188   :  { %2996 = vst.msk [vmem:[#allocation2 + $0x10] sm:$0xff] %vm2995_vm9, %v2948_v37  ;;  %v1763_v12 = vpack.c.bf16 %v1747_v7, %v1746_v62  ;;  %v112_v59 = vcvt.s32.f32 %v78_v16  ;;  %1063 = vrot.lane.b32.xlu0 %v6167_v42, %s3341_s26  ;;  %v6270_v50 = vpack.c.bf16 %v2898_v36, %v2897_v35  ;;  %v187_v61 = vmul.f32 %v6163_v22, %v110_v17  ;;  %v3305_v42 = vld [vmem:[%s6457_s1 + $0xb0] sm:$0xff] }
 0x189   :  { %2266 = vst.msk [vmem:[#allocation2 + $0xc8] sm:$0xff] %vm2249_vm7, %v6190_v20  ;;  %2612 = vrot.lane.b32.xlu1 %v6186_v40, %s3336_s13  ;;  %v188_v26 = vmul.f32 %v6163_v22, %v111_v30  ;;  %v113_v58 = vcvt.s32.f32 %v79_v55  ;;  %v577_v33 = vsub.f32 %v492_v52, %v5681_v29  ;;  %v578_v0 = vsub.f32 %v493_v28, %v5681_v29  ;;  %v3306_v29 = vld [vmem:[%s6457_s1 + $0xb8] sm:$0xff] }
 0x18a   :  { %v189_v32 = vmul.f32 %v6163_v22, %v112_v59  ;;  %v80_v20 = vand.u32 15, %v3305_v42  ;;  %v628_v19 = vpop.permute.xlu0 %627  ;;  %v6280_v40 = vpop.permute.xlu1 %2219  ;;  %v264_v8 = vsub.f32 %v187_v61, %v6171_v23  ;;  %v81_v60 = vand.u32 15, %v3306_v29  ;;  %3164 = vmatprep.mubr.bf16.mxu1 %v3280_v39  ;;  %3121 = vmatprep.mubr.bf16.mxu0 %v3280_v39 }
 0x18b   :  { %v3040_v15 = vld [vmem:[#allocation2 + $0xd0] sm:$0xff]  ;;  %v265_v51 = vsub.f32 %v188_v26, %v6171_v23  ;;  %v190_v5 = vmul.f32 %v6163_v22, %v113_v58  ;;  %668 = vst.msk [vmem:[#allocation2 + $0xc0] sm:$0xff] %vm659_vm5, %v628_v19  ;;  %v6291_v38 = vpack.c.bf16 %v578_v0, %v577_v33  ;;  %v82_v45 = vand.u32 15, %v3307_v21 }
 0x18c   :  { %2269 = vst.msk [vmem:[#allocation2 + $0xe8] sm:$0xff] %vm847_vm0, %v6280_v40  ;;  %3245 = vmatprep.subr.bf16.mxu1 %v3040_v15  ;;  %v266_v27 = vsub.f32 %v189_v32, %v6171_v23  ;;  %v114_v10 = vcvt.s32.f32 %v80_v20  ;;  %1445 = vrot.lane.b32.xlu0 %v6218_v63, %s3339_s20  ;;  %v115_v53 = vcvt.s32.f32 %v81_v60  ;;  %v83_v47 = vand.u32 15, %v3308_v43 }
 0x18d   :  { %1099 = vst.msk [vmem:[#allocation2 + $0xc0] sm:$0xff] %vm1081_vm6, %v6192_v41  ;;  %2596 = vrot.lane.b32.xlu1 %v6231_v11, %s3336_s13  ;;  %v287_v14 = vpack.c.bf16 %v265_v51, %v264_v8  ;;  %v267_v1 = vsub.f32 %v190_v5, %v6171_v23  ;;  %v116_v62 = vcvt.s32.f32 %v82_v45  ;;  %v148_v41 = vcombine.high %v7046_v49, %v7046_v49 }
 0x18e   :  { %v191_v44 = vmul.f32 %v6163_v22, %v114_v10  ;;  %v225_v63 = vcombine.high %v7047_v2, %v7047_v2  ;;  %v6312_v46 = vpop.permute.xlu0 %1051  ;;  %v2601_v11 = vpop.permute.xlu1 %2600  ;;  %v192_v24 = vmul.f32 %v6163_v22, %v115_v53  ;;  %v117_v9 = vcvt.s32.f32 %v83_v47  ;;  %v3310_v22 = vld [vmem:[%s6457_s1 + $0xd8] sm:$0xff] }
 0x18f   :  { %v3016_v35 = vld [vmem:[#allocation2 + $0x10] sm:$0xff]  ;;  %304 = vst.msk [vmem:[#allocation2 + $0xd8] sm:$0xff] %vm294_vm2, %v287_v14  ;;  %v288_v3 = vpack.c.bf16 %v267_v1, %v266_v27  ;;  %v84_v7 = vand.u32 15, %v3309_v34  ;;  %v164_v54 = vrot.slane %v148_v41, %v7045_v18  ;;  %v85_v25 = vand.u32 15, %v3310_v22 }
 0x190   :  { %1102 = vst.msk [vmem:[#allocation2 + $0xe0] sm:$0xff] %vm1083_vm1, %v6312_v46  ;;  %3246 = vmatpush3.bf16.msra.mxu1 %v3016_v35  ;;  %v3039_v56 = vld [vmem:[#allocation2 + $0xc8] sm:$0xff]  ;;  %v268_v48 = vsub.f32 %v191_v44, %v6171_v23  ;;  %v6325_v16 = vrot.slane %v225_v63, %v7045_v18  ;;  %2977 = vrot.lane.b32.xlu0 %v6233_v13, %s3340_s21  ;;  %v86_v17 = vand.u32 15, %v5922_v4  ;;  %v87_v30 = vand.u32 15, %v5937_v31 }
 0x191   :  { %2640 = vst.msk [vmem:[#allocation2 + $0xe8] sm:$0xff] %vm2630_vm8, %v2601_v11  ;;  %1810 = vrot.lane.b32.xlu1 %v1763_v12, %s3337_s16  ;;  %v269_v37 = vsub.f32 %v192_v24, %v6171_v23  ;;  %v118_v36 = vcvt.s32.f32 %v84_v7  ;;  %3105 = vmatprep.subr.bf16.mxu0 %v3039_v56  ;;  %v193_v55 = vmul.f32 %v164_v54, %v116_v62  ;;  %v119_v28 = vcvt.s32.f32 %v85_v25 }
 0x192   :  { %305 = vst.msk [vmem:[#allocation2 + $0xf0] sm:$0xff] %vm294_vm2, %v288_v3  ;;  %v194_v52 = vmul.f32 %v164_v54, %v117_v9  ;;  %v88_v13 = vand.u32 15, %v6073_v6  ;;  %v1434_v12 = vpop.permute.xlu0 %1433  ;;  %v2585_v59 = vpop.permute.xlu1 %2584  ;;  %v120_v23 = vcvt.s32.f32 %v86_v17  ;;  %v121_v58 = vcvt.s32.f32 %v87_v30 }
 0x193   :  { %v289_v61 = vpack.c.bf16 %v269_v37, %v268_v48  ;;  %v195_v26 = vmul.f32 %v164_v54, %v118_v36  ;;  %1473 = vst.msk [vmem:[#allocation2 + $0xe0] sm:$0xff] %vm1463_vm3, %v1434_v12  ;;  %v270_v31 = vsub.f32 %v193_v55, %v6325_v16  ;;  %v196_v0 = vmul.f32 %v164_v54, %v119_v28 }
 0x194   :  { %2632 = vst.msk [vmem:[#allocation2 + $0x28] sm:$0xff] %vm2630_vm8, %v2585_v59  ;;  %v3038_v4 = vld [vmem:[#allocation2 + $0xc0] sm:$0xff]  ;;  %v271_v33 = vsub.f32 %v194_v52, %v6325_v16  ;;  %v89_v6 = vand.u32 15, %v6083_v57  ;;  %2961 = vrot.lane.b32.xlu0 %v6270_v50, %s3340_s21  ;;  %v197_v42 = vmul.f32 %v164_v54, %v120_v23  ;;  %v198_v20 = vmul.f32 %v164_v54, %v121_v58 }
 0x195   :  { %641 = vrot.lane.b32.xlu1 %v6291_v38, %s3342_s6  ;;  %306 = vst.msk [vmem:[#allocation2 + $0x108] sm:$0xff] %vm294_vm2, %v289_v61  ;;  %v272_v32 = vsub.f32 %v195_v26, %v6325_v16  ;;  %v122_v19 = vcvt.s32.f32 %v88_v13  ;;  %3106 = vmatpush1.bf16.msra.mxu0 %v3038_v4  ;;  %v273_v8 = vsub.f32 %v196_v0, %v6325_v16 }
 0x196   :  { %v290_v15 = vpack.c.bf16 %v271_v33, %v270_v31  ;;  %v123_v51 = vcvt.s32.f32 %v89_v6  ;;  %v2966_v5 = vpop.permute.xlu0 %2965  ;;  %v1799_v57 = vpop.permute.xlu1 %1798  ;;  %v274_v29 = vsub.f32 %v197_v42, %v6325_v16  ;;  %v275_v50 = vsub.f32 %v198_v20, %v6325_v16 }
 0x197   :  { %v199_v60 = vmul.f32 %v164_v54, %v122_v19  ;;  %3005 = vst.msk [vmem:[#allocation2 + $0xe8] sm:$0xff] %vm2995_vm9, %v2966_v5  ;;  %v291_v38 = vpack.c.bf16 %v273_v8, %v272_v32 }
 0x198   :  { %1838 = vst.msk [vmem:[#allocation2 + $0xe0] sm:$0xff] %vm1828_vm4, %v1799_v57  ;;  %v200_v27 = vmul.f32 %v164_v54, %v123_v51  ;;  %v292_v10 = vpack.c.bf16 %v275_v50, %v274_v29 }
 0x199   :  { %307 = vst.msk [vmem:[#allocation2 + $0x120] sm:$0xff] %vm294_vm2, %v290_v15  ;;  %v276_v21 = vsub.f32 %v199_v60, %v6325_v16  ;;  %308 = vst.msk [vmem:[#allocation2 + $0x138] sm:$0xff] %vm294_vm2, %v291_v38 }
 0x19a   :  { %2268 = vst.msk [vmem:[#allocation2 + $0xe0] sm:$0xff] %vm2249_vm7, %v6280_v40  ;;  %v277_v45 = vsub.f32 %v200_v27, %v6325_v16  ;;  %v2950_v14 = vpop.permute.xlu0 %2949  ;;  %v630_v1 = vpop.permute.xlu1 %629 }
 0x19b   :  { %309 = vst.msk [vmem:[#allocation2 + $0x150] sm:$0xff] %vm294_vm2, %v292_v10 }
 0x19c   :  { %2997 = vst.msk [vmem:[#allocation2 + $0x28] sm:$0xff] %vm2995_vm9, %v2950_v14  ;;  %v293_v53 = vpack.c.bf16 %v277_v45, %v276_v21 }
 0x19d   :  { %669 = vst.msk [vmem:[#allocation2 + $0xd8] sm:$0xff] %vm659_vm5, %v630_v1 }
 0x19e   :  { %1101 = vst.msk [vmem:[#allocation2 + $0xd8] sm:$0xff] %vm1081_vm6, %v6312_v46  ;;  %v2222_v40 = vpop.permute.xlu0 %2221  ;;  %v1054_v43 = vpop.permute.xlu1 %1053  ;;  %v3043_v47 = vld [vmem:[#allocation2 + $0xe8] sm:$0xff] }
 0x19f   :  { %310 = vst.msk [vmem:[#allocation2 + $0x168] sm:$0xff] %vm294_vm2, %v293_v53  ;;  %3247 = vmatprep.subr.bf16.mxu1 %v3043_v47 }
 0x1a0   :  { %2271 = vst.msk [vmem:[#allocation2 + $0x100] sm:$0xff] %vm847_vm0, %v2222_v40 }
 0x1a1   :  { %1104 = vst.msk [vmem:[#allocation2 + $0xf8] sm:$0xff] %vm1083_vm1, %v1054_v43  ;;  %v3042_v44 = vld [vmem:[#allocation2 + $0xe0] sm:$0xff] }
 0x1a2   :  { %3107 = vmatprep.subr.bf16.mxu0 %v3042_v44  ;;  %v2603_v62 = vpop.permute.xlu0 %2602  ;;  %v1436_v49 = vpop.permute.xlu1 %1435 }
 0x1a3   :  { %v3019_v41 = vld [vmem:[#allocation2 + $0x28] sm:$0xff]  ;;  %2641 = vst.msk [vmem:[#allocation2 + $0x100] sm:$0xff] %vm2630_vm8, %v2603_v62 }
 0x1a4   :  { %1474 = vst.msk [vmem:[#allocation2 + $0xf8] sm:$0xff] %vm1463_vm3, %v1436_v49  ;;  %3248 = vmatpush3.bf16.msra.mxu1 %v3019_v41 }
 0x1a5   :  { %v3041_v2 = vld [vmem:[#allocation2 + $0xd8] sm:$0xff] }
 0x1a6   :  { %3108 = vmatpush1.bf16.msra.mxu0 %v3041_v2  ;;  %v2587_v63 = vpop.permute.xlu0 %2586  ;;  %v2968_v46 = vpop.permute.xlu1 %2967 }
 0x1a7   :  { %2633 = vst.msk [vmem:[#allocation2 + $0x40] sm:$0xff] %vm2630_vm8, %v2587_v63 }
 0x1a8   :  { %3006 = vst.msk [vmem:[#allocation2 + $0x100] sm:$0xff] %vm2995_vm9, %v2968_v46 }
 0x1aa   :  { %v1801_v11 = vpop.permute.xlu0 %1800  ;;  %v2952_v35 = vpop.permute.xlu1 %2951 }
 0x1ab   :  { %1839 = vst.msk [vmem:[#allocation2 + $0xf8] sm:$0xff] %vm1828_vm4, %v1801_v11 }
 0x1ac   :  { %2998 = vst.msk [vmem:[#allocation2 + $0x40] sm:$0xff] %vm2995_vm9, %v2952_v35 }
 0x1ad   :  { %2270 = vst.msk [vmem:[#allocation2 + $0xf8] sm:$0xff] %vm2249_vm7, %v2222_v40 }
 0x1ae   :  { %v632_v3 = vpop.permute.xlu0 %631  ;;  %v2224_v24 = vpop.permute.xlu1 %2223 }
 0x1af   :  { %v3046_v9 = vld [vmem:[#allocation2 + $0x100] sm:$0xff]  ;;  %670 = vst.msk [vmem:[#allocation2 + $0xf0] sm:$0xff] %vm659_vm5, %v632_v3 }
 0x1b0   :  { %2273 = vst.msk [vmem:[#allocation2 + $0x118] sm:$0xff] %vm847_vm0, %v2224_v24  ;;  %3249 = vmatprep.subr.bf16.mxu1 %v3046_v9 }
 0x1b1   :  { %1103 = vst.msk [vmem:[#allocation2 + $0xf0] sm:$0xff] %vm1081_vm6, %v1054_v43 }
 0x1b2   :  { %v1056_v34 = vpop.permute.xlu0 %1055  ;;  %v2605_v7 = vpop.permute.xlu1 %2604 }
 0x1b3   :  { %v3022_v56 = vld [vmem:[#allocation2 + $0x40] sm:$0xff]  ;;  %1106 = vst.msk [vmem:[#allocation2 + $0x110] sm:$0xff] %vm1083_vm1, %v1056_v34 }
 0x1b4   :  { %2642 = vst.msk [vmem:[#allocation2 + $0x118] sm:$0xff] %vm2630_vm8, %v2605_v7  ;;  %3250 = vmatpush3.bf16.msra.mxu1 %v3022_v56  ;;  %v3045_v48 = vld [vmem:[#allocation2 + $0xf8] sm:$0xff] }
 0x1b5   :  { %3109 = vmatprep.subr.bf16.mxu0 %v3045_v48  ;;  %v3278_v48 = vld [vmem:[%s6456_s0] ss:$8 sps:$4 sm:$0xff]   ;;  %s3343_s0 = smov [#allocation3]  }
 0x1b6   :  { %v1438_v54 = vpop.permute.xlu0 %1437  ;;  %v2589_v16 = vpop.permute.xlu1 %2588  ;;  %s3184_s27 = sshll.u32 %s3343_s0, 4  ;;  %s3185_s27 = int_to_ptr.vmem [resolvable:$true] %s3184_s27 }
 0x1b7   :  { %1475 = vst.msk [vmem:[#allocation2 + $0x110] sm:$0xff] %vm1463_vm3, %v1438_v54  ;;  %p3316_p1 = scmp.lt.s32.totalorder %s3185_s27, %s3185_s27 }
 0x1b8   :  { %2634 = vst.msk [vmem:[#allocation2 + $0x58] sm:$0xff] %vm2630_vm8, %v2589_v16  ;;  %v3044_v22 = vld [vmem:[#allocation2 + $0xf0] sm:$0xff]  ;;  %v3062_v16 = vld [vmem:[%s6460_s4] sm:$0x7]  ;;  %s3311_s4 = scalar_lea.vmem %s3185_s27, 768 }
 0x1b9   :  { %3110 = vmatpush1.bf16.msra.mxu0 %v3044_v22  ;;  %v7048_v22 = vld [vmem:[#allocation6_spill] sm:$0xff]  ;;  %p3312_p0 = scmp.ne.s32.totalorder %s3185_s27, %s3311_s4  ;;  %p3317_p2 = scmp.lt.s32.totalorder %s3311_s4, %s3311_s4 }
 0x1ba   :  { %v2970_v25 = vpop.permute.xlu0 %2969  ;;  %v1803_v37 = vpop.permute.xlu1 %1802 }
 0x1bb   :  { %3007 = vst.msk [vmem:[#allocation2 + $0x118] sm:$0xff] %vm2995_vm9, %v2970_v25  ;;  %v3074_v25 = vsub.s32 2, %v7048_v22  ;;  %p3318_p3 = por %p3317_p2, %p3316_p1 }
 0x1bc   :  { %1840 = vst.msk [vmem:[#allocation2 + $0x110] sm:$0xff] %vm1828_vm4, %v1803_v37  ;;  %v3067_v37 = vrot.slane %v3062_v16, %v7045_v18 }
 0x1bd   :  { %2272 = vst.msk [vmem:[#allocation2 + $0x110] sm:$0xff] %vm2249_vm7, %v2224_v24  ;;  %p3319_p4 = pnand %p3318_p3, %p3312_p0 }
 0x1be   :  { %v2954_v36 = vpop.permute.xlu0 %2953  ;;  %v634_v17 = vpop.permute.xlu1 %633 }
 0x1bf   :  { %2999 = vst.msk [vmem:[#allocation2 + $0x58] sm:$0xff] %vm2995_vm9, %v2954_v36  ;;  %v7049_v36 = vld [vmem:[#allocation9_spill] sm:$0xff] }
 0x1c0   :  { %671 = vst.msk [vmem:[#allocation2 + $0x108] sm:$0xff] %vm659_vm5, %v634_v17  ;;  %v3071_v17 = vrot.slane %v3062_v16, %v7049_v36 }
 0x1c1   :  { %1105 = vst.msk [vmem:[#allocation2 + $0x108] sm:$0xff] %vm1081_vm6, %v1056_v34 }
 0x1c2   :  { %v2226_v30 = vpop.permute.xlu0 %2225  ;;  %v1058_v39 = vpop.permute.xlu1 %1057  ;;  %v3049_v55 = vld [vmem:[#allocation2 + $0x118] sm:$0xff] }
 0x1c3   :  { %2275 = vst.msk [vmem:[#allocation2 + $0x130] sm:$0xff] %vm847_vm0, %v2226_v30  ;;  %3251 = vmatprep.subr.bf16.mxu1 %v3049_v55 }
 0x1c4   :  { %1108 = vst.msk [vmem:[#allocation2 + $0x128] sm:$0xff] %vm1083_vm1, %v1058_v39  ;;  %v3048_v52 = vld [vmem:[#allocation2 + $0x110] sm:$0xff] }
 0x1c5   :  { %3111 = vmatprep.subr.bf16.mxu0 %v3048_v52 }
 0x1c6   :  { %v2607_v28 = vpop.permute.xlu0 %2606  ;;  %v1440_v13 = vpop.permute.xlu1 %1439  ;;  %v3025_v12 = vld [vmem:[#allocation2 + $0x58] sm:$0xff] }
 0x1c7   :  { %2643 = vst.msk [vmem:[#allocation2 + $0x130] sm:$0xff] %vm2630_vm8, %v2607_v28  ;;  %3252 = vmatpush3.bf16.msra.mxu1 %v3025_v12 }
 0x1c8   :  { %1476 = vst.msk [vmem:[#allocation2 + $0x128] sm:$0xff] %vm1463_vm3, %v1440_v13  ;;  %v3047_v59 = vld [vmem:[#allocation2 + $0x108] sm:$0xff] }
 0x1c9   :  { %3112 = vmatpush1.bf16.msra.mxu0 %v3047_v59 }
 0x1ca   :  { %v2591_v61 = vpop.permute.xlu0 %2590  ;;  %v2972_v26 = vpop.permute.xlu1 %2971 }
 0x1cb   :  { %2635 = vst.msk [vmem:[#allocation2 + $0x70] sm:$0xff] %vm2630_vm8, %v2591_v61 }
 0x1cc   :  { %3008 = vst.msk [vmem:[#allocation2 + $0x130] sm:$0xff] %vm2995_vm9, %v2972_v26 }
 0x1ce   :  { %v1805_v23 = vpop.permute.xlu0 %1804  ;;  %v2956_v58 = vpop.permute.xlu1 %2955 }
 0x1cf   :  { %1841 = vst.msk [vmem:[#allocation2 + $0x128] sm:$0xff] %vm1828_vm4, %v1805_v23 }
 0x1d0   :  { %3000 = vst.msk [vmem:[#allocation2 + $0x70] sm:$0xff] %vm2995_vm9, %v2956_v58 }
 0x1d1   :  { %2274 = vst.msk [vmem:[#allocation2 + $0x128] sm:$0xff] %vm2249_vm7, %v2226_v30 }
 0x1d2   :  { %v636_v4 = vpop.permute.xlu0 %635  ;;  %v2228_v31 = vpop.permute.xlu1 %2227 }
 0x1d3   :  { %v3052_v33 = vld [vmem:[#allocation2 + $0x130] sm:$0xff]  ;;  %672 = vst.msk [vmem:[#allocation2 + $0x120] sm:$0xff] %vm659_vm5, %v636_v4 }
 0x1d4   :  { %2277 = vst.msk [vmem:[#allocation2 + $0x148] sm:$0xff] %vm847_vm0, %v2228_v31  ;;  %3253 = vmatprep.subr.bf16.mxu1 %v3052_v33 }
 0x1d5   :  { %1107 = vst.msk [vmem:[#allocation2 + $0x120] sm:$0xff] %vm1081_vm6, %v1058_v39  ;;  %v3075_v39 = vrot.slane %v3062_v16, %v3074_v25 }
 0x1d6   :  { %v1060_v0 = vpop.permute.xlu0 %1059  ;;  %v2609_v6 = vpop.permute.xlu1 %2608 }
 0x1d7   :  { %v3028_v32 = vld [vmem:[#allocation2 + $0x70] sm:$0xff]  ;;  %1110 = vst.msk [vmem:[#allocation2 + $0x140] sm:$0xff] %vm1083_vm1, %v1060_v0 }
 0x1d8   :  { %2644 = vst.msk [vmem:[#allocation2 + $0x148] sm:$0xff] %vm2630_vm8, %v2609_v6  ;;  %3254 = vmatpush3.bf16.msra.mxu1 %v3028_v32  ;;  %v3051_v42 = vld [vmem:[#allocation2 + $0x128] sm:$0xff] }
 0x1d9   :  { %3113 = vmatprep.subr.bf16.mxu0 %v3051_v42 }
 0x1da   :  { %v1442_v20 = vpop.permute.xlu0 %1441  ;;  %v2593_v19 = vpop.permute.xlu1 %2592 }
 0x1db   :  { %1477 = vst.msk [vmem:[#allocation2 + $0x140] sm:$0xff] %vm1463_vm3, %v1442_v20 }
 0x1dc   :  { %2636 = vst.msk [vmem:[#allocation2 + $0x88] sm:$0xff] %vm2630_vm8, %v2593_v19  ;;  %v3050_v15 = vld [vmem:[#allocation2 + $0x120] sm:$0xff] }
 0x1dd   :  { %3114 = vmatpush1.bf16.msra.mxu0 %v3050_v15 }
 0x1de   :  { %v2974_v8 = vpop.permute.xlu0 %2973  ;;  %v1807_v51 = vpop.permute.xlu1 %1806 }
 0x1df   :  { %3009 = vst.msk [vmem:[#allocation2 + $0x148] sm:$0xff] %vm2995_vm9, %v2974_v8 }
 0x1e0   :  { %1842 = vst.msk [vmem:[#allocation2 + $0x140] sm:$0xff] %vm1828_vm4, %v1807_v51 }
 0x1e1   :  { %2276 = vst.msk [vmem:[#allocation2 + $0x140] sm:$0xff] %vm2249_vm7, %v2228_v31 }
 0x1e2   :  { %v2958_v5 = vpop.permute.xlu0 %2957  ;;  %v638_v57 = vpop.permute.xlu1 %637 }
 0x1e3   :  { %3001 = vst.msk [vmem:[#allocation2 + $0x88] sm:$0xff] %vm2995_vm9, %v2958_v5 }
 0x1e4   :  { %673 = vst.msk [vmem:[#allocation2 + $0x138] sm:$0xff] %vm659_vm5, %v638_v57 }
 0x1e5   :  { %1109 = vst.msk [vmem:[#allocation2 + $0x138] sm:$0xff] %vm1081_vm6, %v1060_v0 }
 0x1e6   :  { %v2230_v29 = vpop.permute.xlu0 %2229  ;;  %v1062_v50 = vpop.permute.xlu1 %1061  ;;  %v3055_v60 = vld [vmem:[#allocation2 + $0x148] sm:$0xff] }
 0x1e7   :  { %2279 = vst.msk [vmem:[#allocation2 + $0x160] sm:$0xff] %vm847_vm0, %v2230_v29  ;;  %3255 = vmatprep.subr.bf16.mxu1 %v3055_v60 }
 0x1e8   :  { %1112 = vst.msk [vmem:[#allocation2 + $0x158] sm:$0xff] %vm1083_vm1, %v1062_v50  ;;  %v3054_v38 = vld [vmem:[#allocation2 + $0x140] sm:$0xff] }
 0x1e9   :  { %3115 = vmatprep.subr.bf16.mxu0 %v3054_v38 }
 0x1ea   :  { %v2611_v27 = vpop.permute.xlu0 %2610  ;;  %v3031_v21 = vld [vmem:[#allocation2 + $0x88] sm:$0xff] }
 0x1eb   :  { %v1444_v10 = vpop.permute.xlu1 %1443  ;;  %2645 = vst.msk [vmem:[#allocation2 + $0x160] sm:$0xff] %vm2630_vm8, %v2611_v27  ;;  %3256 = vmatpush3.bf16.msra.mxu1 %v3031_v21 }
 0x1ec   :  { %1478 = vst.msk [vmem:[#allocation2 + $0x158] sm:$0xff] %vm1463_vm3, %v1444_v10  ;;  %v3053_v45 = vld [vmem:[#allocation2 + $0x138] sm:$0xff] }
 0x1ed   :  { %3116 = vmatpush1.bf16.msra.mxu0 %v3053_v45 }
 0x1ee   :  { %v2595_v14 = vpop.permute.xlu0 %2594 }
 0x1ef   :  { %v2976_v1 = vpop.permute.xlu1 %2975  ;;  %2637 = vst.msk [vmem:[#allocation2 + $0xa0] sm:$0xff] %vm2630_vm8, %v2595_v14 }
 0x1f0   :  { %3010 = vst.msk [vmem:[#allocation2 + $0x160] sm:$0xff] %vm2995_vm9, %v2976_v1 }
 0x1f2   :  { %v1809_v53 = vpop.permute.xlu0 %1808 }
 0x1f3   :  { %v2960_v40 = vpop.permute.xlu1 %2959  ;;  %1843 = vst.msk [vmem:[#allocation2 + $0x158] sm:$0xff] %vm1828_vm4, %v1809_v53 }
 0x1f4   :  { %3002 = vst.msk [vmem:[#allocation2 + $0xa0] sm:$0xff] %vm2995_vm9, %v2960_v40 }
 0x1f5   :  { %2278 = vst.msk [vmem:[#allocation2 + $0x158] sm:$0xff] %vm2249_vm7, %v2230_v29 }
 0x1f6   :  { %v640_v43 = vpop.permute.xlu0 %639 }
 0x1f7   :  { %v2232_v47 = vpop.permute.xlu1 %2231  ;;  %v3058_v44 = vld [vmem:[#allocation2 + $0x160] sm:$0xff]  ;;  %674 = vst.msk [vmem:[#allocation2 + $0x150] sm:$0xff] %vm659_vm5, %v640_v43 }
 0x1f8   :  { %2281 = vst.msk [vmem:[#allocation2 + $0x178] sm:$0xff] %vm847_vm0, %v2232_v47  ;;  %3257 = vmatprep.subr.bf16.mxu1 %v3058_v44 }
 0x1f9   :  { %1111 = vst.msk [vmem:[#allocation2 + $0x150] sm:$0xff] %vm1081_vm6, %v1062_v50 }
 0x1fa   :  { %v1064_v62 = vpop.permute.xlu0 %1063 }
 0x1fb   :  { %v2613_v49 = vpop.permute.xlu1 %2612  ;;  %v3034_v41 = vld [vmem:[#allocation2 + $0xa0] sm:$0xff]  ;;  %1114 = vst.msk [vmem:[#allocation2 + $0x170] sm:$0xff] %vm1083_vm1, %v1064_v62 }
 0x1fc   :  { %2646 = vst.msk [vmem:[#allocation2 + $0x178] sm:$0xff] %vm2630_vm8, %v2613_v49  ;;  %3258 = vmatpush3.bf16.msra.mxu1 %v3034_v41  ;;  %v3057_v2 = vld [vmem:[#allocation2 + $0x158] sm:$0xff] }
 0x1fd   :  { %3117 = vmatprep.subr.bf16.mxu0 %v3057_v2 }
 0x1fe   :  { %v1446_v63 = vpop.permute.xlu0 %1445 }
 0x1ff   :  { %v2597_v46 = vpop.permute.xlu1 %2596  ;;  %1479 = vst.msk [vmem:[#allocation2 + $0x170] sm:$0xff] %vm1463_vm3, %v1446_v63 }
 0x200   :  { %2638 = vst.msk [vmem:[#allocation2 + $0xb8] sm:$0xff] %vm2630_vm8, %v2597_v46  ;;  %v3056_v11 = vld [vmem:[#allocation2 + $0x150] sm:$0xff] }
 0x201   :  { %3118 = vmatpush1.bf16.msra.mxu0 %v3056_v11 }
 0x202   :  { %v2978_v35 = vpop.permute.xlu0 %2977 }
 0x203   :  { %v1811_v3 = vpop.permute.xlu1 %1810  ;;  %3011 = vst.msk [vmem:[#allocation2 + $0x178] sm:$0xff] %vm2995_vm9, %v2978_v35 }
 0x204   :  { %1844 = vst.msk [vmem:[#allocation2 + $0x170] sm:$0xff] %vm1828_vm4, %v1811_v3 }
 0x205   :  { %2280 = vst.msk [vmem:[#allocation2 + $0x170] sm:$0xff] %vm2249_vm7, %v2232_v47 }
 0x206   :  { %v2962_v24 = vpop.permute.xlu0 %2961 }
 0x207   :  { %v642_v9 = vpop.permute.xlu1 %641  ;;  %3003 = vst.msk [vmem:[#allocation2 + $0xb8] sm:$0xff] %vm2995_vm9, %v2962_v24 }
 0x208   :  { %675 = vst.msk [vmem:[#allocation2 + $0x168] sm:$0xff] %vm659_vm5, %v642_v9 }
 0x209   :  { %1113 = vst.msk [vmem:[#allocation2 + $0x168] sm:$0xff] %vm1081_vm6, %v1064_v62 }
 0x20a   :  { %v3061_v34 = vld [vmem:[#allocation2 + $0x178] sm:$0xff] }
 0x20b   :  { %3259 = vmatprep.subr.bf16.mxu1 %v3061_v34 }
 0x20c   :  { %v3060_v7 = vld [vmem:[#allocation2 + $0x170] sm:$0xff] }
 0x20d   :  { %3119 = vmatprep.subr.bf16.mxu0 %v3060_v7 }
 0x20e   :  { %v3037_v56 = vld [vmem:[#allocation2 + $0xb8] sm:$0xff] }
 0x20f   :  { %3260 = vmatpush3.bf16.msra.mxu1 %v3037_v56 }
 0x210   :  { %v3059_v54 = vld [vmem:[#allocation2 + $0x168] sm:$0xff] }
 0x211   :  { %3120 = vmatpush1.bf16.msra.mxu0 %v3059_v54 }
 0x212   :  { %3165 = vmatmul.mubr.bf16.vlgmr.msra.gmra.mrb[0].mxu1 %v3278_v48 }
 0x214   :  { %3122 = vmatmul.mubr.bf16.vlgmr.msra.gmra.mrb[0].mxu0 %v3278_v48 }
 0x2e5   :  { %v3261_v30 = vpop.f32.mrb[0].mxu1 }
 0x2e6   :  { %v3262_v52 = vpop.f32.mrb[1].mxu1 }
 0x2e7   :  { %v3123_v55 = vpop.f32.mrb[0].mxu0  ;;  %v3263_v13 = vadd.f32 %v3262_v52, %v3261_v30  ;;  %v3264_v59 = vpop.f32.mrb[2].mxu1 }
 0x2e8   :  { %v3124_v28 = vadd.f32 %v3123_v55, %v3067_v37  ;;  %v3125_v12 = vpop.f32.mrb[1].mxu0  ;;  %v3265_v23 = vpop.f32.mrb[3].mxu1 }
 0x2e9   :  { %v3126_v61 = vadd.f32 %v3125_v12, %v3071_v17  ;;  %v3127_v26 = vpop.f32.mrb[2].mxu0  ;;  %v3167_v58 = vadd.f32 %v3263_v13, %v3075_v39  ;;  %v3266_v31 = vadd.f32 %v3265_v23, %v3264_v59 }
 0x2ea   :  { %3173 = vst [vmem:[#allocation3] sm:$0xff] %v3124_v28  ;;  %v3128_v4 = vadd.f32 %v3127_v26, %v3067_v37  ;;  %v3129_v18 = vpop.f32.mrb[3].mxu0 }
 0x2eb   :  { %3174 = vst [vmem:[#allocation3 + $0x8] sm:$0xff] %v3126_v61  ;;  %v3130_v33 = vadd.f32 %v3129_v18, %v3071_v17  ;;  %3175 = vst [vmem:[#allocation3 + $0x10] sm:$0xff] %v3167_v58  ;;  %v3170_v0 = vadd.f32 %v3266_v31, %v3075_v39 }
 0x2ec   :  { %3176 = vst [vmem:[#allocation3 + $0x18] sm:$0xff] %v3128_v4 }
 0x2ed   :  { %3177 = vst [vmem:[#allocation3 + $0x20] sm:$0xff] %v3130_v33  ;;  %3178 = vst [vmem:[#allocation3 + $0x28] sm:$0xff] %v3170_v0 }
 0x2ee   :  { %3322 = shalt.err (!%p3319_p4)
}
 0x2ef   :  { %s3323_s30 = scalar_lea.hbm %s6461_s5, 768 }
 0x2f0   :  { %p3324_p5 = scmp.ne.s32.totalorder %s6461_s5, %s3323_s30  ;;  %p3327_p6 = scmp.lt.u32.totalorder %s3323_s30, %s6461_s5 }
 0x2f2   :  { %p3329_p7 = pnand %p3327_p6, %p3324_p5 }
 0x2f4   :  { %3332 = shalt.err (!%p3329_p7)
}
 0x2f5   :  { %s3344_s10 = smov 384   ;;  %s3345_s11 = smov 24  }
 0x2f6   :  { %3190 = dma.vmem_to_hbm [thread:$0]  %s3185_s27, 768, %s6461_s5, [#allocation4], %s3344_s10, %s3344_s10, %s3345_s11  }
 0x2f7   :  { %3333 = dma.done.wait [#allocation4], 768  }
 0x2f8   :  { %3334 = vsyncadd [#allocation4], 4294966528 }
 0x2f9   :  { %3194 = vsyncpa [#allocation4], 1 }

</bundles_post_ra>
